<compile_context>
chip_gen: v6e
topology: v6e:2x2x1
jax: 0.10.0
libtpu: 0.0.40
codegen_flags: <defaults>
</compile_context>

<pallas_src>
import functools

import numpy as np
import jax
import jax.numpy as jnp
from jax.experimental import pallas as pl
from jax.experimental.pallas import tpu as pltpu


_RMS_BLOCK_BYTES = 2 << 20          # ~2 MiB kernel-1 input blocks (x2 double-buffered)
_MIN_RMS_BLOCK_BYTES = 1 << 20      # only add grid steps if blocks stay >= ~1 MiB
_TARGET_ROWS_PER_GATHER_STEP = 512  # output rows produced per compaction step
_MAX_FRAMES_PER_GATHER_STEP = 64    # cap on unrolled per-step DMA count
_GATHER_SEMS = 16                   # DMA semaphores shared round-robin per step


def _round_up(x, m):
    return ((x + m - 1) // m) * m


def _cdiv(a, b):
    return -(-a // b)


# ---------------------------------------------------------------------------
# Kernel 1: per-hop-row sum of squares (the RMS reduction hot path).
# ---------------------------------------------------------------------------
def _row_sumsq_kernel(rows_ref, out_ref):
    x = rows_ref[...]
    out_ref[...] = jnp.sum(x * x, axis=-1, keepdims=True)


def _row_sumsq(rows, tile):
    n_rows, hop = rows.shape
    return pl.pallas_call(
        _row_sumsq_kernel,
        out_shape=jax.ShapeDtypeStruct((n_rows, 1), jnp.float32),
        grid=(n_rows // tile,),
        in_specs=[pl.BlockSpec((tile, hop), lambda i: (i, 0))],
        out_specs=pl.BlockSpec((tile, 1), lambda i: (i, 0)),
        compiler_params=pltpu.CompilerParams(dimension_semantics=("parallel",)),
    )(rows)


# ---------------------------------------------------------------------------
# Kernel 2: compaction of the selected frames, direct HBM -> HBM.
# ---------------------------------------------------------------------------
def _gather_kernel(src_ref, cnt_ref, rows_hbm, out_hbm, sems, *,
                   frames_per_step, rows_per_frame, row_offset):
    j = pl.program_id(0)
    cnt = cnt_ref[0]

    # Build every descriptor once (lazy; no ops emitted) so the waits reuse
    # exactly the started copies instead of dummy same-size descriptors.
    copies = []
    for g in range(frames_per_step):
        slot = j * frames_per_step + g
        src_row = src_ref[slot] + row_offset
        copies.append(pltpu.make_async_copy(
            rows_hbm.at[pl.ds(src_row, rows_per_frame)],
            out_hbm.at[pl.ds(slot * rows_per_frame, rows_per_frame)],
            sems.at[g % _GATHER_SEMS],
        ))

    # Start all selected frames' DMAs so they stay in flight together ...
    for g in range(frames_per_step):
        slot = j * frames_per_step + g

        @pl.when(slot < cnt)
        def _start(g=g):
            copies[g].start()

    # ... then wait on the same descriptors.  All copies move an identical
    # byte count, so round-robin semaphore sharing is sound.
    for g in range(frames_per_step):
        slot = j * frames_per_step + g

        @pl.when(slot < cnt)
        def _wait(g=g):
            copies[g].wait()


def _compact_frames(rows, src_idx, count_arr, *, num_frames_pad,
                    rows_per_frame, row_offset, hop, frames_per_step):
    num_out_rows = num_frames_pad * rows_per_frame
    kernel = functools.partial(_gather_kernel,
                               frames_per_step=frames_per_step,
                               rows_per_frame=rows_per_frame,
                               row_offset=row_offset)
    grid_spec = pltpu.PrefetchScalarGridSpec(
        num_scalar_prefetch=2,
        grid=(num_frames_pad // frames_per_step,),
        in_specs=[pl.BlockSpec(memory_space=pl.ANY)],   # flat signal stays in HBM
        out_specs=pl.BlockSpec(memory_space=pl.ANY),    # gather directly HBM->HBM
        scratch_shapes=[pltpu.SemaphoreType.DMA((_GATHER_SEMS,))],
    )
    return pl.pallas_call(
        kernel,
        out_shape=jax.ShapeDtypeStruct((num_out_rows, hop), jnp.float32),
        grid_spec=grid_spec,
        compiler_params=pltpu.CompilerParams(dimension_semantics=("arbitrary",)),
    )(src_idx, count_arr, rows)


# ---------------------------------------------------------------------------
# Device pipeline (jitted): RMS gate + frame compaction, all on device.
# ---------------------------------------------------------------------------
@functools.partial(jax.jit,
                   static_argnames=("threshold", "frame_length", "hop_length"))
def _remove_silence_device(y, *, threshold, frame_length, hop_length):
    fl, hop = frame_length, hop_length
    T = y.shape[0]
    R = fl // hop
    pad = fl // 2
    num_frames = 1 + T // hop

    # The gather reads frames of the *unpadded* signal; those line up with hop
    # rows of the center-padded signal iff pad is a multiple of hop (R even).
    share = (pad % hop == 0)
    row_off = pad // hop if share else 0

    rows_rms = num_frames + R - 1                       # rows the RMS sum touches
    rows_min = max(rows_rms, _cdiv(T + 2 * pad, hop))   # hold the full librosa pad
    if share:
        rows_min = max(rows_min, num_frames - 1 + row_off + R)

    # ---- Kernel 1: hop-row sum of squares of the center-padded signal ----
    target_rows = max(512, _round_up(_RMS_BLOCK_BYTES // (4 * hop), 8))
    rows_1mb = max(8, _round_up(_MIN_RMS_BLOCK_BYTES // (4 * hop), 8))
    # Hop-aware tiles (~2 MiB); on large inputs keep >= ~4 'parallel' grid
    # steps (v7x has 2 TensorCores) as long as blocks stay >= ~1 MiB.
    tile = min(target_rows,
               max(rows_1mb, _round_up(_cdiv(rows_min, 4), 8)),
               _round_up(rows_min, 8))
    rows_padded = _round_up(rows_min, tile)

    padded = jnp.pad(y, (pad, rows_padded * hop - T - pad))   # single fused pad
    rows = padded.reshape(rows_padded, hop)
    row_ss = _row_sumsq(rows, tile)[:, 0]

    # Per-frame energy = sliding sum of R consecutive hop rows (tiny, in XLA).
    frame_ss = row_ss[:num_frames]
    for r in range(1, R):
        frame_ss = frame_ss + row_ss[r:r + num_frames]
    rms = jnp.sqrt(frame_ss / jnp.float32(fl))
    mask = rms > jnp.float32(threshold)

    # Gather-step sizing: G frames per step.
    G = max(1, min(_MAX_FRAMES_PER_GATHER_STEP, _TARGET_ROWS_PER_GATHER_STEP // R))
    num_frames_pad = _round_up(num_frames, G)
    mask_pad = jnp.pad(mask, (0, num_frames_pad - num_frames))
    count = jnp.sum(mask_pad).astype(jnp.int32)
    src_idx = jnp.nonzero(mask_pad, size=num_frames_pad,
                          fill_value=0)[0].astype(jnp.int32)

    # ---- Kernel 2: compact selected frames, HBM -> HBM ----
    if share:
        gather_rows = rows          # reuse the padded row buffer, no extra copy
    else:
        # TODO(synk): odd frame_length/hop_length ratios need a separate
        # unpadded row view of the signal for the gather.
        n_rows_ext = num_frames + R - 1
        gather_rows = jnp.pad(y, (0, n_rows_ext * hop - T)).reshape(n_rows_ext, hop)

    out_rows = _compact_frames(gather_rows, src_idx, count.reshape(1),
                               num_frames_pad=num_frames_pad,
                               rows_per_frame=R, row_offset=row_off,
                               hop=hop, frames_per_step=G)
    frames = out_rows.reshape(num_frames_pad, fl)
    return frames, src_idx, count


class RemoveSilencePallas:
    """Pallas/TPU port of preprocess.transforms.remove_silence.RemoveSilence."""

    def __init__(self, threshold=0.01, frame_length=2048, hop_length=512):
        self.threshold = float(threshold)
        self.frame_length = int(frame_length)
        self.hop_length = int(hop_length)
        if self.frame_length % self.hop_length != 0:
            # TODO(synk): general frame/hop ratios need a different RMS framing.
            raise ValueError("frame_length must be a multiple of hop_length")

    def __call__(self, waveform):
        fl, hop = self.frame_length, self.hop_length
        y = waveform.reshape(-1).astype(jnp.float32)
        T = int(y.shape[0])

        frames, src_idx, count = _remove_silence_device(
            y, threshold=self.threshold, frame_length=fl, hop_length=hop)

        # TODO(synk): the output length is data-dependent, so one host sync and
        # a tiny (<= fl/hop frames) ragged-tail concat remain host-side; the
        # bulk RMS reduction and frame compaction run in the Pallas kernels.
        n_sel = int(count)
        if n_sel == 0:
            return jnp.zeros_like(waveform)

        sel = np.asarray(src_idx[:n_sel]).astype(np.int64)
        n_full = int(np.sum(sel * hop + fl <= T))        # full frames are a prefix
        parts = [frames[:n_full].reshape(-1)]
        for k in range(n_full, n_sel):                   # at most fl/hop frames
            ln = int(max(0, min(fl, T - int(sel[k]) * hop)))
            parts.append(frames[k, :ln])
        y_out = jnp.concatenate(parts)
        return y_out.astype(waveform.dtype)[None, :]


if __name__ == "__main__":
    key = jax.random.PRNGKey(0)
    T = 4096
    frame_length, hop_length, threshold = 512, 128, 0.01

    wav = 0.1 * jax.random.normal(key, (1, T), dtype=jnp.float32)
    wav = wav.at[:, 1024:2304].set(0.0)  # inject a silent region

    mod = RemoveSilencePallas(threshold=threshold,
                              frame_length=frame_length,
                              hop_length=hop_length)
    result = jax.block_until_ready(mod(wav))

    # Pure-numpy reference mirroring the torch/librosa forward.
    y = np.asarray(wav)[0]
    yp = np.pad(y, frame_length // 2)
    nf = 1 + (len(yp) - frame_length) // hop_length
    rms_ref = np.array(
        [np.sqrt(np.mean(yp[i * hop_length: i * hop_length + frame_length] ** 2))
         for i in range(nf)]
    )
    nsi = [i for i, e in enumerate(rms_ref) if e > threshold]
    if not nsi:
        ref = np.zeros_like(np.asarray(wav))
    else:
        segs = [y[i * hop_length: i * hop_length + frame_length] for i in nsi]
        ref = np.concatenate(segs)[None, :]

    np.testing.assert_allclose(np.asarray(result), ref, rtol=1e-5, atol=1e-6)
    print("KERNEL_OK")
</pallas_src>

<mosaic_0001>
module attributes {stable_mosaic.version = 11 : i64} {
  func.func private @main(%arg0: i32) attributes {dimension_semantics = [#tpu.dimension_semantics<core_parallel>], iteration_bounds = array<i64: 2>, tpu.core_type = #tpu.core_type<sc_scalar_subcore>, window_params = []} {
    return
  }
}

module attributes {stable_mosaic.version = 11 : i64} {
  func.func private @main(%arg0: i32) attributes {dimension_semantics = [#tpu.dimension_semantics<core_parallel>], iteration_bounds = array<i64: 2>, tpu.core_type = #tpu.core_type<sc_scalar_subcore>, window_params = []} {
    return
  }
}

module attributes {stable_mosaic.version = 11 : i64} {
  func.func @_row_sumsq_kernel(%arg0: i32, %arg1: memref<40x128xf32, #tpu.memory_space<vmem>>, %arg2: memref<40x1xf32, #tpu.memory_space<vmem>>) attributes {dimension_semantics = [#tpu.dimension_semantics<parallel>], iteration_bounds = array<i64: 1>, scalar_prefetch = 0 : i64, scratch_operands = 0 : i64, tpu.core_type = #tpu.core_type<tc>, window_params = [{transform_indices = @transform_0, window_bounds = array<i64: 40, 128>}, {transform_indices = @transform_1, window_bounds = array<i64: 40, 1>}]} {
    %c0 = arith.constant 0 : index
    %c0_0 = arith.constant 0 : index
    %0 = vector.load %arg1[%c0, %c0_0] : memref<40x128xf32, #tpu.memory_space<vmem>>, vector<40x128xf32>
    %1 = arith.mulf %0, %0 : vector<40x128xf32>
    %cst = arith.constant dense<0.000000e+00> : vector<40xf32>
    %2 = vector.multi_reduction <add>, %1, %cst [1] : vector<40x128xf32> to vector<40xf32>
    %3 = vector.shape_cast %2 : vector<40xf32> to vector<40x1xf32>
    %c0_1 = arith.constant 0 : index
    %c0_2 = arith.constant 0 : index
    %4 = vector.load %arg2[%c0_1, %c0_2] : memref<40x1xf32, #tpu.memory_space<vmem>>, vector<40x1xf32>
    tpu.vector_store %arg2[%c0_1, %c0_2], %3 {strides = array<i32>} : memref<40x1xf32, #tpu.memory_space<vmem>>, vector<40x1xf32>,
    return
  }
  func.func @transform_0(%arg0: i32) -> (i32, i32) {
    %c0_i32 = arith.constant 0 : i32
    %c0_i32_0 = arith.constant 0 : i32
    return %arg0, %c0_i32 : i32, i32
  }
  func.func @transform_1(%arg0: i32) -> (i32, i32) {
    %c0_i32 = arith.constant 0 : i32
    %c0_i32_0 = arith.constant 0 : i32
    return %arg0, %c0_i32 : i32, i32
  }
}

module attributes {stable_mosaic.version = 11 : i64} {
  func.func @_gather_kernel(%arg0: i32, %arg1: memref<64xi32, #tpu.memory_space<smem>>, %arg2: memref<1xi32, #tpu.memory_space<smem>>, %arg3: memref<40x128xf32, #tpu.memory_space<any>>, %arg4: memref<256x128xf32, #tpu.memory_space<any>>, %arg5: memref<16x!tpu.dma_semaphore, #tpu.memory_space<semaphore_mem>>) attributes {dimension_semantics = [#tpu.dimension_semantics<arbitrary>], iteration_bounds = array<i64: 1>, scalar_prefetch = 2 : i64, scratch_operands = 1 : i64, tpu.core_type = #tpu.core_type<tc>, window_params = [{}, {}]} {
    %c0 = arith.constant 0 : index
    %0 = memref.load %arg2[%c0] : memref<1xi32, #tpu.memory_space<smem>>
    %c64_i32 = arith.constant 64 : i32
    %1 = arith.muli %arg0, %c64_i32 : i32
    %c0_i32 = arith.constant 0 : i32
    %2 = arith.addi %1, %c0_i32 : i32
    %3 = arith.index_cast %2 : i32 to index
    %4 = memref.load %arg1[%3] : memref<64xi32, #tpu.memory_space<smem>>
    %c2_i32 = arith.constant 2 : i32
    %5 = arith.addi %4, %c2_i32 : i32
    %c4_i32 = arith.constant 4 : i32
    %6 = arith.muli %2, %c4_i32 : i32
    %c64_i32_0 = arith.constant 64 : i32
    %7 = arith.muli %arg0, %c64_i32_0 : i32
    %c1_i32 = arith.constant 1 : i32
    %8 = arith.addi %7, %c1_i32 : i32
    %9 = arith.index_cast %8 : i32 to index
    %10 = memref.load %arg1[%9] : memref<64xi32, #tpu.memory_space<smem>>
    %c2_i32_1 = arith.constant 2 : i32
    %11 = arith.addi %10, %c2_i32_1 : i32
    %c4_i32_2 = arith.constant 4 : i32
    %12 = arith.muli %8, %c4_i32_2 : i32
    %c64_i32_3 = arith.constant 64 : i32
    %13 = arith.muli %arg0, %c64_i32_3 : i32
    %c2_i32_4 = arith.constant 2 : i32
    %14 = arith.addi %13, %c2_i32_4 : i32
    %15 = arith.index_cast %14 : i32 to index
    %16 = memref.load %arg1[%15] : memref<64xi32, #tpu.memory_space<smem>>
    %c2_i32_5 = arith.constant 2 : i32
    %17 = arith.addi %16, %c2_i32_5 : i32
    %c4_i32_6 = arith.constant 4 : i32
    %18 = arith.muli %14, %c4_i32_6 : i32
    %c64_i32_7 = arith.constant 64 : i32
    %19 = arith.muli %arg0, %c64_i32_7 : i32
    %c3_i32 = arith.constant 3 : i32
    %20 = arith.addi %19, %c3_i32 : i32
    %21 = arith.index_cast %20 : i32 to index
    %22 = memref.load %arg1[%21] : memref<64xi32, #tpu.memory_space<smem>>
    %c2_i32_8 = arith.constant 2 : i32
    %23 = arith.addi %22, %c2_i32_8 : i32
    %c4_i32_9 = arith.constant 4 : i32
    %24 = arith.muli %20, %c4_i32_9 : i32
    %c64_i32_10 = arith.constant 64 : i32
    %25 = arith.muli %arg0, %c64_i32_10 : i32
    %c4_i32_11 = arith.constant 4 : i32
    %26 = arith.addi %25, %c4_i32_11 : i32
    %27 = arith.index_cast %26 : i32 to index
    %28 = memref.load %arg1[%27] : memref<64xi32, #tpu.memory_space<smem>>
    %c2_i32_12 = arith.constant 2 : i32
    %29 = arith.addi %28, %c2_i32_12 : i32
    %c4_i32_13 = arith.constant 4 : i32
    %30 = arith.muli %26, %c4_i32_13 : i32
    %c64_i32_14 = arith.constant 64 : i32
    %31 = arith.muli %arg0, %c64_i32_14 : i32
    %c5_i32 = arith.constant 5 : i32
    %32 = arith.addi %31, %c5_i32 : i32
    %33 = arith.index_cast %32 : i32 to index
    %34 = memref.load %arg1[%33] : memref<64xi32, #tpu.memory_space<smem>>
    %c2_i32_15 = arith.constant 2 : i32
    %35 = arith.addi %34, %c2_i32_15 : i32
    %c4_i32_16 = arith.constant 4 : i32
    %36 = arith.muli %32, %c4_i32_16 : i32
    %c64_i32_17 = arith.constant 64 : i32
    %37 = arith.muli %arg0, %c64_i32_17 : i32
    %c6_i32 = arith.constant 6 : i32
    %38 = arith.addi %37, %c6_i32 : i32
    %39 = arith.index_cast %38 : i32 to index
    %40 = memref.load %arg1[%39] : memref<64xi32, #tpu.memory_space<smem>>
    %c2_i32_18 = arith.constant 2 : i32
    %41 = arith.addi %40, %c2_i32_18 : i32
    %c4_i32_19 = arith.constant 4 : i32
    %42 = arith.muli %38, %c4_i32_19 : i32
    %c64_i32_20 = arith.constant 64 : i32
    %43 = arith.muli %arg0, %c64_i32_20 : i32
    %c7_i32 = arith.constant 7 : i32
    %44 = arith.addi %43, %c7_i32 : i32
    %45 = arith.index_cast %44 : i32 to index
    %46 = memref.load %arg1[%45] : memref<64xi32, #tpu.memory_space<smem>>
    %c2_i32_21 = arith.constant 2 : i32
    %47 = arith.addi %46, %c2_i32_21 : i32
    %c4_i32_22 = arith.constant 4 : i32
    %48 = arith.muli %44, %c4_i32_22 : i32
    %c64_i32_23 = arith.constant 64 : i32
    %49 = arith.muli %arg0, %c64_i32_23 : i32
    %c8_i32 = arith.constant 8 : i32
    %50 = arith.addi %49, %c8_i32 : i32
    %51 = arith.index_cast %50 : i32 to index
    %52 = memref.load %arg1[%51] : memref<64xi32, #tpu.memory_space<smem>>
    %c2_i32_24 = arith.constant 2 : i32
    %53 = arith.addi %52, %c2_i32_24 : i32
    %c4_i32_25 = arith.constant 4 : i32
    %54 = arith.muli %50, %c4_i32_25 : i32
    %c64_i32_26 = arith.constant 64 : i32
    %55 = arith.muli %arg0, %c64_i32_26 : i32
    %c9_i32 = arith.constant 9 : i32
    %56 = arith.addi %55, %c9_i32 : i32
    %57 = arith.index_cast %56 : i32 to index
    %58 = memref.load %arg1[%57] : memref<64xi32, #tpu.memory_space<smem>>
    %c2_i32_27 = arith.constant 2 : i32
    %59 = arith.addi %58, %c2_i32_27 : i32
    %c4_i32_28 = arith.constant 4 : i32
    %60 = arith.muli %56, %c4_i32_28 : i32
    %c64_i32_29 = arith.constant 64 : i32
    %61 = arith.muli %arg0, %c64_i32_29 : i32
    %c10_i32 = arith.constant 10 : i32
    %62 = arith.addi %61, %c10_i32 : i32
    %63 = arith.index_cast %62 : i32 to index
    %64 = memref.load %arg1[%63] : memref<64xi32, #tpu.memory_space<smem>>
    %c2_i32_30 = arith.constant 2 : i32
    %65 = arith.addi %64, %c2_i32_30 : i32
    %c4_i32_31 = arith.constant 4 : i32
    %66 = arith.muli %62, %c4_i32_31 : i32
    %c64_i32_32 = arith.constant 64 : i32
    %67 = arith.muli %arg0, %c64_i32_32 : i32
    %c11_i32 = arith.constant 11 : i32
    %68 = arith.addi %67, %c11_i32 : i32
    %69 = arith.index_cast %68 : i32 to index
    %70 = memref.load %arg1[%69] : memref<64xi32, #tpu.memory_space<smem>>
    %c2_i32_33 = arith.constant 2 : i32
    %71 = arith.addi %70, %c2_i32_33 : i32
    %c4_i32_34 = arith.constant 4 : i32
    %72 = arith.muli %68, %c4_i32_34 : i32
    %c64_i32_35 = arith.constant 64 : i32
    %73 = arith.muli %arg0, %c64_i32_35 : i32
    %c12_i32 = arith.constant 12 : i32
    %74 = arith.addi %73, %c12_i32 : i32
    %75 = arith.index_cast %74 : i32 to index
    %76 = memref.load %arg1[%75] : memref<64xi32, #tpu.memory_space<smem>>
    %c2_i32_36 = arith.constant 2 : i32
    %77 = arith.addi %76, %c2_i32_36 : i32
    %c4_i32_37 = arith.constant 4 : i32
    %78 = arith.muli %74, %c4_i32_37 : i32
    %c64_i32_38 = arith.constant 64 : i32
    %79 = arith.muli %arg0, %c64_i32_38 : i32
    %c13_i32 = arith.constant 13 : i32
    %80 = arith.addi %79, %c13_i32 : i32
    %81 = arith.index_cast %80 : i32 to index
    %82 = memref.load %arg1[%81] : memref<64xi32, #tpu.memory_space<smem>>
    %c2_i32_39 = arith.constant 2 : i32
    %83 = arith.addi %82, %c2_i32_39 : i32
    %c4_i32_40 = arith.constant 4 : i32
    %84 = arith.muli %80, %c4_i32_40 : i32
    %c64_i32_41 = arith.constant 64 : i32
    %85 = arith.muli %arg0, %c64_i32_41 : i32
    %c14_i32 = arith.constant 14 : i32
    %86 = arith.addi %85, %c14_i32 : i32
    %87 = arith.index_cast %86 : i32 to index
    %88 = memref.load %arg1[%87] : memref<64xi32, #tpu.memory_space<smem>>
    %c2_i32_42 = arith.constant 2 : i32
    %89 = arith.addi %88, %c2_i32_42 : i32
    %c4_i32_43 = arith.constant 4 : i32
    %90 = arith.muli %86, %c4_i32_43 : i32
    %c64_i32_44 = arith.constant 64 : i32
    %91 = arith.muli %arg0, %c64_i32_44 : i32
    %c15_i32 = arith.constant 15 : i32
    %92 = arith.addi %91, %c15_i32 : i32
    %93 = arith.index_cast %92 : i32 to index
    %94 = memref.load %arg1[%93] : memref<64xi32, #tpu.memory_space<smem>>
    %c2_i32_45 = arith.constant 2 : i32
    %95 = arith.addi %94, %c2_i32_45 : i32
    %c4_i32_46 = arith.constant 4 : i32
    %96 = arith.muli %92, %c4_i32_46 : i32
    %c64_i32_47 = arith.constant 64 : i32
    %97 = arith.muli %arg0, %c64_i32_47 : i32
    %c16_i32 = arith.constant 16 : i32
    %98 = arith.addi %97, %c16_i32 : i32
    %99 = arith.index_cast %98 : i32 to index
    %100 = memref.load %arg1[%99] : memref<64xi32, #tpu.memory_space<smem>>
    %c2_i32_48 = arith.constant 2 : i32
    %101 = arith.addi %100, %c2_i32_48 : i32
    %c4_i32_49 = arith.constant 4 : i32
    %102 = arith.muli %98, %c4_i32_49 : i32
    %c64_i32_50 = arith.constant 64 : i32
    %103 = arith.muli %arg0, %c64_i32_50 : i32
    %c17_i32 = arith.constant 17 : i32
    %104 = arith.addi %103, %c17_i32 : i32
    %105 = arith.index_cast %104 : i32 to index
    %106 = memref.load %arg1[%105] : memref<64xi32, #tpu.memory_space<smem>>
    %c2_i32_51 = arith.constant 2 : i32
    %107 = arith.addi %106, %c2_i32_51 : i32
    %c4_i32_52 = arith.constant 4 : i32
    %108 = arith.muli %104, %c4_i32_52 : i32
    %c64_i32_53 = arith.constant 64 : i32
    %109 = arith.muli %arg0, %c64_i32_53 : i32
    %c18_i32 = arith.constant 18 : i32
    %110 = arith.addi %109, %c18_i32 : i32
    %111 = arith.index_cast %110 : i32 to index
    %112 = memref.load %arg1[%111] : memref<64xi32, #tpu.memory_space<smem>>
    %c2_i32_54 = arith.constant 2 : i32
    %113 = arith.addi %112, %c2_i32_54 : i32
    %c4_i32_55 = arith.constant 4 : i32
    %114 = arith.muli %110, %c4_i32_55 : i32
    %c64_i32_56 = arith.constant 64 : i32
    %115 = arith.muli %arg0, %c64_i32_56 : i32
    %c19_i32 = arith.constant 19 : i32
    %116 = arith.addi %115, %c19_i32 : i32
    %117 = arith.index_cast %116 : i32 to index
    %118 = memref.load %arg1[%117] : memref<64xi32, #tpu.memory_space<smem>>
    %c2_i32_57 = arith.constant 2 : i32
    %119 = arith.addi %118, %c2_i32_57 : i32
    %c4_i32_58 = arith.constant 4 : i32
    %120 = arith.muli %116, %c4_i32_58 : i32
    %c64_i32_59 = arith.constant 64 : i32
    %121 = arith.muli %arg0, %c64_i32_59 : i32
    %c20_i32 = arith.constant 20 : i32
    %122 = arith.addi %121, %c20_i32 : i32
    %123 = arith.index_cast %122 : i32 to index
    %124 = memref.load %arg1[%123] : memref<64xi32, #tpu.memory_space<smem>>
    %c2_i32_60 = arith.constant 2 : i32
    %125 = arith.addi %124, %c2_i32_60 : i32
    %c4_i32_61 = arith.constant 4 : i32
    %126 = arith.muli %122, %c4_i32_61 : i32
    %c64_i32_62 = arith.constant 64 : i32
    %127 = arith.muli %arg0, %c64_i32_62 : i32
    %c21_i32 = arith.constant 21 : i32
    %128 = arith.addi %127, %c21_i32 : i32
    %129 = arith.index_cast %128 : i32 to index
    %130 = memref.load %arg1[%129] : memref<64xi32, #tpu.memory_space<smem>>
    %c2_i32_63 = arith.constant 2 : i32
    %131 = arith.addi %130, %c2_i32_63 : i32
    %c4_i32_64 = arith.constant 4 : i32
    %132 = arith.muli %128, %c4_i32_64 : i32
    %c64_i32_65 = arith.constant 64 : i32
    %133 = arith.muli %arg0, %c64_i32_65 : i32
    %c22_i32 = arith.constant 22 : i32
    %134 = arith.addi %133, %c22_i32 : i32
    %135 = arith.index_cast %134 : i32 to index
    %136 = memref.load %arg1[%135] : memref<64xi32, #tpu.memory_space<smem>>
    %c2_i32_66 = arith.constant 2 : i32
    %137 = arith.addi %136, %c2_i32_66 : i32
    %c4_i32_67 = arith.constant 4 : i32
    %138 = arith.muli %134, %c4_i32_67 : i32
    %c64_i32_68 = arith.constant 64 : i32
    %139 = arith.muli %arg0, %c64_i32_68 : i32
    %c23_i32 = arith.constant 23 : i32
    %140 = arith.addi %139, %c23_i32 : i32
    %141 = arith.index_cast %140 : i32 to index
    %142 = memref.load %arg1[%141] : memref<64xi32, #tpu.memory_space<smem>>
    %c2_i32_69 = arith.constant 2 : i32
    %143 = arith.addi %142, %c2_i32_69 : i32
    %c4_i32_70 = arith.constant 4 : i32
    %144 = arith.muli %140, %c4_i32_70 : i32
    %c64_i32_71 = arith.constant 64 : i32
    %145 = arith.muli %arg0, %c64_i32_71 : i32
    %c24_i32 = arith.constant 24 : i32
    %146 = arith.addi %145, %c24_i32 : i32
    %147 = arith.index_cast %146 : i32 to index
    %148 = memref.load %arg1[%147] : memref<64xi32, #tpu.memory_space<smem>>
    %c2_i32_72 = arith.constant 2 : i32
    %149 = arith.addi %148, %c2_i32_72 : i32
    %c4_i32_73 = arith.constant 4 : i32
    %150 = arith.muli %146, %c4_i32_73 : i32
    %c64_i32_74 = arith.constant 64 : i32
    %151 = arith.muli %arg0, %c64_i32_74 : i32
    %c25_i32 = arith.constant 25 : i32
    %152 = arith.addi %151, %c25_i32 : i32
    %153 = arith.index_cast %152 : i32 to index
    %154 = memref.load %arg1[%153] : memref<64xi32, #tpu.memory_space<smem>>
    %c2_i32_75 = arith.constant 2 : i32
    %155 = arith.addi %154, %c2_i32_75 : i32
    %c4_i32_76 = arith.constant 4 : i32
    %156 = arith.muli %152, %c4_i32_76 : i32
    %c64_i32_77 = arith.constant 64 : i32
    %157 = arith.muli %arg0, %c64_i32_77 : i32
    %c26_i32 = arith.constant 26 : i32
    %158 = arith.addi %157, %c26_i32 : i32
    %159 = arith.index_cast %158 : i32 to index
    %160 = memref.load %arg1[%159] : memref<64xi32, #tpu.memory_space<smem>>
    %c2_i32_78 = arith.constant 2 : i32
    %161 = arith.addi %160, %c2_i32_78 : i32
    %c4_i32_79 = arith.constant 4 : i32
    %162 = arith.muli %158, %c4_i32_79 : i32
    %c64_i32_80 = arith.constant 64 : i32
    %163 = arith.muli %arg0, %c64_i32_80 : i32
    %c27_i32 = arith.constant 27 : i32
    %164 = arith.addi %163, %c27_i32 : i32
    %165 = arith.index_cast %164 : i32 to index
    %166 = memref.load %arg1[%165] : memref<64xi32, #tpu.memory_space<smem>>
    %c2_i32_81 = arith.constant 2 : i32
    %167 = arith.addi %166, %c2_i32_81 : i32
    %c4_i32_82 = arith.constant 4 : i32
    %168 = arith.muli %164, %c4_i32_82 : i32
    %c64_i32_83 = arith.constant 64 : i32
    %169 = arith.muli %arg0, %c64_i32_83 : i32
    %c28_i32 = arith.constant 28 : i32
    %170 = arith.addi %169, %c28_i32 : i32
    %171 = arith.index_cast %170 : i32 to index
    %172 = memref.load %arg1[%171] : memref<64xi32, #tpu.memory_space<smem>>
    %c2_i32_84 = arith.constant 2 : i32
    %173 = arith.addi %172, %c2_i32_84 : i32
    %c4_i32_85 = arith.constant 4 : i32
    %174 = arith.muli %170, %c4_i32_85 : i32
    %c64_i32_86 = arith.constant 64 : i32
    %175 = arith.muli %arg0, %c64_i32_86 : i32
    %c29_i32 = arith.constant 29 : i32
    %176 = arith.addi %175, %c29_i32 : i32
    %177 = arith.index_cast %176 : i32 to index
    %178 = memref.load %arg1[%177] : memref<64xi32, #tpu.memory_space<smem>>
    %c2_i32_87 = arith.constant 2 : i32
    %179 = arith.addi %178, %c2_i32_87 : i32
    %c4_i32_88 = arith.constant 4 : i32
    %180 = arith.muli %176, %c4_i32_88 : i32
    %c64_i32_89 = arith.constant 64 : i32
    %181 = arith.muli %arg0, %c64_i32_89 : i32
    %c30_i32 = arith.constant 30 : i32
    %182 = arith.addi %181, %c30_i32 : i32
    %183 = arith.index_cast %182 : i32 to index
    %184 = memref.load %arg1[%183] : memref<64xi32, #tpu.memory_space<smem>>
    %c2_i32_90 = arith.constant 2 : i32
    %185 = arith.addi %184, %c2_i32_90 : i32
    %c4_i32_91 = arith.constant 4 : i32
    %186 = arith.muli %182, %c4_i32_91 : i32
    %c64_i32_92 = arith.constant 64 : i32
    %187 = arith.muli %arg0, %c64_i32_92 : i32
    %c31_i32 = arith.constant 31 : i32
    %188 = arith.addi %187, %c31_i32 : i32
    %189 = arith.index_cast %188 : i32 to index
    %190 = memref.load %arg1[%189] : memref<64xi32, #tpu.memory_space<smem>>
    %c2_i32_93 = arith.constant 2 : i32
    %191 = arith.addi %190, %c2_i32_93 : i32
    %c4_i32_94 = arith.constant 4 : i32
    %192 = arith.muli %188, %c4_i32_94 : i32
    %c64_i32_95 = arith.constant 64 : i32
    %193 = arith.muli %arg0, %c64_i32_95 : i32
    %c32_i32 = arith.constant 32 : i32
    %194 = arith.addi %193, %c32_i32 : i32
    %195 = arith.index_cast %194 : i32 to index
    %196 = memref.load %arg1[%195] : memref<64xi32, #tpu.memory_space<smem>>
    %c2_i32_96 = arith.constant 2 : i32
    %197 = arith.addi %196, %c2_i32_96 : i32
    %c4_i32_97 = arith.constant 4 : i32
    %198 = arith.muli %194, %c4_i32_97 : i32
    %c64_i32_98 = arith.constant 64 : i32
    %199 = arith.muli %arg0, %c64_i32_98 : i32
    %c33_i32 = arith.constant 33 : i32
    %200 = arith.addi %199, %c33_i32 : i32
    %201 = arith.index_cast %200 : i32 to index
    %202 = memref.load %arg1[%201] : memref<64xi32, #tpu.memory_space<smem>>
    %c2_i32_99 = arith.constant 2 : i32
    %203 = arith.addi %202, %c2_i32_99 : i32
    %c4_i32_100 = arith.constant 4 : i32
    %204 = arith.muli %200, %c4_i32_100 : i32
    %c64_i32_101 = arith.constant 64 : i32
    %205 = arith.muli %arg0, %c64_i32_101 : i32
    %c34_i32 = arith.constant 34 : i32
    %206 = arith.addi %205, %c34_i32 : i32
    %207 = arith.index_cast %206 : i32 to index
    %208 = memref.load %arg1[%207] : memref<64xi32, #tpu.memory_space<smem>>
    %c2_i32_102 = arith.constant 2 : i32
    %209 = arith.addi %208, %c2_i32_102 : i32
    %c4_i32_103 = arith.constant 4 : i32
    %210 = arith.muli %206, %c4_i32_103 : i32
    %c64_i32_104 = arith.constant 64 : i32
    %211 = arith.muli %arg0, %c64_i32_104 : i32
    %c35_i32 = arith.constant 35 : i32
    %212 = arith.addi %211, %c35_i32 : i32
    %213 = arith.index_cast %212 : i32 to index
    %214 = memref.load %arg1[%213] : memref<64xi32, #tpu.memory_space<smem>>
    %c2_i32_105 = arith.constant 2 : i32
    %215 = arith.addi %214, %c2_i32_105 : i32
    %c4_i32_106 = arith.constant 4 : i32
    %216 = arith.muli %212, %c4_i32_106 : i32
    %c64_i32_107 = arith.constant 64 : i32
    %217 = arith.muli %arg0, %c64_i32_107 : i32
    %c36_i32 = arith.constant 36 : i32
    %218 = arith.addi %217, %c36_i32 : i32
    %219 = arith.index_cast %218 : i32 to index
    %220 = memref.load %arg1[%219] : memref<64xi32, #tpu.memory_space<smem>>
    %c2_i32_108 = arith.constant 2 : i32
    %221 = arith.addi %220, %c2_i32_108 : i32
    %c4_i32_109 = arith.constant 4 : i32
    %222 = arith.muli %218, %c4_i32_109 : i32
    %c64_i32_110 = arith.constant 64 : i32
    %223 = arith.muli %arg0, %c64_i32_110 : i32
    %c37_i32 = arith.constant 37 : i32
    %224 = arith.addi %223, %c37_i32 : i32
    %225 = arith.index_cast %224 : i32 to index
    %226 = memref.load %arg1[%225] : memref<64xi32, #tpu.memory_space<smem>>
    %c2_i32_111 = arith.constant 2 : i32
    %227 = arith.addi %226, %c2_i32_111 : i32
    %c4_i32_112 = arith.constant 4 : i32
    %228 = arith.muli %224, %c4_i32_112 : i32
    %c64_i32_113 = arith.constant 64 : i32
    %229 = arith.muli %arg0, %c64_i32_113 : i32
    %c38_i32 = arith.constant 38 : i32
    %230 = arith.addi %229, %c38_i32 : i32
    %231 = arith.index_cast %230 : i32 to index
    %232 = memref.load %arg1[%231] : memref<64xi32, #tpu.memory_space<smem>>
    %c2_i32_114 = arith.constant 2 : i32
    %233 = arith.addi %232, %c2_i32_114 : i32
    %c4_i32_115 = arith.constant 4 : i32
    %234 = arith.muli %230, %c4_i32_115 : i32
    %c64_i32_116 = arith.constant 64 : i32
    %235 = arith.muli %arg0, %c64_i32_116 : i32
    %c39_i32 = arith.constant 39 : i32
    %236 = arith.addi %235, %c39_i32 : i32
    %237 = arith.index_cast %236 : i32 to index
    %238 = memref.load %arg1[%237] : memref<64xi32, #tpu.memory_space<smem>>
    %c2_i32_117 = arith.constant 2 : i32
    %239 = arith.addi %238, %c2_i32_117 : i32
    %c4_i32_118 = arith.constant 4 : i32
    %240 = arith.muli %236, %c4_i32_118 : i32
    %c64_i32_119 = arith.constant 64 : i32
    %241 = arith.muli %arg0, %c64_i32_119 : i32
    %c40_i32 = arith.constant 40 : i32
    %242 = arith.addi %241, %c40_i32 : i32
    %243 = arith.index_cast %242 : i32 to index
    %244 = memref.load %arg1[%243] : memref<64xi32, #tpu.memory_space<smem>>
    %c2_i32_120 = arith.constant 2 : i32
    %245 = arith.addi %244, %c2_i32_120 : i32
    %c4_i32_121 = arith.constant 4 : i32
    %246 = arith.muli %242, %c4_i32_121 : i32
    %c64_i32_122 = arith.constant 64 : i32
    %247 = arith.muli %arg0, %c64_i32_122 : i32
    %c41_i32 = arith.constant 41 : i32
    %248 = arith.addi %247, %c41_i32 : i32
    %249 = arith.index_cast %248 : i32 to index
    %250 = memref.load %arg1[%249] : memref<64xi32, #tpu.memory_space<smem>>
    %c2_i32_123 = arith.constant 2 : i32
    %251 = arith.addi %250, %c2_i32_123 : i32
    %c4_i32_124 = arith.constant 4 : i32
    %252 = arith.muli %248, %c4_i32_124 : i32
    %c64_i32_125 = arith.constant 64 : i32
    %253 = arith.muli %arg0, %c64_i32_125 : i32
    %c42_i32 = arith.constant 42 : i32
    %254 = arith.addi %253, %c42_i32 : i32
    %255 = arith.index_cast %254 : i32 to index
    %256 = memref.load %arg1[%255] : memref<64xi32, #tpu.memory_space<smem>>
    %c2_i32_126 = arith.constant 2 : i32
    %257 = arith.addi %256, %c2_i32_126 : i32
    %c4_i32_127 = arith.constant 4 : i32
    %258 = arith.muli %254, %c4_i32_127 : i32
    %c64_i32_128 = arith.constant 64 : i32
    %259 = arith.muli %arg0, %c64_i32_128 : i32
    %c43_i32 = arith.constant 43 : i32
    %260 = arith.addi %259, %c43_i32 : i32
    %261 = arith.index_cast %260 : i32 to index
    %262 = memref.load %arg1[%261] : memref<64xi32, #tpu.memory_space<smem>>
    %c2_i32_129 = arith.constant 2 : i32
    %263 = arith.addi %262, %c2_i32_129 : i32
    %c4_i32_130 = arith.constant 4 : i32
    %264 = arith.muli %260, %c4_i32_130 : i32
    %c64_i32_131 = arith.constant 64 : i32
    %265 = arith.muli %arg0, %c64_i32_131 : i32
    %c44_i32 = arith.constant 44 : i32
    %266 = arith.addi %265, %c44_i32 : i32
    %267 = arith.index_cast %266 : i32 to index
    %268 = memref.load %arg1[%267] : memref<64xi32, #tpu.memory_space<smem>>
    %c2_i32_132 = arith.constant 2 : i32
    %269 = arith.addi %268, %c2_i32_132 : i32
    %c4_i32_133 = arith.constant 4 : i32
    %270 = arith.muli %266, %c4_i32_133 : i32
    %c64_i32_134 = arith.constant 64 : i32
    %271 = arith.muli %arg0, %c64_i32_134 : i32
    %c45_i32 = arith.constant 45 : i32
    %272 = arith.addi %271, %c45_i32 : i32
    %273 = arith.index_cast %272 : i32 to index
    %274 = memref.load %arg1[%273] : memref<64xi32, #tpu.memory_space<smem>>
    %c2_i32_135 = arith.constant 2 : i32
    %275 = arith.addi %274, %c2_i32_135 : i32
    %c4_i32_136 = arith.constant 4 : i32
    %276 = arith.muli %272, %c4_i32_136 : i32
    %c64_i32_137 = arith.constant 64 : i32
    %277 = arith.muli %arg0, %c64_i32_137 : i32
    %c46_i32 = arith.constant 46 : i32
    %278 = arith.addi %277, %c46_i32 : i32
    %279 = arith.index_cast %278 : i32 to index
    %280 = memref.load %arg1[%279] : memref<64xi32, #tpu.memory_space<smem>>
    %c2_i32_138 = arith.constant 2 : i32
    %281 = arith.addi %280, %c2_i32_138 : i32
    %c4_i32_139 = arith.constant 4 : i32
    %282 = arith.muli %278, %c4_i32_139 : i32
    %c64_i32_140 = arith.constant 64 : i32
    %283 = arith.muli %arg0, %c64_i32_140 : i32
    %c47_i32 = arith.constant 47 : i32
    %284 = arith.addi %283, %c47_i32 : i32
    %285 = arith.index_cast %284 : i32 to index
    %286 = memref.load %arg1[%285] : memref<64xi32, #tpu.memory_space<smem>>
    %c2_i32_141 = arith.constant 2 : i32
    %287 = arith.addi %286, %c2_i32_141 : i32
    %c4_i32_142 = arith.constant 4 : i32
    %288 = arith.muli %284, %c4_i32_142 : i32
    %c64_i32_143 = arith.constant 64 : i32
    %289 = arith.muli %arg0, %c64_i32_143 : i32
    %c48_i32 = arith.constant 48 : i32
    %290 = arith.addi %289, %c48_i32 : i32
    %291 = arith.index_cast %290 : i32 to index
    %292 = memref.load %arg1[%291] : memref<64xi32, #tpu.memory_space<smem>>
    %c2_i32_144 = arith.constant 2 : i32
    %293 = arith.addi %292, %c2_i32_144 : i32
    %c4_i32_145 = arith.constant 4 : i32
    %294 = arith.muli %290, %c4_i32_145 : i32
    %c64_i32_146 = arith.constant 64 : i32
    %295 = arith.muli %arg0, %c64_i32_146 : i32
    %c49_i32 = arith.constant 49 : i32
    %296 = arith.addi %295, %c49_i32 : i32
    %297 = arith.index_cast %296 : i32 to index
    %298 = memref.load %arg1[%297] : memref<64xi32, #tpu.memory_space<smem>>
    %c2_i32_147 = arith.constant 2 : i32
    %299 = arith.addi %298, %c2_i32_147 : i32
    %c4_i32_148 = arith.constant 4 : i32
    %300 = arith.muli %296, %c4_i32_148 : i32
    %c64_i32_149 = arith.constant 64 : i32
    %301 = arith.muli %arg0, %c64_i32_149 : i32
    %c50_i32 = arith.constant 50 : i32
    %302 = arith.addi %301, %c50_i32 : i32
    %303 = arith.index_cast %302 : i32 to index
    %304 = memref.load %arg1[%303] : memref<64xi32, #tpu.memory_space<smem>>
    %c2_i32_150 = arith.constant 2 : i32
    %305 = arith.addi %304, %c2_i32_150 : i32
    %c4_i32_151 = arith.constant 4 : i32
    %306 = arith.muli %302, %c4_i32_151 : i32
    %c64_i32_152 = arith.constant 64 : i32
    %307 = arith.muli %arg0, %c64_i32_152 : i32
    %c51_i32 = arith.constant 51 : i32
    %308 = arith.addi %307, %c51_i32 : i32
    %309 = arith.index_cast %308 : i32 to index
    %310 = memref.load %arg1[%309] : memref<64xi32, #tpu.memory_space<smem>>
    %c2_i32_153 = arith.constant 2 : i32
    %311 = arith.addi %310, %c2_i32_153 : i32
    %c4_i32_154 = arith.constant 4 : i32
    %312 = arith.muli %308, %c4_i32_154 : i32
    %c64_i32_155 = arith.constant 64 : i32
    %313 = arith.muli %arg0, %c64_i32_155 : i32
    %c52_i32 = arith.constant 52 : i32
    %314 = arith.addi %313, %c52_i32 : i32
    %315 = arith.index_cast %314 : i32 to index
    %316 = memref.load %arg1[%315] : memref<64xi32, #tpu.memory_space<smem>>
    %c2_i32_156 = arith.constant 2 : i32
    %317 = arith.addi %316, %c2_i32_156 : i32
    %c4_i32_157 = arith.constant 4 : i32
    %318 = arith.muli %314, %c4_i32_157 : i32
    %c64_i32_158 = arith.constant 64 : i32
    %319 = arith.muli %arg0, %c64_i32_158 : i32
    %c53_i32 = arith.constant 53 : i32
    %320 = arith.addi %319, %c53_i32 : i32
    %321 = arith.index_cast %320 : i32 to index
    %322 = memref.load %arg1[%321] : memref<64xi32, #tpu.memory_space<smem>>
    %c2_i32_159 = arith.constant 2 : i32
    %323 = arith.addi %322, %c2_i32_159 : i32
    %c4_i32_160 = arith.constant 4 : i32
    %324 = arith.muli %320, %c4_i32_160 : i32
    %c64_i32_161 = arith.constant 64 : i32
    %325 = arith.muli %arg0, %c64_i32_161 : i32
    %c54_i32 = arith.constant 54 : i32
    %326 = arith.addi %325, %c54_i32 : i32
    %327 = arith.index_cast %326 : i32 to index
    %328 = memref.load %arg1[%327] : memref<64xi32, #tpu.memory_space<smem>>
    %c2_i32_162 = arith.constant 2 : i32
    %329 = arith.addi %328, %c2_i32_162 : i32
    %c4_i32_163 = arith.constant 4 : i32
    %330 = arith.muli %326, %c4_i32_163 : i32
    %c64_i32_164 = arith.constant 64 : i32
    %331 = arith.muli %arg0, %c64_i32_164 : i32
    %c55_i32 = arith.constant 55 : i32
    %332 = arith.addi %331, %c55_i32 : i32
    %333 = arith.index_cast %332 : i32 to index
    %334 = memref.load %arg1[%333] : memref<64xi32, #tpu.memory_space<smem>>
    %c2_i32_165 = arith.constant 2 : i32
    %335 = arith.addi %334, %c2_i32_165 : i32
    %c4_i32_166 = arith.constant 4 : i32
    %336 = arith.muli %332, %c4_i32_166 : i32
    %c64_i32_167 = arith.constant 64 : i32
    %337 = arith.muli %arg0, %c64_i32_167 : i32
    %c56_i32 = arith.constant 56 : i32
    %338 = arith.addi %337, %c56_i32 : i32
    %339 = arith.index_cast %338 : i32 to index
    %340 = memref.load %arg1[%339] : memref<64xi32, #tpu.memory_space<smem>>
    %c2_i32_168 = arith.constant 2 : i32
    %341 = arith.addi %340, %c2_i32_168 : i32
    %c4_i32_169 = arith.constant 4 : i32
    %342 = arith.muli %338, %c4_i32_169 : i32
    %c64_i32_170 = arith.constant 64 : i32
    %343 = arith.muli %arg0, %c64_i32_170 : i32
    %c57_i32 = arith.constant 57 : i32
    %344 = arith.addi %343, %c57_i32 : i32
    %345 = arith.index_cast %344 : i32 to index
    %346 = memref.load %arg1[%345] : memref<64xi32, #tpu.memory_space<smem>>
    %c2_i32_171 = arith.constant 2 : i32
    %347 = arith.addi %346, %c2_i32_171 : i32
    %c4_i32_172 = arith.constant 4 : i32
    %348 = arith.muli %344, %c4_i32_172 : i32
    %c64_i32_173 = arith.constant 64 : i32
    %349 = arith.muli %arg0, %c64_i32_173 : i32
    %c58_i32 = arith.constant 58 : i32
    %350 = arith.addi %349, %c58_i32 : i32
    %351 = arith.index_cast %350 : i32 to index
    %352 = memref.load %arg1[%351] : memref<64xi32, #tpu.memory_space<smem>>
    %c2_i32_174 = arith.constant 2 : i32
    %353 = arith.addi %352, %c2_i32_174 : i32
    %c4_i32_175 = arith.constant 4 : i32
    %354 = arith.muli %350, %c4_i32_175 : i32
    %c64_i32_176 = arith.constant 64 : i32
    %355 = arith.muli %arg0, %c64_i32_176 : i32
    %c59_i32 = arith.constant 59 : i32
    %356 = arith.addi %355, %c59_i32 : i32
    %357 = arith.index_cast %356 : i32 to index
    %358 = memref.load %arg1[%357] : memref<64xi32, #tpu.memory_space<smem>>
    %c2_i32_177 = arith.constant 2 : i32
    %359 = arith.addi %358, %c2_i32_177 : i32
    %c4_i32_178 = arith.constant 4 : i32
    %360 = arith.muli %356, %c4_i32_178 : i32
    %c64_i32_179 = arith.constant 64 : i32
    %361 = arith.muli %arg0, %c64_i32_179 : i32
    %c60_i32 = arith.constant 60 : i32
    %362 = arith.addi %361, %c60_i32 : i32
    %363 = arith.index_cast %362 : i32 to index
    %364 = memref.load %arg1[%363] : memref<64xi32, #tpu.memory_space<smem>>
    %c2_i32_180 = arith.constant 2 : i32
    %365 = arith.addi %364, %c2_i32_180 : i32
    %c4_i32_181 = arith.constant 4 : i32
    %366 = arith.muli %362, %c4_i32_181 : i32
    %c64_i32_182 = arith.constant 64 : i32
    %367 = arith.muli %arg0, %c64_i32_182 : i32
    %c61_i32 = arith.constant 61 : i32
    %368 = arith.addi %367, %c61_i32 : i32
    %369 = arith.index_cast %368 : i32 to index
    %370 = memref.load %arg1[%369] : memref<64xi32, #tpu.memory_space<smem>>
    %c2_i32_183 = arith.constant 2 : i32
    %371 = arith.addi %370, %c2_i32_183 : i32
    %c4_i32_184 = arith.constant 4 : i32
    %372 = arith.muli %368, %c4_i32_184 : i32
    %c64_i32_185 = arith.constant 64 : i32
    %373 = arith.muli %arg0, %c64_i32_185 : i32
    %c62_i32 = arith.constant 62 : i32
    %374 = arith.addi %373, %c62_i32 : i32
    %375 = arith.index_cast %374 : i32 to index
    %376 = memref.load %arg1[%375] : memref<64xi32, #tpu.memory_space<smem>>
    %c2_i32_186 = arith.constant 2 : i32
    %377 = arith.addi %376, %c2_i32_186 : i32
    %c4_i32_187 = arith.constant 4 : i32
    %378 = arith.muli %374, %c4_i32_187 : i32
    %c64_i32_188 = arith.constant 64 : i32
    %379 = arith.muli %arg0, %c64_i32_188 : i32
    %c63_i32 = arith.constant 63 : i32
    %380 = arith.addi %379, %c63_i32 : i32
    %381 = arith.index_cast %380 : i32 to index
    %382 = memref.load %arg1[%381] : memref<64xi32, #tpu.memory_space<smem>>
    %c2_i32_189 = arith.constant 2 : i32
    %383 = arith.addi %382, %c2_i32_189 : i32
    %c4_i32_190 = arith.constant 4 : i32
    %384 = arith.muli %380, %c4_i32_190 : i32
    %c64_i32_191 = arith.constant 64 : i32
    %385 = arith.muli %arg0, %c64_i32_191 : i32
    %c0_i32_192 = arith.constant 0 : i32
    %386 = arith.addi %385, %c0_i32_192 : i32
    %387 = arith.cmpi slt, %386, %0 : i32
    %388 = arith.extui %387 : i1 to i32
    %c0_i32_193 = arith.constant 0 : i32
    %c0_i32_194 = arith.constant 0 : i32
    %389 = arith.cmpi ne, %388, %c0_i32_194 : i32
    scf.if %389 {
      %c0_i32_703 = arith.constant 0 : i32
      %1025 = tpu.memref_slice %arg3[%5, %c0_i32_703] : memref<40x128xf32, #tpu.memory_space<any>> -> memref<4x128xf32, #tpu.memory_space<any>>
      %c0_i32_704 = arith.constant 0 : i32
      %1026 = tpu.memref_slice %arg4[%6, %c0_i32_704] : memref<256x128xf32, #tpu.memory_space<any>> -> memref<4x128xf32, #tpu.memory_space<any>>
      %1027 = tpu.memref_slice %arg5[%c0_i32_193] : memref<16x!tpu.dma_semaphore, #tpu.memory_space<semaphore_mem>> -> memref<1x!tpu.dma_semaphore, #tpu.memory_space<semaphore_mem>>
      %1028 = tpu.memref_squeeze %1027 : memref<1x!tpu.dma_semaphore, #tpu.memory_space<semaphore_mem>> -> memref<!tpu.dma_semaphore, #tpu.memory_space<semaphore_mem>>
      tpu.enqueue_dma source(%1025 : memref<4x128xf32, #tpu.memory_space<any>>) target(%1026 : memref<4x128xf32, #tpu.memory_space<any>>) target_semaphore(%1028 : memref<!tpu.dma_semaphore, #tpu.memory_space<semaphore_mem>>)
    } else {
    }
    %c64_i32_195 = arith.constant 64 : i32
    %390 = arith.muli %arg0, %c64_i32_195 : i32
    %c1_i32_196 = arith.constant 1 : i32
    %391 = arith.addi %390, %c1_i32_196 : i32
    %392 = arith.cmpi slt, %391, %0 : i32
    %393 = arith.extui %392 : i1 to i32
    %c1_i32_197 = arith.constant 1 : i32
    %c0_i32_198 = arith.constant 0 : i32
    %394 = arith.cmpi ne, %393, %c0_i32_198 : i32
    scf.if %394 {
      %c0_i32_703 = arith.constant 0 : i32
      %1025 = tpu.memref_slice %arg3[%11, %c0_i32_703] : memref<40x128xf32, #tpu.memory_space<any>> -> memref<4x128xf32, #tpu.memory_space<any>>
      %c0_i32_704 = arith.constant 0 : i32
      %1026 = tpu.memref_slice %arg4[%12, %c0_i32_704] : memref<256x128xf32, #tpu.memory_space<any>> -> memref<4x128xf32, #tpu.memory_space<any>>
      %1027 = tpu.memref_slice %arg5[%c1_i32_197] : memref<16x!tpu.dma_semaphore, #tpu.memory_space<semaphore_mem>> -> memref<1x!tpu.dma_semaphore, #tpu.memory_space<semaphore_mem>>
      %1028 = tpu.memref_squeeze %1027 : memref<1x!tpu.dma_semaphore, #tpu.memory_space<semaphore_mem>> -> memref<!tpu.dma_semaphore, #tpu.memory_space<semaphore_mem>>
      tpu.enqueue_dma source(%1025 : memref<4x128xf32, #tpu.memory_space<any>>) target(%1026 : memref<4x128xf32, #tpu.memory_space<any>>) target_semaphore(%1028 : memref<!tpu.dma_semaphore, #tpu.memory_space<semaphore_mem>>)
    } else {
    }
    %c64_i32_199 = arith.constant 64 : i32
    %395 = arith.muli %arg0, %c64_i32_199 : i32
    %c2_i32_200 = arith.constant 2 : i32
    %396 = arith.addi %395, %c2_i32_200 : i32
    %397 = arith.cmpi slt, %396, %0 : i32
    %398 = arith.extui %397 : i1 to i32
    %c2_i32_201 = arith.constant 2 : i32
    %c0_i32_202 = arith.constant 0 : i32
    %399 = arith.cmpi ne, %398, %c0_i32_202 : i32
    scf.if %399 {
      %c0_i32_703 = arith.constant 0 : i32
      %1025 = tpu.memref_slice %arg3[%17, %c0_i32_703] : memref<40x128xf32, #tpu.memory_space<any>> -> memref<4x128xf32, #tpu.memory_space<any>>
      %c0_i32_704 = arith.constant 0 : i32
      %1026 = tpu.memref_slice %arg4[%18, %c0_i32_704] : memref<256x128xf32, #tpu.memory_space<any>> -> memref<4x128xf32, #tpu.memory_space<any>>
      %1027 = tpu.memref_slice %arg5[%c2_i32_201] : memref<16x!tpu.dma_semaphore, #tpu.memory_space<semaphore_mem>> -> memref<1x!tpu.dma_semaphore, #tpu.memory_space<semaphore_mem>>
      %1028 = tpu.memref_squeeze %1027 : memref<1x!tpu.dma_semaphore, #tpu.memory_space<semaphore_mem>> -> memref<!tpu.dma_semaphore, #tpu.memory_space<semaphore_mem>>
      tpu.enqueue_dma source(%1025 : memref<4x128xf32, #tpu.memory_space<any>>) target(%1026 : memref<4x128xf32, #tpu.memory_space<any>>) target_semaphore(%1028 : memref<!tpu.dma_semaphore, #tpu.memory_space<semaphore_mem>>)
    } else {
    }
    %c64_i32_203 = arith.constant 64 : i32
    %400 = arith.muli %arg0, %c64_i32_203 : i32
    %c3_i32_204 = arith.constant 3 : i32
    %401 = arith.addi %400, %c3_i32_204 : i32
    %402 = arith.cmpi slt, %401, %0 : i32
    %403 = arith.extui %402 : i1 to i32
    %c3_i32_205 = arith.constant 3 : i32
    %c0_i32_206 = arith.constant 0 : i32
    %404 = arith.cmpi ne, %403, %c0_i32_206 : i32
    scf.if %404 {
      %c0_i32_703 = arith.constant 0 : i32
      %1025 = tpu.memref_slice %arg3[%23, %c0_i32_703] : memref<40x128xf32, #tpu.memory_space<any>> -> memref<4x128xf32, #tpu.memory_space<any>>
      %c0_i32_704 = arith.constant 0 : i32
      %1026 = tpu.memref_slice %arg4[%24, %c0_i32_704] : memref<256x128xf32, #tpu.memory_space<any>> -> memref<4x128xf32, #tpu.memory_space<any>>
      %1027 = tpu.memref_slice %arg5[%c3_i32_205] : memref<16x!tpu.dma_semaphore, #tpu.memory_space<semaphore_mem>> -> memref<1x!tpu.dma_semaphore, #tpu.memory_space<semaphore_mem>>
      %1028 = tpu.memref_squeeze %1027 : memref<1x!tpu.dma_semaphore, #tpu.memory_space<semaphore_mem>> -> memref<!tpu.dma_semaphore, #tpu.memory_space<semaphore_mem>>
      tpu.enqueue_dma source(%1025 : memref<4x128xf32, #tpu.memory_space<any>>) target(%1026 : memref<4x128xf32, #tpu.memory_space<any>>) target_semaphore(%1028 : memref<!tpu.dma_semaphore, #tpu.memory_space<semaphore_mem>>)
    } else {
    }
    %c64_i32_207 = arith.constant 64 : i32
    %405 = arith.muli %arg0, %c64_i32_207 : i32
    %c4_i32_208 = arith.constant 4 : i32
    %406 = arith.addi %405, %c4_i32_208 : i32
    %407 = arith.cmpi slt, %406, %0 : i32
    %408 = arith.extui %407 : i1 to i32
    %c4_i32_209 = arith.constant 4 : i32
    %c0_i32_210 = arith.constant 0 : i32
    %409 = arith.cmpi ne, %408, %c0_i32_210 : i32
    scf.if %409 {
      %c0_i32_703 = arith.constant 0 : i32
      %1025 = tpu.memref_slice %arg3[%29, %c0_i32_703] : memref<40x128xf32, #tpu.memory_space<any>> -> memref<4x128xf32, #tpu.memory_space<any>>
      %c0_i32_704 = arith.constant 0 : i32
      %1026 = tpu.memref_slice %arg4[%30, %c0_i32_704] : memref<256x128xf32, #tpu.memory_space<any>> -> memref<4x128xf32, #tpu.memory_space<any>>
      %1027 = tpu.memref_slice %arg5[%c4_i32_209] : memref<16x!tpu.dma_semaphore, #tpu.memory_space<semaphore_mem>> -> memref<1x!tpu.dma_semaphore, #tpu.memory_space<semaphore_mem>>
      %1028 = tpu.memref_squeeze %1027 : memref<1x!tpu.dma_semaphore, #tpu.memory_space<semaphore_mem>> -> memref<!tpu.dma_semaphore, #tpu.memory_space<semaphore_mem>>
      tpu.enqueue_dma source(%1025 : memref<4x128xf32, #tpu.memory_space<any>>) target(%1026 : memref<4x128xf32, #tpu.memory_space<any>>) target_semaphore(%1028 : memref<!tpu.dma_semaphore, #tpu.memory_space<semaphore_mem>>)
    } else {
    }
    %c64_i32_211 = arith.constant 64 : i32
    %410 = arith.muli %arg0, %c64_i32_211 : i32
    %c5_i32_212 = arith.constant 5 : i32
    %411 = arith.addi %410, %c5_i32_212 : i32
    %412 = arith.cmpi slt, %411, %0 : i32
    %413 = arith.extui %412 : i1 to i32
    %c5_i32_213 = arith.constant 5 : i32
    %c0_i32_214 = arith.constant 0 : i32
    %414 = arith.cmpi ne, %413, %c0_i32_214 : i32
    scf.if %414 {
      %c0_i32_703 = arith.constant 0 : i32
      %1025 = tpu.memref_slice %arg3[%35, %c0_i32_703] : memref<40x128xf32, #tpu.memory_space<any>> -> memref<4x128xf32, #tpu.memory_space<any>>
      %c0_i32_704 = arith.constant 0 : i32
      %1026 = tpu.memref_slice %arg4[%36, %c0_i32_704] : memref<256x128xf32, #tpu.memory_space<any>> -> memref<4x128xf32, #tpu.memory_space<any>>
      %1027 = tpu.memref_slice %arg5[%c5_i32_213] : memref<16x!tpu.dma_semaphore, #tpu.memory_space<semaphore_mem>> -> memref<1x!tpu.dma_semaphore, #tpu.memory_space<semaphore_mem>>
      %1028 = tpu.memref_squeeze %1027 : memref<1x!tpu.dma_semaphore, #tpu.memory_space<semaphore_mem>> -> memref<!tpu.dma_semaphore, #tpu.memory_space<semaphore_mem>>
      tpu.enqueue_dma source(%1025 : memref<4x128xf32, #tpu.memory_space<any>>) target(%1026 : memref<4x128xf32, #tpu.memory_space<any>>) target_semaphore(%1028 : memref<!tpu.dma_semaphore, #tpu.memory_space<semaphore_mem>>)
    } else {
    }
    %c64_i32_215 = arith.constant 64 : i32
    %415 = arith.muli %arg0, %c64_i32_215 : i32
    %c6_i32_216 = arith.constant 6 : i32
    %416 = arith.addi %415, %c6_i32_216 : i32
    %417 = arith.cmpi slt, %416, %0 : i32
    %418 = arith.extui %417 : i1 to i32
    %c6_i32_217 = arith.constant 6 : i32
    %c0_i32_218 = arith.constant 0 : i32
    %419 = arith.cmpi ne, %418, %c0_i32_218 : i32
    scf.if %419 {
      %c0_i32_703 = arith.constant 0 : i32
      %1025 = tpu.memref_slice %arg3[%41, %c0_i32_703] : memref<40x128xf32, #tpu.memory_space<any>> -> memref<4x128xf32, #tpu.memory_space<any>>
      %c0_i32_704 = arith.constant 0 : i32
      %1026 = tpu.memref_slice %arg4[%42, %c0_i32_704] : memref<256x128xf32, #tpu.memory_space<any>> -> memref<4x128xf32, #tpu.memory_space<any>>
      %1027 = tpu.memref_slice %arg5[%c6_i32_217] : memref<16x!tpu.dma_semaphore, #tpu.memory_space<semaphore_mem>> -> memref<1x!tpu.dma_semaphore, #tpu.memory_space<semaphore_mem>>
      %1028 = tpu.memref_squeeze %1027 : memref<1x!tpu.dma_semaphore, #tpu.memory_space<semaphore_mem>> -> memref<!tpu.dma_semaphore, #tpu.memory_space<semaphore_mem>>
      tpu.enqueue_dma source(%1025 : memref<4x128xf32, #tpu.memory_space<any>>) target(%1026 : memref<4x128xf32, #tpu.memory_space<any>>) target_semaphore(%1028 : memref<!tpu.dma_semaphore, #tpu.memory_space<semaphore_mem>>)
    } else {
    }
    %c64_i32_219 = arith.constant 64 : i32
    %420 = arith.muli %arg0, %c64_i32_219 : i32
    %c7_i32_220 = arith.constant 7 : i32
    %421 = arith.addi %420, %c7_i32_220 : i32
    %422 = arith.cmpi slt, %421, %0 : i32
    %423 = arith.extui %422 : i1 to i32
    %c7_i32_221 = arith.constant 7 : i32
    %c0_i32_222 = arith.constant 0 : i32
    %424 = arith.cmpi ne, %423, %c0_i32_222 : i32
    scf.if %424 {
      %c0_i32_703 = arith.constant 0 : i32
      %1025 = tpu.memref_slice %arg3[%47, %c0_i32_703] : memref<40x128xf32, #tpu.memory_space<any>> -> memref<4x128xf32, #tpu.memory_space<any>>
      %c0_i32_704 = arith.constant 0 : i32
      %1026 = tpu.memref_slice %arg4[%48, %c0_i32_704] : memref<256x128xf32, #tpu.memory_space<any>> -> memref<4x128xf32, #tpu.memory_space<any>>
      %1027 = tpu.memref_slice %arg5[%c7_i32_221] : memref<16x!tpu.dma_semaphore, #tpu.memory_space<semaphore_mem>> -> memref<1x!tpu.dma_semaphore, #tpu.memory_space<semaphore_mem>>
      %1028 = tpu.memref_squeeze %1027 : memref<1x!tpu.dma_semaphore, #tpu.memory_space<semaphore_mem>> -> memref<!tpu.dma_semaphore, #tpu.memory_space<semaphore_mem>>
      tpu.enqueue_dma source(%1025 : memref<4x128xf32, #tpu.memory_space<any>>) target(%1026 : memref<4x128xf32, #tpu.memory_space<any>>) target_semaphore(%1028 : memref<!tpu.dma_semaphore, #tpu.memory_space<semaphore_mem>>)
    } else {
    }
    %c64_i32_223 = arith.constant 64 : i32
    %425 = arith.muli %arg0, %c64_i32_223 : i32
    %c8_i32_224 = arith.constant 8 : i32
    %426 = arith.addi %425, %c8_i32_224 : i32
    %427 = arith.cmpi slt, %426, %0 : i32
    %428 = arith.extui %427 : i1 to i32
    %c8_i32_225 = arith.constant 8 : i32
    %c0_i32_226 = arith.constant 0 : i32
    %429 = arith.cmpi ne, %428, %c0_i32_226 : i32
    scf.if %429 {
      %c0_i32_703 = arith.constant 0 : i32
      %1025 = tpu.memref_slice %arg3[%53, %c0_i32_703] : memref<40x128xf32, #tpu.memory_space<any>> -> memref<4x128xf32, #tpu.memory_space<any>>
      %c0_i32_704 = arith.constant 0 : i32
      %1026 = tpu.memref_slice %arg4[%54, %c0_i32_704] : memref<256x128xf32, #tpu.memory_space<any>> -> memref<4x128xf32, #tpu.memory_space<any>>
      %1027 = tpu.memref_slice %arg5[%c8_i32_225] : memref<16x!tpu.dma_semaphore, #tpu.memory_space<semaphore_mem>> -> memref<1x!tpu.dma_semaphore, #tpu.memory_space<semaphore_mem>>
      %1028 = tpu.memref_squeeze %1027 : memref<1x!tpu.dma_semaphore, #tpu.memory_space<semaphore_mem>> -> memref<!tpu.dma_semaphore, #tpu.memory_space<semaphore_mem>>
      tpu.enqueue_dma source(%1025 : memref<4x128xf32, #tpu.memory_space<any>>) target(%1026 : memref<4x128xf32, #tpu.memory_space<any>>) target_semaphore(%1028 : memref<!tpu.dma_semaphore, #tpu.memory_space<semaphore_mem>>)
    } else {
    }
    %c64_i32_227 = arith.constant 64 : i32
    %430 = arith.muli %arg0, %c64_i32_227 : i32
    %c9_i32_228 = arith.constant 9 : i32
    %431 = arith.addi %430, %c9_i32_228 : i32
    %432 = arith.cmpi slt, %431, %0 : i32
    %433 = arith.extui %432 : i1 to i32
    %c9_i32_229 = arith.constant 9 : i32
    %c0_i32_230 = arith.constant 0 : i32
    %434 = arith.cmpi ne, %433, %c0_i32_230 : i32
    scf.if %434 {
      %c0_i32_703 = arith.constant 0 : i32
      %1025 = tpu.memref_slice %arg3[%59, %c0_i32_703] : memref<40x128xf32, #tpu.memory_space<any>> -> memref<4x128xf32, #tpu.memory_space<any>>
      %c0_i32_704 = arith.constant 0 : i32
      %1026 = tpu.memref_slice %arg4[%60, %c0_i32_704] : memref<256x128xf32, #tpu.memory_space<any>> -> memref<4x128xf32, #tpu.memory_space<any>>
      %1027 = tpu.memref_slice %arg5[%c9_i32_229] : memref<16x!tpu.dma_semaphore, #tpu.memory_space<semaphore_mem>> -> memref<1x!tpu.dma_semaphore, #tpu.memory_space<semaphore_mem>>
      %1028 = tpu.memref_squeeze %1027 : memref<1x!tpu.dma_semaphore, #tpu.memory_space<semaphore_mem>> -> memref<!tpu.dma_semaphore, #tpu.memory_space<semaphore_mem>>
      tpu.enqueue_dma source(%1025 : memref<4x128xf32, #tpu.memory_space<any>>) target(%1026 : memref<4x128xf32, #tpu.memory_space<any>>) target_semaphore(%1028 : memref<!tpu.dma_semaphore, #tpu.memory_space<semaphore_mem>>)
    } else {
    }
    %c64_i32_231 = arith.constant 64 : i32
    %435 = arith.muli %arg0, %c64_i32_231 : i32
    %c10_i32_232 = arith.constant 10 : i32
    %436 = arith.addi %435, %c10_i32_232 : i32
    %437 = arith.cmpi slt, %436, %0 : i32
    %438 = arith.extui %437 : i1 to i32
    %c10_i32_233 = arith.constant 10 : i32
    %c0_i32_234 = arith.constant 0 : i32
    %439 = arith.cmpi ne, %438, %c0_i32_234 : i32
    scf.if %439 {
      %c0_i32_703 = arith.constant 0 : i32
      %1025 = tpu.memref_slice %arg3[%65, %c0_i32_703] : memref<40x128xf32, #tpu.memory_space<any>> -> memref<4x128xf32, #tpu.memory_space<any>>
      %c0_i32_704 = arith.constant 0 : i32
      %1026 = tpu.memref_slice %arg4[%66, %c0_i32_704] : memref<256x128xf32, #tpu.memory_space<any>> -> memref<4x128xf32, #tpu.memory_space<any>>
      %1027 = tpu.memref_slice %arg5[%c10_i32_233] : memref<16x!tpu.dma_semaphore, #tpu.memory_space<semaphore_mem>> -> memref<1x!tpu.dma_semaphore, #tpu.memory_space<semaphore_mem>>
      %1028 = tpu.memref_squeeze %1027 : memref<1x!tpu.dma_semaphore, #tpu.memory_space<semaphore_mem>> -> memref<!tpu.dma_semaphore, #tpu.memory_space<semaphore_mem>>
      tpu.enqueue_dma source(%1025 : memref<4x128xf32, #tpu.memory_space<any>>) target(%1026 : memref<4x128xf32, #tpu.memory_space<any>>) target_semaphore(%1028 : memref<!tpu.dma_semaphore, #tpu.memory_space<semaphore_mem>>)
    } else {
    }
    %c64_i32_235 = arith.constant 64 : i32
    %440 = arith.muli %arg0, %c64_i32_235 : i32
    %c11_i32_236 = arith.constant 11 : i32
    %441 = arith.addi %440, %c11_i32_236 : i32
    %442 = arith.cmpi slt, %441, %0 : i32
    %443 = arith.extui %442 : i1 to i32
    %c11_i32_237 = arith.constant 11 : i32
    %c0_i32_238 = arith.constant 0 : i32
    %444 = arith.cmpi ne, %443, %c0_i32_238 : i32
    scf.if %444 {
      %c0_i32_703 = arith.constant 0 : i32
      %1025 = tpu.memref_slice %arg3[%71, %c0_i32_703] : memref<40x128xf32, #tpu.memory_space<any>> -> memref<4x128xf32, #tpu.memory_space<any>>
      %c0_i32_704 = arith.constant 0 : i32
      %1026 = tpu.memref_slice %arg4[%72, %c0_i32_704] : memref<256x128xf32, #tpu.memory_space<any>> -> memref<4x128xf32, #tpu.memory_space<any>>
      %1027 = tpu.memref_slice %arg5[%c11_i32_237] : memref<16x!tpu.dma_semaphore, #tpu.memory_space<semaphore_mem>> -> memref<1x!tpu.dma_semaphore, #tpu.memory_space<semaphore_mem>>
      %1028 = tpu.memref_squeeze %1027 : memref<1x!tpu.dma_semaphore, #tpu.memory_space<semaphore_mem>> -> memref<!tpu.dma_semaphore, #tpu.memory_space<semaphore_mem>>
      tpu.enqueue_dma source(%1025 : memref<4x128xf32, #tpu.memory_space<any>>) target(%1026 : memref<4x128xf32, #tpu.memory_space<any>>) target_semaphore(%1028 : memref<!tpu.dma_semaphore, #tpu.memory_space<semaphore_mem>>)
    } else {
    }
    %c64_i32_239 = arith.constant 64 : i32
    %445 = arith.muli %arg0, %c64_i32_239 : i32
    %c12_i32_240 = arith.constant 12 : i32
    %446 = arith.addi %445, %c12_i32_240 : i32
    %447 = arith.cmpi slt, %446, %0 : i32
    %448 = arith.extui %447 : i1 to i32
    %c12_i32_241 = arith.constant 12 : i32
    %c0_i32_242 = arith.constant 0 : i32
    %449 = arith.cmpi ne, %448, %c0_i32_242 : i32
    scf.if %449 {
      %c0_i32_703 = arith.constant 0 : i32
      %1025 = tpu.memref_slice %arg3[%77, %c0_i32_703] : memref<40x128xf32, #tpu.memory_space<any>> -> memref<4x128xf32, #tpu.memory_space<any>>
      %c0_i32_704 = arith.constant 0 : i32
      %1026 = tpu.memref_slice %arg4[%78, %c0_i32_704] : memref<256x128xf32, #tpu.memory_space<any>> -> memref<4x128xf32, #tpu.memory_space<any>>
      %1027 = tpu.memref_slice %arg5[%c12_i32_241] : memref<16x!tpu.dma_semaphore, #tpu.memory_space<semaphore_mem>> -> memref<1x!tpu.dma_semaphore, #tpu.memory_space<semaphore_mem>>
      %1028 = tpu.memref_squeeze %1027 : memref<1x!tpu.dma_semaphore, #tpu.memory_space<semaphore_mem>> -> memref<!tpu.dma_semaphore, #tpu.memory_space<semaphore_mem>>
      tpu.enqueue_dma source(%1025 : memref<4x128xf32, #tpu.memory_space<any>>) target(%1026 : memref<4x128xf32, #tpu.memory_space<any>>) target_semaphore(%1028 : memref<!tpu.dma_semaphore, #tpu.memory_space<semaphore_mem>>)
    } else {
    }
    %c64_i32_243 = arith.constant 64 : i32
    %450 = arith.muli %arg0, %c64_i32_243 : i32
    %c13_i32_244 = arith.constant 13 : i32
    %451 = arith.addi %450, %c13_i32_244 : i32
    %452 = arith.cmpi slt, %451, %0 : i32
    %453 = arith.extui %452 : i1 to i32
    %c13_i32_245 = arith.constant 13 : i32
    %c0_i32_246 = arith.constant 0 : i32
    %454 = arith.cmpi ne, %453, %c0_i32_246 : i32
    scf.if %454 {
      %c0_i32_703 = arith.constant 0 : i32
      %1025 = tpu.memref_slice %arg3[%83, %c0_i32_703] : memref<40x128xf32, #tpu.memory_space<any>> -> memref<4x128xf32, #tpu.memory_space<any>>
      %c0_i32_704 = arith.constant 0 : i32
      %1026 = tpu.memref_slice %arg4[%84, %c0_i32_704] : memref<256x128xf32, #tpu.memory_space<any>> -> memref<4x128xf32, #tpu.memory_space<any>>
      %1027 = tpu.memref_slice %arg5[%c13_i32_245] : memref<16x!tpu.dma_semaphore, #tpu.memory_space<semaphore_mem>> -> memref<1x!tpu.dma_semaphore, #tpu.memory_space<semaphore_mem>>
      %1028 = tpu.memref_squeeze %1027 : memref<1x!tpu.dma_semaphore, #tpu.memory_space<semaphore_mem>> -> memref<!tpu.dma_semaphore, #tpu.memory_space<semaphore_mem>>
      tpu.enqueue_dma source(%1025 : memref<4x128xf32, #tpu.memory_space<any>>) target(%1026 : memref<4x128xf32, #tpu.memory_space<any>>) target_semaphore(%1028 : memref<!tpu.dma_semaphore, #tpu.memory_space<semaphore_mem>>)
    } else {
    }
    %c64_i32_247 = arith.constant 64 : i32
    %455 = arith.muli %arg0, %c64_i32_247 : i32
    %c14_i32_248 = arith.constant 14 : i32
    %456 = arith.addi %455, %c14_i32_248 : i32
    %457 = arith.cmpi slt, %456, %0 : i32
    %458 = arith.extui %457 : i1 to i32
    %c14_i32_249 = arith.constant 14 : i32
    %c0_i32_250 = arith.constant 0 : i32
    %459 = arith.cmpi ne, %458, %c0_i32_250 : i32
    scf.if %459 {
      %c0_i32_703 = arith.constant 0 : i32
      %1025 = tpu.memref_slice %arg3[%89, %c0_i32_703] : memref<40x128xf32, #tpu.memory_space<any>> -> memref<4x128xf32, #tpu.memory_space<any>>
      %c0_i32_704 = arith.constant 0 : i32
      %1026 = tpu.memref_slice %arg4[%90, %c0_i32_704] : memref<256x128xf32, #tpu.memory_space<any>> -> memref<4x128xf32, #tpu.memory_space<any>>
      %1027 = tpu.memref_slice %arg5[%c14_i32_249] : memref<16x!tpu.dma_semaphore, #tpu.memory_space<semaphore_mem>> -> memref<1x!tpu.dma_semaphore, #tpu.memory_space<semaphore_mem>>
      %1028 = tpu.memref_squeeze %1027 : memref<1x!tpu.dma_semaphore, #tpu.memory_space<semaphore_mem>> -> memref<!tpu.dma_semaphore, #tpu.memory_space<semaphore_mem>>
      tpu.enqueue_dma source(%1025 : memref<4x128xf32, #tpu.memory_space<any>>) target(%1026 : memref<4x128xf32, #tpu.memory_space<any>>) target_semaphore(%1028 : memref<!tpu.dma_semaphore, #tpu.memory_space<semaphore_mem>>)
    } else {
    }
    %c64_i32_251 = arith.constant 64 : i32
    %460 = arith.muli %arg0, %c64_i32_251 : i32
    %c15_i32_252 = arith.constant 15 : i32
    %461 = arith.addi %460, %c15_i32_252 : i32
    %462 = arith.cmpi slt, %461, %0 : i32
    %463 = arith.extui %462 : i1 to i32
    %c15_i32_253 = arith.constant 15 : i32
    %c0_i32_254 = arith.constant 0 : i32
    %464 = arith.cmpi ne, %463, %c0_i32_254 : i32
    scf.if %464 {
      %c0_i32_703 = arith.constant 0 : i32
      %1025 = tpu.memref_slice %arg3[%95, %c0_i32_703] : memref<40x128xf32, #tpu.memory_space<any>> -> memref<4x128xf32, #tpu.memory_space<any>>
      %c0_i32_704 = arith.constant 0 : i32
      %1026 = tpu.memref_slice %arg4[%96, %c0_i32_704] : memref<256x128xf32, #tpu.memory_space<any>> -> memref<4x128xf32, #tpu.memory_space<any>>
      %1027 = tpu.memref_slice %arg5[%c15_i32_253] : memref<16x!tpu.dma_semaphore, #tpu.memory_space<semaphore_mem>> -> memref<1x!tpu.dma_semaphore, #tpu.memory_space<semaphore_mem>>
      %1028 = tpu.memref_squeeze %1027 : memref<1x!tpu.dma_semaphore, #tpu.memory_space<semaphore_mem>> -> memref<!tpu.dma_semaphore, #tpu.memory_space<semaphore_mem>>
      tpu.enqueue_dma source(%1025 : memref<4x128xf32, #tpu.memory_space<any>>) target(%1026 : memref<4x128xf32, #tpu.memory_space<any>>) target_semaphore(%1028 : memref<!tpu.dma_semaphore, #tpu.memory_space<semaphore_mem>>)
    } else {
    }
    %c64_i32_255 = arith.constant 64 : i32
    %465 = arith.muli %arg0, %c64_i32_255 : i32
    %c16_i32_256 = arith.constant 16 : i32
    %466 = arith.addi %465, %c16_i32_256 : i32
    %467 = arith.cmpi slt, %466, %0 : i32
    %468 = arith.extui %467 : i1 to i32
    %c0_i32_257 = arith.constant 0 : i32
    %c0_i32_258 = arith.constant 0 : i32
    %469 = arith.cmpi ne, %468, %c0_i32_258 : i32
    scf.if %469 {
      %c0_i32_703 = arith.constant 0 : i32
      %1025 = tpu.memref_slice %arg3[%101, %c0_i32_703] : memref<40x128xf32, #tpu.memory_space<any>> -> memref<4x128xf32, #tpu.memory_space<any>>
      %c0_i32_704 = arith.constant 0 : i32
      %1026 = tpu.memref_slice %arg4[%102, %c0_i32_704] : memref<256x128xf32, #tpu.memory_space<any>> -> memref<4x128xf32, #tpu.memory_space<any>>
      %1027 = tpu.memref_slice %arg5[%c0_i32_257] : memref<16x!tpu.dma_semaphore, #tpu.memory_space<semaphore_mem>> -> memref<1x!tpu.dma_semaphore, #tpu.memory_space<semaphore_mem>>
      %1028 = tpu.memref_squeeze %1027 : memref<1x!tpu.dma_semaphore, #tpu.memory_space<semaphore_mem>> -> memref<!tpu.dma_semaphore, #tpu.memory_space<semaphore_mem>>
      tpu.enqueue_dma source(%1025 : memref<4x128xf32, #tpu.memory_space<any>>) target(%1026 : memref<4x128xf32, #tpu.memory_space<any>>) target_semaphore(%1028 : memref<!tpu.dma_semaphore, #tpu.memory_space<semaphore_mem>>)
    } else {
    }
    %c64_i32_259 = arith.constant 64 : i32
    %470 = arith.muli %arg0, %c64_i32_259 : i32
    %c17_i32_260 = arith.constant 17 : i32
    %471 = arith.addi %470, %c17_i32_260 : i32
    %472 = arith.cmpi slt, %471, %0 : i32
    %473 = arith.extui %472 : i1 to i32
    %c1_i32_261 = arith.constant 1 : i32
    %c0_i32_262 = arith.constant 0 : i32
    %474 = arith.cmpi ne, %473, %c0_i32_262 : i32
    scf.if %474 {
      %c0_i32_703 = arith.constant 0 : i32
      %1025 = tpu.memref_slice %arg3[%107, %c0_i32_703] : memref<40x128xf32, #tpu.memory_space<any>> -> memref<4x128xf32, #tpu.memory_space<any>>
      %c0_i32_704 = arith.constant 0 : i32
      %1026 = tpu.memref_slice %arg4[%108, %c0_i32_704] : memref<256x128xf32, #tpu.memory_space<any>> -> memref<4x128xf32, #tpu.memory_space<any>>
      %1027 = tpu.memref_slice %arg5[%c1_i32_261] : memref<16x!tpu.dma_semaphore, #tpu.memory_space<semaphore_mem>> -> memref<1x!tpu.dma_semaphore, #tpu.memory_space<semaphore_mem>>
      %1028 = tpu.memref_squeeze %1027 : memref<1x!tpu.dma_semaphore, #tpu.memory_space<semaphore_mem>> -> memref<!tpu.dma_semaphore, #tpu.memory_space<semaphore_mem>>
      tpu.enqueue_dma source(%1025 : memref<4x128xf32, #tpu.memory_space<any>>) target(%1026 : memref<4x128xf32, #tpu.memory_space<any>>) target_semaphore(%1028 : memref<!tpu.dma_semaphore, #tpu.memory_space<semaphore_mem>>)
    } else {
    }
    %c64_i32_263 = arith.constant 64 : i32
    %475 = arith.muli %arg0, %c64_i32_263 : i32
    %c18_i32_264 = arith.constant 18 : i32
    %476 = arith.addi %475, %c18_i32_264 : i32
    %477 = arith.cmpi slt, %476, %0 : i32
    %478 = arith.extui %477 : i1 to i32
    %c2_i32_265 = arith.constant 2 : i32
    %c0_i32_266 = arith.constant 0 : i32
    %479 = arith.cmpi ne, %478, %c0_i32_266 : i32
    scf.if %479 {
      %c0_i32_703 = arith.constant 0 : i32
      %1025 = tpu.memref_slice %arg3[%113, %c0_i32_703] : memref<40x128xf32, #tpu.memory_space<any>> -> memref<4x128xf32, #tpu.memory_space<any>>
      %c0_i32_704 = arith.constant 0 : i32
      %1026 = tpu.memref_slice %arg4[%114, %c0_i32_704] : memref<256x128xf32, #tpu.memory_space<any>> -> memref<4x128xf32, #tpu.memory_space<any>>
      %1027 = tpu.memref_slice %arg5[%c2_i32_265] : memref<16x!tpu.dma_semaphore, #tpu.memory_space<semaphore_mem>> -> memref<1x!tpu.dma_semaphore, #tpu.memory_space<semaphore_mem>>
      %1028 = tpu.memref_squeeze %1027 : memref<1x!tpu.dma_semaphore, #tpu.memory_space<semaphore_mem>> -> memref<!tpu.dma_semaphore, #tpu.memory_space<semaphore_mem>>
      tpu.enqueue_dma source(%1025 : memref<4x128xf32, #tpu.memory_space<any>>) target(%1026 : memref<4x128xf32, #tpu.memory_space<any>>) target_semaphore(%1028 : memref<!tpu.dma_semaphore, #tpu.memory_space<semaphore_mem>>)
    } else {
    }
    %c64_i32_267 = arith.constant 64 : i32
    %480 = arith.muli %arg0, %c64_i32_267 : i32
    %c19_i32_268 = arith.constant 19 : i32
    %481 = arith.addi %480, %c19_i32_268 : i32
    %482 = arith.cmpi slt, %481, %0 : i32
    %483 = arith.extui %482 : i1 to i32
    %c3_i32_269 = arith.constant 3 : i32
    %c0_i32_270 = arith.constant 0 : i32
    %484 = arith.cmpi ne, %483, %c0_i32_270 : i32
    scf.if %484 {
      %c0_i32_703 = arith.constant 0 : i32
      %1025 = tpu.memref_slice %arg3[%119, %c0_i32_703] : memref<40x128xf32, #tpu.memory_space<any>> -> memref<4x128xf32, #tpu.memory_space<any>>
      %c0_i32_704 = arith.constant 0 : i32
      %1026 = tpu.memref_slice %arg4[%120, %c0_i32_704] : memref<256x128xf32, #tpu.memory_space<any>> -> memref<4x128xf32, #tpu.memory_space<any>>
      %1027 = tpu.memref_slice %arg5[%c3_i32_269] : memref<16x!tpu.dma_semaphore, #tpu.memory_space<semaphore_mem>> -> memref<1x!tpu.dma_semaphore, #tpu.memory_space<semaphore_mem>>
      %1028 = tpu.memref_squeeze %1027 : memref<1x!tpu.dma_semaphore, #tpu.memory_space<semaphore_mem>> -> memref<!tpu.dma_semaphore, #tpu.memory_space<semaphore_mem>>
      tpu.enqueue_dma source(%1025 : memref<4x128xf32, #tpu.memory_space<any>>) target(%1026 : memref<4x128xf32, #tpu.memory_space<any>>) target_semaphore(%1028 : memref<!tpu.dma_semaphore, #tpu.memory_space<semaphore_mem>>)
    } else {
    }
    %c64_i32_271 = arith.constant 64 : i32
    %485 = arith.muli %arg0, %c64_i32_271 : i32
    %c20_i32_272 = arith.constant 20 : i32
    %486 = arith.addi %485, %c20_i32_272 : i32
    %487 = arith.cmpi slt, %486, %0 : i32
    %488 = arith.extui %487 : i1 to i32
    %c4_i32_273 = arith.constant 4 : i32
    %c0_i32_274 = arith.constant 0 : i32
    %489 = arith.cmpi ne, %488, %c0_i32_274 : i32
    scf.if %489 {
      %c0_i32_703 = arith.constant 0 : i32
      %1025 = tpu.memref_slice %arg3[%125, %c0_i32_703] : memref<40x128xf32, #tpu.memory_space<any>> -> memref<4x128xf32, #tpu.memory_space<any>>
      %c0_i32_704 = arith.constant 0 : i32
      %1026 = tpu.memref_slice %arg4[%126, %c0_i32_704] : memref<256x128xf32, #tpu.memory_space<any>> -> memref<4x128xf32, #tpu.memory_space<any>>
      %1027 = tpu.memref_slice %arg5[%c4_i32_273] : memref<16x!tpu.dma_semaphore, #tpu.memory_space<semaphore_mem>> -> memref<1x!tpu.dma_semaphore, #tpu.memory_space<semaphore_mem>>
      %1028 = tpu.memref_squeeze %1027 : memref<1x!tpu.dma_semaphore, #tpu.memory_space<semaphore_mem>> -> memref<!tpu.dma_semaphore, #tpu.memory_space<semaphore_mem>>
      tpu.enqueue_dma source(%1025 : memref<4x128xf32, #tpu.memory_space<any>>) target(%1026 : memref<4x128xf32, #tpu.memory_space<any>>) target_semaphore(%1028 : memref<!tpu.dma_semaphore, #tpu.memory_space<semaphore_mem>>)
    } else {
    }
    %c64_i32_275 = arith.constant 64 : i32
    %490 = arith.muli %arg0, %c64_i32_275 : i32
    %c21_i32_276 = arith.constant 21 : i32
    %491 = arith.addi %490, %c21_i32_276 : i32
    %492 = arith.cmpi slt, %491, %0 : i32
    %493 = arith.extui %492 : i1 to i32
    %c5_i32_277 = arith.constant 5 : i32
    %c0_i32_278 = arith.constant 0 : i32
    %494 = arith.cmpi ne, %493, %c0_i32_278 : i32
    scf.if %494 {
      %c0_i32_703 = arith.constant 0 : i32
      %1025 = tpu.memref_slice %arg3[%131, %c0_i32_703] : memref<40x128xf32, #tpu.memory_space<any>> -> memref<4x128xf32, #tpu.memory_space<any>>
      %c0_i32_704 = arith.constant 0 : i32
      %1026 = tpu.memref_slice %arg4[%132, %c0_i32_704] : memref<256x128xf32, #tpu.memory_space<any>> -> memref<4x128xf32, #tpu.memory_space<any>>
      %1027 = tpu.memref_slice %arg5[%c5_i32_277] : memref<16x!tpu.dma_semaphore, #tpu.memory_space<semaphore_mem>> -> memref<1x!tpu.dma_semaphore, #tpu.memory_space<semaphore_mem>>
      %1028 = tpu.memref_squeeze %1027 : memref<1x!tpu.dma_semaphore, #tpu.memory_space<semaphore_mem>> -> memref<!tpu.dma_semaphore, #tpu.memory_space<semaphore_mem>>
      tpu.enqueue_dma source(%1025 : memref<4x128xf32, #tpu.memory_space<any>>) target(%1026 : memref<4x128xf32, #tpu.memory_space<any>>) target_semaphore(%1028 : memref<!tpu.dma_semaphore, #tpu.memory_space<semaphore_mem>>)
    } else {
    }
    %c64_i32_279 = arith.constant 64 : i32
    %495 = arith.muli %arg0, %c64_i32_279 : i32
    %c22_i32_280 = arith.constant 22 : i32
    %496 = arith.addi %495, %c22_i32_280 : i32
    %497 = arith.cmpi slt, %496, %0 : i32
    %498 = arith.extui %497 : i1 to i32
    %c6_i32_281 = arith.constant 6 : i32
    %c0_i32_282 = arith.constant 0 : i32
    %499 = arith.cmpi ne, %498, %c0_i32_282 : i32
    scf.if %499 {
      %c0_i32_703 = arith.constant 0 : i32
      %1025 = tpu.memref_slice %arg3[%137, %c0_i32_703] : memref<40x128xf32, #tpu.memory_space<any>> -> memref<4x128xf32, #tpu.memory_space<any>>
      %c0_i32_704 = arith.constant 0 : i32
      %1026 = tpu.memref_slice %arg4[%138, %c0_i32_704] : memref<256x128xf32, #tpu.memory_space<any>> -> memref<4x128xf32, #tpu.memory_space<any>>
      %1027 = tpu.memref_slice %arg5[%c6_i32_281] : memref<16x!tpu.dma_semaphore, #tpu.memory_space<semaphore_mem>> -> memref<1x!tpu.dma_semaphore, #tpu.memory_space<semaphore_mem>>
      %1028 = tpu.memref_squeeze %1027 : memref<1x!tpu.dma_semaphore, #tpu.memory_space<semaphore_mem>> -> memref<!tpu.dma_semaphore, #tpu.memory_space<semaphore_mem>>
      tpu.enqueue_dma source(%1025 : memref<4x128xf32, #tpu.memory_space<any>>) target(%1026 : memref<4x128xf32, #tpu.memory_space<any>>) target_semaphore(%1028 : memref<!tpu.dma_semaphore, #tpu.memory_space<semaphore_mem>>)
    } else {
    }
    %c64_i32_283 = arith.constant 64 : i32
    %500 = arith.muli %arg0, %c64_i32_283 : i32
    %c23_i32_284 = arith.constant 23 : i32
    %501 = arith.addi %500, %c23_i32_284 : i32
    %502 = arith.cmpi slt, %501, %0 : i32
    %503 = arith.extui %502 : i1 to i32
    %c7_i32_285 = arith.constant 7 : i32
    %c0_i32_286 = arith.constant 0 : i32
    %504 = arith.cmpi ne, %503, %c0_i32_286 : i32
    scf.if %504 {
      %c0_i32_703 = arith.constant 0 : i32
      %1025 = tpu.memref_slice %arg3[%143, %c0_i32_703] : memref<40x128xf32, #tpu.memory_space<any>> -> memref<4x128xf32, #tpu.memory_space<any>>
      %c0_i32_704 = arith.constant 0 : i32
      %1026 = tpu.memref_slice %arg4[%144, %c0_i32_704] : memref<256x128xf32, #tpu.memory_space<any>> -> memref<4x128xf32, #tpu.memory_space<any>>
      %1027 = tpu.memref_slice %arg5[%c7_i32_285] : memref<16x!tpu.dma_semaphore, #tpu.memory_space<semaphore_mem>> -> memref<1x!tpu.dma_semaphore, #tpu.memory_space<semaphore_mem>>
      %1028 = tpu.memref_squeeze %1027 : memref<1x!tpu.dma_semaphore, #tpu.memory_space<semaphore_mem>> -> memref<!tpu.dma_semaphore, #tpu.memory_space<semaphore_mem>>
      tpu.enqueue_dma source(%1025 : memref<4x128xf32, #tpu.memory_space<any>>) target(%1026 : memref<4x128xf32, #tpu.memory_space<any>>) target_semaphore(%1028 : memref<!tpu.dma_semaphore, #tpu.memory_space<semaphore_mem>>)
    } else {
    }
    %c64_i32_287 = arith.constant 64 : i32
    %505 = arith.muli %arg0, %c64_i32_287 : i32
    %c24_i32_288 = arith.constant 24 : i32
    %506 = arith.addi %505, %c24_i32_288 : i32
    %507 = arith.cmpi slt, %506, %0 : i32
    %508 = arith.extui %507 : i1 to i32
    %c8_i32_289 = arith.constant 8 : i32
    %c0_i32_290 = arith.constant 0 : i32
    %509 = arith.cmpi ne, %508, %c0_i32_290 : i32
    scf.if %509 {
      %c0_i32_703 = arith.constant 0 : i32
      %1025 = tpu.memref_slice %arg3[%149, %c0_i32_703] : memref<40x128xf32, #tpu.memory_space<any>> -> memref<4x128xf32, #tpu.memory_space<any>>
      %c0_i32_704 = arith.constant 0 : i32
      %1026 = tpu.memref_slice %arg4[%150, %c0_i32_704] : memref<256x128xf32, #tpu.memory_space<any>> -> memref<4x128xf32, #tpu.memory_space<any>>
      %1027 = tpu.memref_slice %arg5[%c8_i32_289] : memref<16x!tpu.dma_semaphore, #tpu.memory_space<semaphore_mem>> -> memref<1x!tpu.dma_semaphore, #tpu.memory_space<semaphore_mem>>
      %1028 = tpu.memref_squeeze %1027 : memref<1x!tpu.dma_semaphore, #tpu.memory_space<semaphore_mem>> -> memref<!tpu.dma_semaphore, #tpu.memory_space<semaphore_mem>>
      tpu.enqueue_dma source(%1025 : memref<4x128xf32, #tpu.memory_space<any>>) target(%1026 : memref<4x128xf32, #tpu.memory_space<any>>) target_semaphore(%1028 : memref<!tpu.dma_semaphore, #tpu.memory_space<semaphore_mem>>)
    } else {
    }
    %c64_i32_291 = arith.constant 64 : i32
    %510 = arith.muli %arg0, %c64_i32_291 : i32
    %c25_i32_292 = arith.constant 25 : i32
    %511 = arith.addi %510, %c25_i32_292 : i32
    %512 = arith.cmpi slt, %511, %0 : i32
    %513 = arith.extui %512 : i1 to i32
    %c9_i32_293 = arith.constant 9 : i32
    %c0_i32_294 = arith.constant 0 : i32
    %514 = arith.cmpi ne, %513, %c0_i32_294 : i32
    scf.if %514 {
      %c0_i32_703 = arith.constant 0 : i32
      %1025 = tpu.memref_slice %arg3[%155, %c0_i32_703] : memref<40x128xf32, #tpu.memory_space<any>> -> memref<4x128xf32, #tpu.memory_space<any>>
      %c0_i32_704 = arith.constant 0 : i32
      %1026 = tpu.memref_slice %arg4[%156, %c0_i32_704] : memref<256x128xf32, #tpu.memory_space<any>> -> memref<4x128xf32, #tpu.memory_space<any>>
      %1027 = tpu.memref_slice %arg5[%c9_i32_293] : memref<16x!tpu.dma_semaphore, #tpu.memory_space<semaphore_mem>> -> memref<1x!tpu.dma_semaphore, #tpu.memory_space<semaphore_mem>>
      %1028 = tpu.memref_squeeze %1027 : memref<1x!tpu.dma_semaphore, #tpu.memory_space<semaphore_mem>> -> memref<!tpu.dma_semaphore, #tpu.memory_space<semaphore_mem>>
      tpu.enqueue_dma source(%1025 : memref<4x128xf32, #tpu.memory_space<any>>) target(%1026 : memref<4x128xf32, #tpu.memory_space<any>>) target_semaphore(%1028 : memref<!tpu.dma_semaphore, #tpu.memory_space<semaphore_mem>>)
    } else {
    }
    %c64_i32_295 = arith.constant 64 : i32
    %515 = arith.muli %arg0, %c64_i32_295 : i32
    %c26_i32_296 = arith.constant 26 : i32
    %516 = arith.addi %515, %c26_i32_296 : i32
    %517 = arith.cmpi slt, %516, %0 : i32
    %518 = arith.extui %517 : i1 to i32
    %c10_i32_297 = arith.constant 10 : i32
    %c0_i32_298 = arith.constant 0 : i32
    %519 = arith.cmpi ne, %518, %c0_i32_298 : i32
    scf.if %519 {
      %c0_i32_703 = arith.constant 0 : i32
      %1025 = tpu.memref_slice %arg3[%161, %c0_i32_703] : memref<40x128xf32, #tpu.memory_space<any>> -> memref<4x128xf32, #tpu.memory_space<any>>
      %c0_i32_704 = arith.constant 0 : i32
      %1026 = tpu.memref_slice %arg4[%162, %c0_i32_704] : memref<256x128xf32, #tpu.memory_space<any>> -> memref<4x128xf32, #tpu.memory_space<any>>
      %1027 = tpu.memref_slice %arg5[%c10_i32_297] : memref<16x!tpu.dma_semaphore, #tpu.memory_space<semaphore_mem>> -> memref<1x!tpu.dma_semaphore, #tpu.memory_space<semaphore_mem>>
      %1028 = tpu.memref_squeeze %1027 : memref<1x!tpu.dma_semaphore, #tpu.memory_space<semaphore_mem>> -> memref<!tpu.dma_semaphore, #tpu.memory_space<semaphore_mem>>
      tpu.enqueue_dma source(%1025 : memref<4x128xf32, #tpu.memory_space<any>>) target(%1026 : memref<4x128xf32, #tpu.memory_space<any>>) target_semaphore(%1028 : memref<!tpu.dma_semaphore, #tpu.memory_space<semaphore_mem>>)
    } else {
    }
    %c64_i32_299 = arith.constant 64 : i32
    %520 = arith.muli %arg0, %c64_i32_299 : i32
    %c27_i32_300 = arith.constant 27 : i32
    %521 = arith.addi %520, %c27_i32_300 : i32
    %522 = arith.cmpi slt, %521, %0 : i32
    %523 = arith.extui %522 : i1 to i32
    %c11_i32_301 = arith.constant 11 : i32
    %c0_i32_302 = arith.constant 0 : i32
    %524 = arith.cmpi ne, %523, %c0_i32_302 : i32
    scf.if %524 {
      %c0_i32_703 = arith.constant 0 : i32
      %1025 = tpu.memref_slice %arg3[%167, %c0_i32_703] : memref<40x128xf32, #tpu.memory_space<any>> -> memref<4x128xf32, #tpu.memory_space<any>>
      %c0_i32_704 = arith.constant 0 : i32
      %1026 = tpu.memref_slice %arg4[%168, %c0_i32_704] : memref<256x128xf32, #tpu.memory_space<any>> -> memref<4x128xf32, #tpu.memory_space<any>>
      %1027 = tpu.memref_slice %arg5[%c11_i32_301] : memref<16x!tpu.dma_semaphore, #tpu.memory_space<semaphore_mem>> -> memref<1x!tpu.dma_semaphore, #tpu.memory_space<semaphore_mem>>
      %1028 = tpu.memref_squeeze %1027 : memref<1x!tpu.dma_semaphore, #tpu.memory_space<semaphore_mem>> -> memref<!tpu.dma_semaphore, #tpu.memory_space<semaphore_mem>>
      tpu.enqueue_dma source(%1025 : memref<4x128xf32, #tpu.memory_space<any>>) target(%1026 : memref<4x128xf32, #tpu.memory_space<any>>) target_semaphore(%1028 : memref<!tpu.dma_semaphore, #tpu.memory_space<semaphore_mem>>)
    } else {
    }
    %c64_i32_303 = arith.constant 64 : i32
    %525 = arith.muli %arg0, %c64_i32_303 : i32
    %c28_i32_304 = arith.constant 28 : i32
    %526 = arith.addi %525, %c28_i32_304 : i32
    %527 = arith.cmpi slt, %526, %0 : i32
    %528 = arith.extui %527 : i1 to i32
    %c12_i32_305 = arith.constant 12 : i32
    %c0_i32_306 = arith.constant 0 : i32
    %529 = arith.cmpi ne, %528, %c0_i32_306 : i32
    scf.if %529 {
      %c0_i32_703 = arith.constant 0 : i32
      %1025 = tpu.memref_slice %arg3[%173, %c0_i32_703] : memref<40x128xf32, #tpu.memory_space<any>> -> memref<4x128xf32, #tpu.memory_space<any>>
      %c0_i32_704 = arith.constant 0 : i32
      %1026 = tpu.memref_slice %arg4[%174, %c0_i32_704] : memref<256x128xf32, #tpu.memory_space<any>> -> memref<4x128xf32, #tpu.memory_space<any>>
      %1027 = tpu.memref_slice %arg5[%c12_i32_305] : memref<16x!tpu.dma_semaphore, #tpu.memory_space<semaphore_mem>> -> memref<1x!tpu.dma_semaphore, #tpu.memory_space<semaphore_mem>>
      %1028 = tpu.memref_squeeze %1027 : memref<1x!tpu.dma_semaphore, #tpu.memory_space<semaphore_mem>> -> memref<!tpu.dma_semaphore, #tpu.memory_space<semaphore_mem>>
      tpu.enqueue_dma source(%1025 : memref<4x128xf32, #tpu.memory_space<any>>) target(%1026 : memref<4x128xf32, #tpu.memory_space<any>>) target_semaphore(%1028 : memref<!tpu.dma_semaphore, #tpu.memory_space<semaphore_mem>>)
    } else {
    }
    %c64_i32_307 = arith.constant 64 : i32
    %530 = arith.muli %arg0, %c64_i32_307 : i32
    %c29_i32_308 = arith.constant 29 : i32
    %531 = arith.addi %530, %c29_i32_308 : i32
    %532 = arith.cmpi slt, %531, %0 : i32
    %533 = arith.extui %532 : i1 to i32
    %c13_i32_309 = arith.constant 13 : i32
    %c0_i32_310 = arith.constant 0 : i32
    %534 = arith.cmpi ne, %533, %c0_i32_310 : i32
    scf.if %534 {
      %c0_i32_703 = arith.constant 0 : i32
      %1025 = tpu.memref_slice %arg3[%179, %c0_i32_703] : memref<40x128xf32, #tpu.memory_space<any>> -> memref<4x128xf32, #tpu.memory_space<any>>
      %c0_i32_704 = arith.constant 0 : i32
      %1026 = tpu.memref_slice %arg4[%180, %c0_i32_704] : memref<256x128xf32, #tpu.memory_space<any>> -> memref<4x128xf32, #tpu.memory_space<any>>
      %1027 = tpu.memref_slice %arg5[%c13_i32_309] : memref<16x!tpu.dma_semaphore, #tpu.memory_space<semaphore_mem>> -> memref<1x!tpu.dma_semaphore, #tpu.memory_space<semaphore_mem>>
      %1028 = tpu.memref_squeeze %1027 : memref<1x!tpu.dma_semaphore, #tpu.memory_space<semaphore_mem>> -> memref<!tpu.dma_semaphore, #tpu.memory_space<semaphore_mem>>
      tpu.enqueue_dma source(%1025 : memref<4x128xf32, #tpu.memory_space<any>>) target(%1026 : memref<4x128xf32, #tpu.memory_space<any>>) target_semaphore(%1028 : memref<!tpu.dma_semaphore, #tpu.memory_space<semaphore_mem>>)
    } else {
    }
    %c64_i32_311 = arith.constant 64 : i32
    %535 = arith.muli %arg0, %c64_i32_311 : i32
    %c30_i32_312 = arith.constant 30 : i32
    %536 = arith.addi %535, %c30_i32_312 : i32
    %537 = arith.cmpi slt, %536, %0 : i32
    %538 = arith.extui %537 : i1 to i32
    %c14_i32_313 = arith.constant 14 : i32
    %c0_i32_314 = arith.constant 0 : i32
    %539 = arith.cmpi ne, %538, %c0_i32_314 : i32
    scf.if %539 {
      %c0_i32_703 = arith.constant 0 : i32
      %1025 = tpu.memref_slice %arg3[%185, %c0_i32_703] : memref<40x128xf32, #tpu.memory_space<any>> -> memref<4x128xf32, #tpu.memory_space<any>>
      %c0_i32_704 = arith.constant 0 : i32
      %1026 = tpu.memref_slice %arg4[%186, %c0_i32_704] : memref<256x128xf32, #tpu.memory_space<any>> -> memref<4x128xf32, #tpu.memory_space<any>>
      %1027 = tpu.memref_slice %arg5[%c14_i32_313] : memref<16x!tpu.dma_semaphore, #tpu.memory_space<semaphore_mem>> -> memref<1x!tpu.dma_semaphore, #tpu.memory_space<semaphore_mem>>
      %1028 = tpu.memref_squeeze %1027 : memref<1x!tpu.dma_semaphore, #tpu.memory_space<semaphore_mem>> -> memref<!tpu.dma_semaphore, #tpu.memory_space<semaphore_mem>>
      tpu.enqueue_dma source(%1025 : memref<4x128xf32, #tpu.memory_space<any>>) target(%1026 : memref<4x128xf32, #tpu.memory_space<any>>) target_semaphore(%1028 : memref<!tpu.dma_semaphore, #tpu.memory_space<semaphore_mem>>)
    } else {
    }
    %c64_i32_315 = arith.constant 64 : i32
    %540 = arith.muli %arg0, %c64_i32_315 : i32
    %c31_i32_316 = arith.constant 31 : i32
    %541 = arith.addi %540, %c31_i32_316 : i32
    %542 = arith.cmpi slt, %541, %0 : i32
    %543 = arith.extui %542 : i1 to i32
    %c15_i32_317 = arith.constant 15 : i32
    %c0_i32_318 = arith.constant 0 : i32
    %544 = arith.cmpi ne, %543, %c0_i32_318 : i32
    scf.if %544 {
      %c0_i32_703 = arith.constant 0 : i32
      %1025 = tpu.memref_slice %arg3[%191, %c0_i32_703] : memref<40x128xf32, #tpu.memory_space<any>> -> memref<4x128xf32, #tpu.memory_space<any>>
      %c0_i32_704 = arith.constant 0 : i32
      %1026 = tpu.memref_slice %arg4[%192, %c0_i32_704] : memref<256x128xf32, #tpu.memory_space<any>> -> memref<4x128xf32, #tpu.memory_space<any>>
      %1027 = tpu.memref_slice %arg5[%c15_i32_317] : memref<16x!tpu.dma_semaphore, #tpu.memory_space<semaphore_mem>> -> memref<1x!tpu.dma_semaphore, #tpu.memory_space<semaphore_mem>>
      %1028 = tpu.memref_squeeze %1027 : memref<1x!tpu.dma_semaphore, #tpu.memory_space<semaphore_mem>> -> memref<!tpu.dma_semaphore, #tpu.memory_space<semaphore_mem>>
      tpu.enqueue_dma source(%1025 : memref<4x128xf32, #tpu.memory_space<any>>) target(%1026 : memref<4x128xf32, #tpu.memory_space<any>>) target_semaphore(%1028 : memref<!tpu.dma_semaphore, #tpu.memory_space<semaphore_mem>>)
    } else {
    }
    %c64_i32_319 = arith.constant 64 : i32
    %545 = arith.muli %arg0, %c64_i32_319 : i32
    %c32_i32_320 = arith.constant 32 : i32
    %546 = arith.addi %545, %c32_i32_320 : i32
    %547 = arith.cmpi slt, %546, %0 : i32
    %548 = arith.extui %547 : i1 to i32
    %c0_i32_321 = arith.constant 0 : i32
    %c0_i32_322 = arith.constant 0 : i32
    %549 = arith.cmpi ne, %548, %c0_i32_322 : i32
    scf.if %549 {
      %c0_i32_703 = arith.constant 0 : i32
      %1025 = tpu.memref_slice %arg3[%197, %c0_i32_703] : memref<40x128xf32, #tpu.memory_space<any>> -> memref<4x128xf32, #tpu.memory_space<any>>
      %c0_i32_704 = arith.constant 0 : i32
      %1026 = tpu.memref_slice %arg4[%198, %c0_i32_704] : memref<256x128xf32, #tpu.memory_space<any>> -> memref<4x128xf32, #tpu.memory_space<any>>
      %1027 = tpu.memref_slice %arg5[%c0_i32_321] : memref<16x!tpu.dma_semaphore, #tpu.memory_space<semaphore_mem>> -> memref<1x!tpu.dma_semaphore, #tpu.memory_space<semaphore_mem>>
      %1028 = tpu.memref_squeeze %1027 : memref<1x!tpu.dma_semaphore, #tpu.memory_space<semaphore_mem>> -> memref<!tpu.dma_semaphore, #tpu.memory_space<semaphore_mem>>
      tpu.enqueue_dma source(%1025 : memref<4x128xf32, #tpu.memory_space<any>>) target(%1026 : memref<4x128xf32, #tpu.memory_space<any>>) target_semaphore(%1028 : memref<!tpu.dma_semaphore, #tpu.memory_space<semaphore_mem>>)
    } else {
    }
    %c64_i32_323 = arith.constant 64 : i32
    %550 = arith.muli %arg0, %c64_i32_323 : i32
    %c33_i32_324 = arith.constant 33 : i32
    %551 = arith.addi %550, %c33_i32_324 : i32
    %552 = arith.cmpi slt, %551, %0 : i32
    %553 = arith.extui %552 : i1 to i32
    %c1_i32_325 = arith.constant 1 : i32
    %c0_i32_326 = arith.constant 0 : i32
    %554 = arith.cmpi ne, %553, %c0_i32_326 : i32
    scf.if %554 {
      %c0_i32_703 = arith.constant 0 : i32
      %1025 = tpu.memref_slice %arg3[%203, %c0_i32_703] : memref<40x128xf32, #tpu.memory_space<any>> -> memref<4x128xf32, #tpu.memory_space<any>>
      %c0_i32_704 = arith.constant 0 : i32
      %1026 = tpu.memref_slice %arg4[%204, %c0_i32_704] : memref<256x128xf32, #tpu.memory_space<any>> -> memref<4x128xf32, #tpu.memory_space<any>>
      %1027 = tpu.memref_slice %arg5[%c1_i32_325] : memref<16x!tpu.dma_semaphore, #tpu.memory_space<semaphore_mem>> -> memref<1x!tpu.dma_semaphore, #tpu.memory_space<semaphore_mem>>
      %1028 = tpu.memref_squeeze %1027 : memref<1x!tpu.dma_semaphore, #tpu.memory_space<semaphore_mem>> -> memref<!tpu.dma_semaphore, #tpu.memory_space<semaphore_mem>>
      tpu.enqueue_dma source(%1025 : memref<4x128xf32, #tpu.memory_space<any>>) target(%1026 : memref<4x128xf32, #tpu.memory_space<any>>) target_semaphore(%1028 : memref<!tpu.dma_semaphore, #tpu.memory_space<semaphore_mem>>)
    } else {
    }
    %c64_i32_327 = arith.constant 64 : i32
    %555 = arith.muli %arg0, %c64_i32_327 : i32
    %c34_i32_328 = arith.constant 34 : i32
    %556 = arith.addi %555, %c34_i32_328 : i32
    %557 = arith.cmpi slt, %556, %0 : i32
    %558 = arith.extui %557 : i1 to i32
    %c2_i32_329 = arith.constant 2 : i32
    %c0_i32_330 = arith.constant 0 : i32
    %559 = arith.cmpi ne, %558, %c0_i32_330 : i32
    scf.if %559 {
      %c0_i32_703 = arith.constant 0 : i32
      %1025 = tpu.memref_slice %arg3[%209, %c0_i32_703] : memref<40x128xf32, #tpu.memory_space<any>> -> memref<4x128xf32, #tpu.memory_space<any>>
      %c0_i32_704 = arith.constant 0 : i32
      %1026 = tpu.memref_slice %arg4[%210, %c0_i32_704] : memref<256x128xf32, #tpu.memory_space<any>> -> memref<4x128xf32, #tpu.memory_space<any>>
      %1027 = tpu.memref_slice %arg5[%c2_i32_329] : memref<16x!tpu.dma_semaphore, #tpu.memory_space<semaphore_mem>> -> memref<1x!tpu.dma_semaphore, #tpu.memory_space<semaphore_mem>>
      %1028 = tpu.memref_squeeze %1027 : memref<1x!tpu.dma_semaphore, #tpu.memory_space<semaphore_mem>> -> memref<!tpu.dma_semaphore, #tpu.memory_space<semaphore_mem>>
      tpu.enqueue_dma source(%1025 : memref<4x128xf32, #tpu.memory_space<any>>) target(%1026 : memref<4x128xf32, #tpu.memory_space<any>>) target_semaphore(%1028 : memref<!tpu.dma_semaphore, #tpu.memory_space<semaphore_mem>>)
    } else {
    }
    %c64_i32_331 = arith.constant 64 : i32
    %560 = arith.muli %arg0, %c64_i32_331 : i32
    %c35_i32_332 = arith.constant 35 : i32
    %561 = arith.addi %560, %c35_i32_332 : i32
    %562 = arith.cmpi slt, %561, %0 : i32
    %563 = arith.extui %562 : i1 to i32
    %c3_i32_333 = arith.constant 3 : i32
    %c0_i32_334 = arith.constant 0 : i32
    %564 = arith.cmpi ne, %563, %c0_i32_334 : i32
    scf.if %564 {
      %c0_i32_703 = arith.constant 0 : i32
      %1025 = tpu.memref_slice %arg3[%215, %c0_i32_703] : memref<40x128xf32, #tpu.memory_space<any>> -> memref<4x128xf32, #tpu.memory_space<any>>
      %c0_i32_704 = arith.constant 0 : i32
      %1026 = tpu.memref_slice %arg4[%216, %c0_i32_704] : memref<256x128xf32, #tpu.memory_space<any>> -> memref<4x128xf32, #tpu.memory_space<any>>
      %1027 = tpu.memref_slice %arg5[%c3_i32_333] : memref<16x!tpu.dma_semaphore, #tpu.memory_space<semaphore_mem>> -> memref<1x!tpu.dma_semaphore, #tpu.memory_space<semaphore_mem>>
      %1028 = tpu.memref_squeeze %1027 : memref<1x!tpu.dma_semaphore, #tpu.memory_space<semaphore_mem>> -> memref<!tpu.dma_semaphore, #tpu.memory_space<semaphore_mem>>
      tpu.enqueue_dma source(%1025 : memref<4x128xf32, #tpu.memory_space<any>>) target(%1026 : memref<4x128xf32, #tpu.memory_space<any>>) target_semaphore(%1028 : memref<!tpu.dma_semaphore, #tpu.memory_space<semaphore_mem>>)
    } else {
    }
    %c64_i32_335 = arith.constant 64 : i32
    %565 = arith.muli %arg0, %c64_i32_335 : i32
    %c36_i32_336 = arith.constant 36 : i32
    %566 = arith.addi %565, %c36_i32_336 : i32
    %567 = arith.cmpi slt, %566, %0 : i32
    %568 = arith.extui %567 : i1 to i32
    %c4_i32_337 = arith.constant 4 : i32
    %c0_i32_338 = arith.constant 0 : i32
    %569 = arith.cmpi ne, %568, %c0_i32_338 : i32
    scf.if %569 {
      %c0_i32_703 = arith.constant 0 : i32
      %1025 = tpu.memref_slice %arg3[%221, %c0_i32_703] : memref<40x128xf32, #tpu.memory_space<any>> -> memref<4x128xf32, #tpu.memory_space<any>>
      %c0_i32_704 = arith.constant 0 : i32
      %1026 = tpu.memref_slice %arg4[%222, %c0_i32_704] : memref<256x128xf32, #tpu.memory_space<any>> -> memref<4x128xf32, #tpu.memory_space<any>>
      %1027 = tpu.memref_slice %arg5[%c4_i32_337] : memref<16x!tpu.dma_semaphore, #tpu.memory_space<semaphore_mem>> -> memref<1x!tpu.dma_semaphore, #tpu.memory_space<semaphore_mem>>
      %1028 = tpu.memref_squeeze %1027 : memref<1x!tpu.dma_semaphore, #tpu.memory_space<semaphore_mem>> -> memref<!tpu.dma_semaphore, #tpu.memory_space<semaphore_mem>>
      tpu.enqueue_dma source(%1025 : memref<4x128xf32, #tpu.memory_space<any>>) target(%1026 : memref<4x128xf32, #tpu.memory_space<any>>) target_semaphore(%1028 : memref<!tpu.dma_semaphore, #tpu.memory_space<semaphore_mem>>)
    } else {
    }
    %c64_i32_339 = arith.constant 64 : i32
    %570 = arith.muli %arg0, %c64_i32_339 : i32
    %c37_i32_340 = arith.constant 37 : i32
    %571 = arith.addi %570, %c37_i32_340 : i32
    %572 = arith.cmpi slt, %571, %0 : i32
    %573 = arith.extui %572 : i1 to i32
    %c5_i32_341 = arith.constant 5 : i32
    %c0_i32_342 = arith.constant 0 : i32
    %574 = arith.cmpi ne, %573, %c0_i32_342 : i32
    scf.if %574 {
      %c0_i32_703 = arith.constant 0 : i32
      %1025 = tpu.memref_slice %arg3[%227, %c0_i32_703] : memref<40x128xf32, #tpu.memory_space<any>> -> memref<4x128xf32, #tpu.memory_space<any>>
      %c0_i32_704 = arith.constant 0 : i32
      %1026 = tpu.memref_slice %arg4[%228, %c0_i32_704] : memref<256x128xf32, #tpu.memory_space<any>> -> memref<4x128xf32, #tpu.memory_space<any>>
      %1027 = tpu.memref_slice %arg5[%c5_i32_341] : memref<16x!tpu.dma_semaphore, #tpu.memory_space<semaphore_mem>> -> memref<1x!tpu.dma_semaphore, #tpu.memory_space<semaphore_mem>>
      %1028 = tpu.memref_squeeze %1027 : memref<1x!tpu.dma_semaphore, #tpu.memory_space<semaphore_mem>> -> memref<!tpu.dma_semaphore, #tpu.memory_space<semaphore_mem>>
      tpu.enqueue_dma source(%1025 : memref<4x128xf32, #tpu.memory_space<any>>) target(%1026 : memref<4x128xf32, #tpu.memory_space<any>>) target_semaphore(%1028 : memref<!tpu.dma_semaphore, #tpu.memory_space<semaphore_mem>>)
    } else {
    }
    %c64_i32_343 = arith.constant 64 : i32
    %575 = arith.muli %arg0, %c64_i32_343 : i32
    %c38_i32_344 = arith.constant 38 : i32
    %576 = arith.addi %575, %c38_i32_344 : i32
    %577 = arith.cmpi slt, %576, %0 : i32
    %578 = arith.extui %577 : i1 to i32
    %c6_i32_345 = arith.constant 6 : i32
    %c0_i32_346 = arith.constant 0 : i32
    %579 = arith.cmpi ne, %578, %c0_i32_346 : i32
    scf.if %579 {
      %c0_i32_703 = arith.constant 0 : i32
      %1025 = tpu.memref_slice %arg3[%233, %c0_i32_703] : memref<40x128xf32, #tpu.memory_space<any>> -> memref<4x128xf32, #tpu.memory_space<any>>
      %c0_i32_704 = arith.constant 0 : i32
      %1026 = tpu.memref_slice %arg4[%234, %c0_i32_704] : memref<256x128xf32, #tpu.memory_space<any>> -> memref<4x128xf32, #tpu.memory_space<any>>
      %1027 = tpu.memref_slice %arg5[%c6_i32_345] : memref<16x!tpu.dma_semaphore, #tpu.memory_space<semaphore_mem>> -> memref<1x!tpu.dma_semaphore, #tpu.memory_space<semaphore_mem>>
      %1028 = tpu.memref_squeeze %1027 : memref<1x!tpu.dma_semaphore, #tpu.memory_space<semaphore_mem>> -> memref<!tpu.dma_semaphore, #tpu.memory_space<semaphore_mem>>
      tpu.enqueue_dma source(%1025 : memref<4x128xf32, #tpu.memory_space<any>>) target(%1026 : memref<4x128xf32, #tpu.memory_space<any>>) target_semaphore(%1028 : memref<!tpu.dma_semaphore, #tpu.memory_space<semaphore_mem>>)
    } else {
    }
    %c64_i32_347 = arith.constant 64 : i32
    %580 = arith.muli %arg0, %c64_i32_347 : i32
    %c39_i32_348 = arith.constant 39 : i32
    %581 = arith.addi %580, %c39_i32_348 : i32
    %582 = arith.cmpi slt, %581, %0 : i32
    %583 = arith.extui %582 : i1 to i32
    %c7_i32_349 = arith.constant 7 : i32
    %c0_i32_350 = arith.constant 0 : i32
    %584 = arith.cmpi ne, %583, %c0_i32_350 : i32
    scf.if %584 {
      %c0_i32_703 = arith.constant 0 : i32
      %1025 = tpu.memref_slice %arg3[%239, %c0_i32_703] : memref<40x128xf32, #tpu.memory_space<any>> -> memref<4x128xf32, #tpu.memory_space<any>>
      %c0_i32_704 = arith.constant 0 : i32
      %1026 = tpu.memref_slice %arg4[%240, %c0_i32_704] : memref<256x128xf32, #tpu.memory_space<any>> -> memref<4x128xf32, #tpu.memory_space<any>>
      %1027 = tpu.memref_slice %arg5[%c7_i32_349] : memref<16x!tpu.dma_semaphore, #tpu.memory_space<semaphore_mem>> -> memref<1x!tpu.dma_semaphore, #tpu.memory_space<semaphore_mem>>
      %1028 = tpu.memref_squeeze %1027 : memref<1x!tpu.dma_semaphore, #tpu.memory_space<semaphore_mem>> -> memref<!tpu.dma_semaphore, #tpu.memory_space<semaphore_mem>>
      tpu.enqueue_dma source(%1025 : memref<4x128xf32, #tpu.memory_space<any>>) target(%1026 : memref<4x128xf32, #tpu.memory_space<any>>) target_semaphore(%1028 : memref<!tpu.dma_semaphore, #tpu.memory_space<semaphore_mem>>)
    } else {
    }
    %c64_i32_351 = arith.constant 64 : i32
    %585 = arith.muli %arg0, %c64_i32_351 : i32
    %c40_i32_352 = arith.constant 40 : i32
    %586 = arith.addi %585, %c40_i32_352 : i32
    %587 = arith.cmpi slt, %586, %0 : i32
    %588 = arith.extui %587 : i1 to i32
    %c8_i32_353 = arith.constant 8 : i32
    %c0_i32_354 = arith.constant 0 : i32
    %589 = arith.cmpi ne, %588, %c0_i32_354 : i32
    scf.if %589 {
      %c0_i32_703 = arith.constant 0 : i32
      %1025 = tpu.memref_slice %arg3[%245, %c0_i32_703] : memref<40x128xf32, #tpu.memory_space<any>> -> memref<4x128xf32, #tpu.memory_space<any>>
      %c0_i32_704 = arith.constant 0 : i32
      %1026 = tpu.memref_slice %arg4[%246, %c0_i32_704] : memref<256x128xf32, #tpu.memory_space<any>> -> memref<4x128xf32, #tpu.memory_space<any>>
      %1027 = tpu.memref_slice %arg5[%c8_i32_353] : memref<16x!tpu.dma_semaphore, #tpu.memory_space<semaphore_mem>> -> memref<1x!tpu.dma_semaphore, #tpu.memory_space<semaphore_mem>>
      %1028 = tpu.memref_squeeze %1027 : memref<1x!tpu.dma_semaphore, #tpu.memory_space<semaphore_mem>> -> memref<!tpu.dma_semaphore, #tpu.memory_space<semaphore_mem>>
      tpu.enqueue_dma source(%1025 : memref<4x128xf32, #tpu.memory_space<any>>) target(%1026 : memref<4x128xf32, #tpu.memory_space<any>>) target_semaphore(%1028 : memref<!tpu.dma_semaphore, #tpu.memory_space<semaphore_mem>>)
    } else {
    }
    %c64_i32_355 = arith.constant 64 : i32
    %590 = arith.muli %arg0, %c64_i32_355 : i32
    %c41_i32_356 = arith.constant 41 : i32
    %591 = arith.addi %590, %c41_i32_356 : i32
    %592 = arith.cmpi slt, %591, %0 : i32
    %593 = arith.extui %592 : i1 to i32
    %c9_i32_357 = arith.constant 9 : i32
    %c0_i32_358 = arith.constant 0 : i32
    %594 = arith.cmpi ne, %593, %c0_i32_358 : i32
    scf.if %594 {
      %c0_i32_703 = arith.constant 0 : i32
      %1025 = tpu.memref_slice %arg3[%251, %c0_i32_703] : memref<40x128xf32, #tpu.memory_space<any>> -> memref<4x128xf32, #tpu.memory_space<any>>
      %c0_i32_704 = arith.constant 0 : i32
      %1026 = tpu.memref_slice %arg4[%252, %c0_i32_704] : memref<256x128xf32, #tpu.memory_space<any>> -> memref<4x128xf32, #tpu.memory_space<any>>
      %1027 = tpu.memref_slice %arg5[%c9_i32_357] : memref<16x!tpu.dma_semaphore, #tpu.memory_space<semaphore_mem>> -> memref<1x!tpu.dma_semaphore, #tpu.memory_space<semaphore_mem>>
      %1028 = tpu.memref_squeeze %1027 : memref<1x!tpu.dma_semaphore, #tpu.memory_space<semaphore_mem>> -> memref<!tpu.dma_semaphore, #tpu.memory_space<semaphore_mem>>
      tpu.enqueue_dma source(%1025 : memref<4x128xf32, #tpu.memory_space<any>>) target(%1026 : memref<4x128xf32, #tpu.memory_space<any>>) target_semaphore(%1028 : memref<!tpu.dma_semaphore, #tpu.memory_space<semaphore_mem>>)
    } else {
    }
    %c64_i32_359 = arith.constant 64 : i32
    %595 = arith.muli %arg0, %c64_i32_359 : i32
    %c42_i32_360 = arith.constant 42 : i32
    %596 = arith.addi %595, %c42_i32_360 : i32
    %597 = arith.cmpi slt, %596, %0 : i32
    %598 = arith.extui %597 : i1 to i32
    %c10_i32_361 = arith.constant 10 : i32
    %c0_i32_362 = arith.constant 0 : i32
    %599 = arith.cmpi ne, %598, %c0_i32_362 : i32
    scf.if %599 {
      %c0_i32_703 = arith.constant 0 : i32
      %1025 = tpu.memref_slice %arg3[%257, %c0_i32_703] : memref<40x128xf32, #tpu.memory_space<any>> -> memref<4x128xf32, #tpu.memory_space<any>>
      %c0_i32_704 = arith.constant 0 : i32
      %1026 = tpu.memref_slice %arg4[%258, %c0_i32_704] : memref<256x128xf32, #tpu.memory_space<any>> -> memref<4x128xf32, #tpu.memory_space<any>>
      %1027 = tpu.memref_slice %arg5[%c10_i32_361] : memref<16x!tpu.dma_semaphore, #tpu.memory_space<semaphore_mem>> -> memref<1x!tpu.dma_semaphore, #tpu.memory_space<semaphore_mem>>
      %1028 = tpu.memref_squeeze %1027 : memref<1x!tpu.dma_semaphore, #tpu.memory_space<semaphore_mem>> -> memref<!tpu.dma_semaphore, #tpu.memory_space<semaphore_mem>>
      tpu.enqueue_dma source(%1025 : memref<4x128xf32, #tpu.memory_space<any>>) target(%1026 : memref<4x128xf32, #tpu.memory_space<any>>) target_semaphore(%1028 : memref<!tpu.dma_semaphore, #tpu.memory_space<semaphore_mem>>)
    } else {
    }
    %c64_i32_363 = arith.constant 64 : i32
    %600 = arith.muli %arg0, %c64_i32_363 : i32
    %c43_i32_364 = arith.constant 43 : i32
    %601 = arith.addi %600, %c43_i32_364 : i32
    %602 = arith.cmpi slt, %601, %0 : i32
    %603 = arith.extui %602 : i1 to i32
    %c11_i32_365 = arith.constant 11 : i32
    %c0_i32_366 = arith.constant 0 : i32
    %604 = arith.cmpi ne, %603, %c0_i32_366 : i32
    scf.if %604 {
      %c0_i32_703 = arith.constant 0 : i32
      %1025 = tpu.memref_slice %arg3[%263, %c0_i32_703] : memref<40x128xf32, #tpu.memory_space<any>> -> memref<4x128xf32, #tpu.memory_space<any>>
      %c0_i32_704 = arith.constant 0 : i32
      %1026 = tpu.memref_slice %arg4[%264, %c0_i32_704] : memref<256x128xf32, #tpu.memory_space<any>> -> memref<4x128xf32, #tpu.memory_space<any>>
      %1027 = tpu.memref_slice %arg5[%c11_i32_365] : memref<16x!tpu.dma_semaphore, #tpu.memory_space<semaphore_mem>> -> memref<1x!tpu.dma_semaphore, #tpu.memory_space<semaphore_mem>>
      %1028 = tpu.memref_squeeze %1027 : memref<1x!tpu.dma_semaphore, #tpu.memory_space<semaphore_mem>> -> memref<!tpu.dma_semaphore, #tpu.memory_space<semaphore_mem>>
      tpu.enqueue_dma source(%1025 : memref<4x128xf32, #tpu.memory_space<any>>) target(%1026 : memref<4x128xf32, #tpu.memory_space<any>>) target_semaphore(%1028 : memref<!tpu.dma_semaphore, #tpu.memory_space<semaphore_mem>>)
    } else {
    }
    %c64_i32_367 = arith.constant 64 : i32
    %605 = arith.muli %arg0, %c64_i32_367 : i32
    %c44_i32_368 = arith.constant 44 : i32
    %606 = arith.addi %605, %c44_i32_368 : i32
    %607 = arith.cmpi slt, %606, %0 : i32
    %608 = arith.extui %607 : i1 to i32
    %c12_i32_369 = arith.constant 12 : i32
    %c0_i32_370 = arith.constant 0 : i32
    %609 = arith.cmpi ne, %608, %c0_i32_370 : i32
    scf.if %609 {
      %c0_i32_703 = arith.constant 0 : i32
      %1025 = tpu.memref_slice %arg3[%269, %c0_i32_703] : memref<40x128xf32, #tpu.memory_space<any>> -> memref<4x128xf32, #tpu.memory_space<any>>
      %c0_i32_704 = arith.constant 0 : i32
      %1026 = tpu.memref_slice %arg4[%270, %c0_i32_704] : memref<256x128xf32, #tpu.memory_space<any>> -> memref<4x128xf32, #tpu.memory_space<any>>
      %1027 = tpu.memref_slice %arg5[%c12_i32_369] : memref<16x!tpu.dma_semaphore, #tpu.memory_space<semaphore_mem>> -> memref<1x!tpu.dma_semaphore, #tpu.memory_space<semaphore_mem>>
      %1028 = tpu.memref_squeeze %1027 : memref<1x!tpu.dma_semaphore, #tpu.memory_space<semaphore_mem>> -> memref<!tpu.dma_semaphore, #tpu.memory_space<semaphore_mem>>
      tpu.enqueue_dma source(%1025 : memref<4x128xf32, #tpu.memory_space<any>>) target(%1026 : memref<4x128xf32, #tpu.memory_space<any>>) target_semaphore(%1028 : memref<!tpu.dma_semaphore, #tpu.memory_space<semaphore_mem>>)
    } else {
    }
    %c64_i32_371 = arith.constant 64 : i32
    %610 = arith.muli %arg0, %c64_i32_371 : i32
    %c45_i32_372 = arith.constant 45 : i32
    %611 = arith.addi %610, %c45_i32_372 : i32
    %612 = arith.cmpi slt, %611, %0 : i32
    %613 = arith.extui %612 : i1 to i32
    %c13_i32_373 = arith.constant 13 : i32
    %c0_i32_374 = arith.constant 0 : i32
    %614 = arith.cmpi ne, %613, %c0_i32_374 : i32
    scf.if %614 {
      %c0_i32_703 = arith.constant 0 : i32
      %1025 = tpu.memref_slice %arg3[%275, %c0_i32_703] : memref<40x128xf32, #tpu.memory_space<any>> -> memref<4x128xf32, #tpu.memory_space<any>>
      %c0_i32_704 = arith.constant 0 : i32
      %1026 = tpu.memref_slice %arg4[%276, %c0_i32_704] : memref<256x128xf32, #tpu.memory_space<any>> -> memref<4x128xf32, #tpu.memory_space<any>>
      %1027 = tpu.memref_slice %arg5[%c13_i32_373] : memref<16x!tpu.dma_semaphore, #tpu.memory_space<semaphore_mem>> -> memref<1x!tpu.dma_semaphore, #tpu.memory_space<semaphore_mem>>
      %1028 = tpu.memref_squeeze %1027 : memref<1x!tpu.dma_semaphore, #tpu.memory_space<semaphore_mem>> -> memref<!tpu.dma_semaphore, #tpu.memory_space<semaphore_mem>>
      tpu.enqueue_dma source(%1025 : memref<4x128xf32, #tpu.memory_space<any>>) target(%1026 : memref<4x128xf32, #tpu.memory_space<any>>) target_semaphore(%1028 : memref<!tpu.dma_semaphore, #tpu.memory_space<semaphore_mem>>)
    } else {
    }
    %c64_i32_375 = arith.constant 64 : i32
    %615 = arith.muli %arg0, %c64_i32_375 : i32
    %c46_i32_376 = arith.constant 46 : i32
    %616 = arith.addi %615, %c46_i32_376 : i32
    %617 = arith.cmpi slt, %616, %0 : i32
    %618 = arith.extui %617 : i1 to i32
    %c14_i32_377 = arith.constant 14 : i32
    %c0_i32_378 = arith.constant 0 : i32
    %619 = arith.cmpi ne, %618, %c0_i32_378 : i32
    scf.if %619 {
      %c0_i32_703 = arith.constant 0 : i32
      %1025 = tpu.memref_slice %arg3[%281, %c0_i32_703] : memref<40x128xf32, #tpu.memory_space<any>> -> memref<4x128xf32, #tpu.memory_space<any>>
      %c0_i32_704 = arith.constant 0 : i32
      %1026 = tpu.memref_slice %arg4[%282, %c0_i32_704] : memref<256x128xf32, #tpu.memory_space<any>> -> memref<4x128xf32, #tpu.memory_space<any>>
      %1027 = tpu.memref_slice %arg5[%c14_i32_377] : memref<16x!tpu.dma_semaphore, #tpu.memory_space<semaphore_mem>> -> memref<1x!tpu.dma_semaphore, #tpu.memory_space<semaphore_mem>>
      %1028 = tpu.memref_squeeze %1027 : memref<1x!tpu.dma_semaphore, #tpu.memory_space<semaphore_mem>> -> memref<!tpu.dma_semaphore, #tpu.memory_space<semaphore_mem>>
      tpu.enqueue_dma source(%1025 : memref<4x128xf32, #tpu.memory_space<any>>) target(%1026 : memref<4x128xf32, #tpu.memory_space<any>>) target_semaphore(%1028 : memref<!tpu.dma_semaphore, #tpu.memory_space<semaphore_mem>>)
    } else {
    }
    %c64_i32_379 = arith.constant 64 : i32
    %620 = arith.muli %arg0, %c64_i32_379 : i32
    %c47_i32_380 = arith.constant 47 : i32
    %621 = arith.addi %620, %c47_i32_380 : i32
    %622 = arith.cmpi slt, %621, %0 : i32
    %623 = arith.extui %622 : i1 to i32
    %c15_i32_381 = arith.constant 15 : i32
    %c0_i32_382 = arith.constant 0 : i32
    %624 = arith.cmpi ne, %623, %c0_i32_382 : i32
    scf.if %624 {
      %c0_i32_703 = arith.constant 0 : i32
      %1025 = tpu.memref_slice %arg3[%287, %c0_i32_703] : memref<40x128xf32, #tpu.memory_space<any>> -> memref<4x128xf32, #tpu.memory_space<any>>
      %c0_i32_704 = arith.constant 0 : i32
      %1026 = tpu.memref_slice %arg4[%288, %c0_i32_704] : memref<256x128xf32, #tpu.memory_space<any>> -> memref<4x128xf32, #tpu.memory_space<any>>
      %1027 = tpu.memref_slice %arg5[%c15_i32_381] : memref<16x!tpu.dma_semaphore, #tpu.memory_space<semaphore_mem>> -> memref<1x!tpu.dma_semaphore, #tpu.memory_space<semaphore_mem>>
      %1028 = tpu.memref_squeeze %1027 : memref<1x!tpu.dma_semaphore, #tpu.memory_space<semaphore_mem>> -> memref<!tpu.dma_semaphore, #tpu.memory_space<semaphore_mem>>
      tpu.enqueue_dma source(%1025 : memref<4x128xf32, #tpu.memory_space<any>>) target(%1026 : memref<4x128xf32, #tpu.memory_space<any>>) target_semaphore(%1028 : memref<!tpu.dma_semaphore, #tpu.memory_space<semaphore_mem>>)
    } else {
    }
    %c64_i32_383 = arith.constant 64 : i32
    %625 = arith.muli %arg0, %c64_i32_383 : i32
    %c48_i32_384 = arith.constant 48 : i32
    %626 = arith.addi %625, %c48_i32_384 : i32
    %627 = arith.cmpi slt, %626, %0 : i32
    %628 = arith.extui %627 : i1 to i32
    %c0_i32_385 = arith.constant 0 : i32
    %c0_i32_386 = arith.constant 0 : i32
    %629 = arith.cmpi ne, %628, %c0_i32_386 : i32
    scf.if %629 {
      %c0_i32_703 = arith.constant 0 : i32
      %1025 = tpu.memref_slice %arg3[%293, %c0_i32_703] : memref<40x128xf32, #tpu.memory_space<any>> -> memref<4x128xf32, #tpu.memory_space<any>>
      %c0_i32_704 = arith.constant 0 : i32
      %1026 = tpu.memref_slice %arg4[%294, %c0_i32_704] : memref<256x128xf32, #tpu.memory_space<any>> -> memref<4x128xf32, #tpu.memory_space<any>>
      %1027 = tpu.memref_slice %arg5[%c0_i32_385] : memref<16x!tpu.dma_semaphore, #tpu.memory_space<semaphore_mem>> -> memref<1x!tpu.dma_semaphore, #tpu.memory_space<semaphore_mem>>
      %1028 = tpu.memref_squeeze %1027 : memref<1x!tpu.dma_semaphore, #tpu.memory_space<semaphore_mem>> -> memref<!tpu.dma_semaphore, #tpu.memory_space<semaphore_mem>>
      tpu.enqueue_dma source(%1025 : memref<4x128xf32, #tpu.memory_space<any>>) target(%1026 : memref<4x128xf32, #tpu.memory_space<any>>) target_semaphore(%1028 : memref<!tpu.dma_semaphore, #tpu.memory_space<semaphore_mem>>)
    } else {
    }
    %c64_i32_387 = arith.constant 64 : i32
    %630 = arith.muli %arg0, %c64_i32_387 : i32
    %c49_i32_388 = arith.constant 49 : i32
    %631 = arith.addi %630, %c49_i32_388 : i32
    %632 = arith.cmpi slt, %631, %0 : i32
    %633 = arith.extui %632 : i1 to i32
    %c1_i32_389 = arith.constant 1 : i32
    %c0_i32_390 = arith.constant 0 : i32
    %634 = arith.cmpi ne, %633, %c0_i32_390 : i32
    scf.if %634 {
      %c0_i32_703 = arith.constant 0 : i32
      %1025 = tpu.memref_slice %arg3[%299, %c0_i32_703] : memref<40x128xf32, #tpu.memory_space<any>> -> memref<4x128xf32, #tpu.memory_space<any>>
      %c0_i32_704 = arith.constant 0 : i32
      %1026 = tpu.memref_slice %arg4[%300, %c0_i32_704] : memref<256x128xf32, #tpu.memory_space<any>> -> memref<4x128xf32, #tpu.memory_space<any>>
      %1027 = tpu.memref_slice %arg5[%c1_i32_389] : memref<16x!tpu.dma_semaphore, #tpu.memory_space<semaphore_mem>> -> memref<1x!tpu.dma_semaphore, #tpu.memory_space<semaphore_mem>>
      %1028 = tpu.memref_squeeze %1027 : memref<1x!tpu.dma_semaphore, #tpu.memory_space<semaphore_mem>> -> memref<!tpu.dma_semaphore, #tpu.memory_space<semaphore_mem>>
      tpu.enqueue_dma source(%1025 : memref<4x128xf32, #tpu.memory_space<any>>) target(%1026 : memref<4x128xf32, #tpu.memory_space<any>>) target_semaphore(%1028 : memref<!tpu.dma_semaphore, #tpu.memory_space<semaphore_mem>>)
    } else {
    }
    %c64_i32_391 = arith.constant 64 : i32
    %635 = arith.muli %arg0, %c64_i32_391 : i32
    %c50_i32_392 = arith.constant 50 : i32
    %636 = arith.addi %635, %c50_i32_392 : i32
    %637 = arith.cmpi slt, %636, %0 : i32
    %638 = arith.extui %637 : i1 to i32
    %c2_i32_393 = arith.constant 2 : i32
    %c0_i32_394 = arith.constant 0 : i32
    %639 = arith.cmpi ne, %638, %c0_i32_394 : i32
    scf.if %639 {
      %c0_i32_703 = arith.constant 0 : i32
      %1025 = tpu.memref_slice %arg3[%305, %c0_i32_703] : memref<40x128xf32, #tpu.memory_space<any>> -> memref<4x128xf32, #tpu.memory_space<any>>
      %c0_i32_704 = arith.constant 0 : i32
      %1026 = tpu.memref_slice %arg4[%306, %c0_i32_704] : memref<256x128xf32, #tpu.memory_space<any>> -> memref<4x128xf32, #tpu.memory_space<any>>
      %1027 = tpu.memref_slice %arg5[%c2_i32_393] : memref<16x!tpu.dma_semaphore, #tpu.memory_space<semaphore_mem>> -> memref<1x!tpu.dma_semaphore, #tpu.memory_space<semaphore_mem>>
      %1028 = tpu.memref_squeeze %1027 : memref<1x!tpu.dma_semaphore, #tpu.memory_space<semaphore_mem>> -> memref<!tpu.dma_semaphore, #tpu.memory_space<semaphore_mem>>
      tpu.enqueue_dma source(%1025 : memref<4x128xf32, #tpu.memory_space<any>>) target(%1026 : memref<4x128xf32, #tpu.memory_space<any>>) target_semaphore(%1028 : memref<!tpu.dma_semaphore, #tpu.memory_space<semaphore_mem>>)
    } else {
    }
    %c64_i32_395 = arith.constant 64 : i32
    %640 = arith.muli %arg0, %c64_i32_395 : i32
    %c51_i32_396 = arith.constant 51 : i32
    %641 = arith.addi %640, %c51_i32_396 : i32
    %642 = arith.cmpi slt, %641, %0 : i32
    %643 = arith.extui %642 : i1 to i32
    %c3_i32_397 = arith.constant 3 : i32
    %c0_i32_398 = arith.constant 0 : i32
    %644 = arith.cmpi ne, %643, %c0_i32_398 : i32
    scf.if %644 {
      %c0_i32_703 = arith.constant 0 : i32
      %1025 = tpu.memref_slice %arg3[%311, %c0_i32_703] : memref<40x128xf32, #tpu.memory_space<any>> -> memref<4x128xf32, #tpu.memory_space<any>>
      %c0_i32_704 = arith.constant 0 : i32
      %1026 = tpu.memref_slice %arg4[%312, %c0_i32_704] : memref<256x128xf32, #tpu.memory_space<any>> -> memref<4x128xf32, #tpu.memory_space<any>>
      %1027 = tpu.memref_slice %arg5[%c3_i32_397] : memref<16x!tpu.dma_semaphore, #tpu.memory_space<semaphore_mem>> -> memref<1x!tpu.dma_semaphore, #tpu.memory_space<semaphore_mem>>
      %1028 = tpu.memref_squeeze %1027 : memref<1x!tpu.dma_semaphore, #tpu.memory_space<semaphore_mem>> -> memref<!tpu.dma_semaphore, #tpu.memory_space<semaphore_mem>>
      tpu.enqueue_dma source(%1025 : memref<4x128xf32, #tpu.memory_space<any>>) target(%1026 : memref<4x128xf32, #tpu.memory_space<any>>) target_semaphore(%1028 : memref<!tpu.dma_semaphore, #tpu.memory_space<semaphore_mem>>)
    } else {
    }
    %c64_i32_399 = arith.constant 64 : i32
    %645 = arith.muli %arg0, %c64_i32_399 : i32
    %c52_i32_400 = arith.constant 52 : i32
    %646 = arith.addi %645, %c52_i32_400 : i32
    %647 = arith.cmpi slt, %646, %0 : i32
    %648 = arith.extui %647 : i1 to i32
    %c4_i32_401 = arith.constant 4 : i32
    %c0_i32_402 = arith.constant 0 : i32
    %649 = arith.cmpi ne, %648, %c0_i32_402 : i32
    scf.if %649 {
      %c0_i32_703 = arith.constant 0 : i32
      %1025 = tpu.memref_slice %arg3[%317, %c0_i32_703] : memref<40x128xf32, #tpu.memory_space<any>> -> memref<4x128xf32, #tpu.memory_space<any>>
      %c0_i32_704 = arith.constant 0 : i32
      %1026 = tpu.memref_slice %arg4[%318, %c0_i32_704] : memref<256x128xf32, #tpu.memory_space<any>> -> memref<4x128xf32, #tpu.memory_space<any>>
      %1027 = tpu.memref_slice %arg5[%c4_i32_401] : memref<16x!tpu.dma_semaphore, #tpu.memory_space<semaphore_mem>> -> memref<1x!tpu.dma_semaphore, #tpu.memory_space<semaphore_mem>>
      %1028 = tpu.memref_squeeze %1027 : memref<1x!tpu.dma_semaphore, #tpu.memory_space<semaphore_mem>> -> memref<!tpu.dma_semaphore, #tpu.memory_space<semaphore_mem>>
      tpu.enqueue_dma source(%1025 : memref<4x128xf32, #tpu.memory_space<any>>) target(%1026 : memref<4x128xf32, #tpu.memory_space<any>>) target_semaphore(%1028 : memref<!tpu.dma_semaphore, #tpu.memory_space<semaphore_mem>>)
    } else {
    }
    %c64_i32_403 = arith.constant 64 : i32
    %650 = arith.muli %arg0, %c64_i32_403 : i32
    %c53_i32_404 = arith.constant 53 : i32
    %651 = arith.addi %650, %c53_i32_404 : i32
    %652 = arith.cmpi slt, %651, %0 : i32
    %653 = arith.extui %652 : i1 to i32
    %c5_i32_405 = arith.constant 5 : i32
    %c0_i32_406 = arith.constant 0 : i32
    %654 = arith.cmpi ne, %653, %c0_i32_406 : i32
    scf.if %654 {
      %c0_i32_703 = arith.constant 0 : i32
      %1025 = tpu.memref_slice %arg3[%323, %c0_i32_703] : memref<40x128xf32, #tpu.memory_space<any>> -> memref<4x128xf32, #tpu.memory_space<any>>
      %c0_i32_704 = arith.constant 0 : i32
      %1026 = tpu.memref_slice %arg4[%324, %c0_i32_704] : memref<256x128xf32, #tpu.memory_space<any>> -> memref<4x128xf32, #tpu.memory_space<any>>
      %1027 = tpu.memref_slice %arg5[%c5_i32_405] : memref<16x!tpu.dma_semaphore, #tpu.memory_space<semaphore_mem>> -> memref<1x!tpu.dma_semaphore, #tpu.memory_space<semaphore_mem>>
      %1028 = tpu.memref_squeeze %1027 : memref<1x!tpu.dma_semaphore, #tpu.memory_space<semaphore_mem>> -> memref<!tpu.dma_semaphore, #tpu.memory_space<semaphore_mem>>
      tpu.enqueue_dma source(%1025 : memref<4x128xf32, #tpu.memory_space<any>>) target(%1026 : memref<4x128xf32, #tpu.memory_space<any>>) target_semaphore(%1028 : memref<!tpu.dma_semaphore, #tpu.memory_space<semaphore_mem>>)
    } else {
    }
    %c64_i32_407 = arith.constant 64 : i32
    %655 = arith.muli %arg0, %c64_i32_407 : i32
    %c54_i32_408 = arith.constant 54 : i32
    %656 = arith.addi %655, %c54_i32_408 : i32
    %657 = arith.cmpi slt, %656, %0 : i32
    %658 = arith.extui %657 : i1 to i32
    %c6_i32_409 = arith.constant 6 : i32
    %c0_i32_410 = arith.constant 0 : i32
    %659 = arith.cmpi ne, %658, %c0_i32_410 : i32
    scf.if %659 {
      %c0_i32_703 = arith.constant 0 : i32
      %1025 = tpu.memref_slice %arg3[%329, %c0_i32_703] : memref<40x128xf32, #tpu.memory_space<any>> -> memref<4x128xf32, #tpu.memory_space<any>>
      %c0_i32_704 = arith.constant 0 : i32
      %1026 = tpu.memref_slice %arg4[%330, %c0_i32_704] : memref<256x128xf32, #tpu.memory_space<any>> -> memref<4x128xf32, #tpu.memory_space<any>>
      %1027 = tpu.memref_slice %arg5[%c6_i32_409] : memref<16x!tpu.dma_semaphore, #tpu.memory_space<semaphore_mem>> -> memref<1x!tpu.dma_semaphore, #tpu.memory_space<semaphore_mem>>
      %1028 = tpu.memref_squeeze %1027 : memref<1x!tpu.dma_semaphore, #tpu.memory_space<semaphore_mem>> -> memref<!tpu.dma_semaphore, #tpu.memory_space<semaphore_mem>>
      tpu.enqueue_dma source(%1025 : memref<4x128xf32, #tpu.memory_space<any>>) target(%1026 : memref<4x128xf32, #tpu.memory_space<any>>) target_semaphore(%1028 : memref<!tpu.dma_semaphore, #tpu.memory_space<semaphore_mem>>)
    } else {
    }
    %c64_i32_411 = arith.constant 64 : i32
    %660 = arith.muli %arg0, %c64_i32_411 : i32
    %c55_i32_412 = arith.constant 55 : i32
    %661 = arith.addi %660, %c55_i32_412 : i32
    %662 = arith.cmpi slt, %661, %0 : i32
    %663 = arith.extui %662 : i1 to i32
    %c7_i32_413 = arith.constant 7 : i32
    %c0_i32_414 = arith.constant 0 : i32
    %664 = arith.cmpi ne, %663, %c0_i32_414 : i32
    scf.if %664 {
      %c0_i32_703 = arith.constant 0 : i32
      %1025 = tpu.memref_slice %arg3[%335, %c0_i32_703] : memref<40x128xf32, #tpu.memory_space<any>> -> memref<4x128xf32, #tpu.memory_space<any>>
      %c0_i32_704 = arith.constant 0 : i32
      %1026 = tpu.memref_slice %arg4[%336, %c0_i32_704] : memref<256x128xf32, #tpu.memory_space<any>> -> memref<4x128xf32, #tpu.memory_space<any>>
      %1027 = tpu.memref_slice %arg5[%c7_i32_413] : memref<16x!tpu.dma_semaphore, #tpu.memory_space<semaphore_mem>> -> memref<1x!tpu.dma_semaphore, #tpu.memory_space<semaphore_mem>>
      %1028 = tpu.memref_squeeze %1027 : memref<1x!tpu.dma_semaphore, #tpu.memory_space<semaphore_mem>> -> memref<!tpu.dma_semaphore, #tpu.memory_space<semaphore_mem>>
      tpu.enqueue_dma source(%1025 : memref<4x128xf32, #tpu.memory_space<any>>) target(%1026 : memref<4x128xf32, #tpu.memory_space<any>>) target_semaphore(%1028 : memref<!tpu.dma_semaphore, #tpu.memory_space<semaphore_mem>>)
    } else {
    }
    %c64_i32_415 = arith.constant 64 : i32
    %665 = arith.muli %arg0, %c64_i32_415 : i32
    %c56_i32_416 = arith.constant 56 : i32
    %666 = arith.addi %665, %c56_i32_416 : i32
    %667 = arith.cmpi slt, %666, %0 : i32
    %668 = arith.extui %667 : i1 to i32
    %c8_i32_417 = arith.constant 8 : i32
    %c0_i32_418 = arith.constant 0 : i32
    %669 = arith.cmpi ne, %668, %c0_i32_418 : i32
    scf.if %669 {
      %c0_i32_703 = arith.constant 0 : i32
      %1025 = tpu.memref_slice %arg3[%341, %c0_i32_703] : memref<40x128xf32, #tpu.memory_space<any>> -> memref<4x128xf32, #tpu.memory_space<any>>
      %c0_i32_704 = arith.constant 0 : i32
      %1026 = tpu.memref_slice %arg4[%342, %c0_i32_704] : memref<256x128xf32, #tpu.memory_space<any>> -> memref<4x128xf32, #tpu.memory_space<any>>
      %1027 = tpu.memref_slice %arg5[%c8_i32_417] : memref<16x!tpu.dma_semaphore, #tpu.memory_space<semaphore_mem>> -> memref<1x!tpu.dma_semaphore, #tpu.memory_space<semaphore_mem>>
      %1028 = tpu.memref_squeeze %1027 : memref<1x!tpu.dma_semaphore, #tpu.memory_space<semaphore_mem>> -> memref<!tpu.dma_semaphore, #tpu.memory_space<semaphore_mem>>
      tpu.enqueue_dma source(%1025 : memref<4x128xf32, #tpu.memory_space<any>>) target(%1026 : memref<4x128xf32, #tpu.memory_space<any>>) target_semaphore(%1028 : memref<!tpu.dma_semaphore, #tpu.memory_space<semaphore_mem>>)
    } else {
    }
    %c64_i32_419 = arith.constant 64 : i32
    %670 = arith.muli %arg0, %c64_i32_419 : i32
    %c57_i32_420 = arith.constant 57 : i32
    %671 = arith.addi %670, %c57_i32_420 : i32
    %672 = arith.cmpi slt, %671, %0 : i32
    %673 = arith.extui %672 : i1 to i32
    %c9_i32_421 = arith.constant 9 : i32
    %c0_i32_422 = arith.constant 0 : i32
    %674 = arith.cmpi ne, %673, %c0_i32_422 : i32
    scf.if %674 {
      %c0_i32_703 = arith.constant 0 : i32
      %1025 = tpu.memref_slice %arg3[%347, %c0_i32_703] : memref<40x128xf32, #tpu.memory_space<any>> -> memref<4x128xf32, #tpu.memory_space<any>>
      %c0_i32_704 = arith.constant 0 : i32
      %1026 = tpu.memref_slice %arg4[%348, %c0_i32_704] : memref<256x128xf32, #tpu.memory_space<any>> -> memref<4x128xf32, #tpu.memory_space<any>>
      %1027 = tpu.memref_slice %arg5[%c9_i32_421] : memref<16x!tpu.dma_semaphore, #tpu.memory_space<semaphore_mem>> -> memref<1x!tpu.dma_semaphore, #tpu.memory_space<semaphore_mem>>
      %1028 = tpu.memref_squeeze %1027 : memref<1x!tpu.dma_semaphore, #tpu.memory_space<semaphore_mem>> -> memref<!tpu.dma_semaphore, #tpu.memory_space<semaphore_mem>>
      tpu.enqueue_dma source(%1025 : memref<4x128xf32, #tpu.memory_space<any>>) target(%1026 : memref<4x128xf32, #tpu.memory_space<any>>) target_semaphore(%1028 : memref<!tpu.dma_semaphore, #tpu.memory_space<semaphore_mem>>)
    } else {
    }
    %c64_i32_423 = arith.constant 64 : i32
    %675 = arith.muli %arg0, %c64_i32_423 : i32
    %c58_i32_424 = arith.constant 58 : i32
    %676 = arith.addi %675, %c58_i32_424 : i32
    %677 = arith.cmpi slt, %676, %0 : i32
    %678 = arith.extui %677 : i1 to i32
    %c10_i32_425 = arith.constant 10 : i32
    %c0_i32_426 = arith.constant 0 : i32
    %679 = arith.cmpi ne, %678, %c0_i32_426 : i32
    scf.if %679 {
      %c0_i32_703 = arith.constant 0 : i32
      %1025 = tpu.memref_slice %arg3[%353, %c0_i32_703] : memref<40x128xf32, #tpu.memory_space<any>> -> memref<4x128xf32, #tpu.memory_space<any>>
      %c0_i32_704 = arith.constant 0 : i32
      %1026 = tpu.memref_slice %arg4[%354, %c0_i32_704] : memref<256x128xf32, #tpu.memory_space<any>> -> memref<4x128xf32, #tpu.memory_space<any>>
      %1027 = tpu.memref_slice %arg5[%c10_i32_425] : memref<16x!tpu.dma_semaphore, #tpu.memory_space<semaphore_mem>> -> memref<1x!tpu.dma_semaphore, #tpu.memory_space<semaphore_mem>>
      %1028 = tpu.memref_squeeze %1027 : memref<1x!tpu.dma_semaphore, #tpu.memory_space<semaphore_mem>> -> memref<!tpu.dma_semaphore, #tpu.memory_space<semaphore_mem>>
      tpu.enqueue_dma source(%1025 : memref<4x128xf32, #tpu.memory_space<any>>) target(%1026 : memref<4x128xf32, #tpu.memory_space<any>>) target_semaphore(%1028 : memref<!tpu.dma_semaphore, #tpu.memory_space<semaphore_mem>>)
    } else {
    }
    %c64_i32_427 = arith.constant 64 : i32
    %680 = arith.muli %arg0, %c64_i32_427 : i32
    %c59_i32_428 = arith.constant 59 : i32
    %681 = arith.addi %680, %c59_i32_428 : i32
    %682 = arith.cmpi slt, %681, %0 : i32
    %683 = arith.extui %682 : i1 to i32
    %c11_i32_429 = arith.constant 11 : i32
    %c0_i32_430 = arith.constant 0 : i32
    %684 = arith.cmpi ne, %683, %c0_i32_430 : i32
    scf.if %684 {
      %c0_i32_703 = arith.constant 0 : i32
      %1025 = tpu.memref_slice %arg3[%359, %c0_i32_703] : memref<40x128xf32, #tpu.memory_space<any>> -> memref<4x128xf32, #tpu.memory_space<any>>
      %c0_i32_704 = arith.constant 0 : i32
      %1026 = tpu.memref_slice %arg4[%360, %c0_i32_704] : memref<256x128xf32, #tpu.memory_space<any>> -> memref<4x128xf32, #tpu.memory_space<any>>
      %1027 = tpu.memref_slice %arg5[%c11_i32_429] : memref<16x!tpu.dma_semaphore, #tpu.memory_space<semaphore_mem>> -> memref<1x!tpu.dma_semaphore, #tpu.memory_space<semaphore_mem>>
      %1028 = tpu.memref_squeeze %1027 : memref<1x!tpu.dma_semaphore, #tpu.memory_space<semaphore_mem>> -> memref<!tpu.dma_semaphore, #tpu.memory_space<semaphore_mem>>
      tpu.enqueue_dma source(%1025 : memref<4x128xf32, #tpu.memory_space<any>>) target(%1026 : memref<4x128xf32, #tpu.memory_space<any>>) target_semaphore(%1028 : memref<!tpu.dma_semaphore, #tpu.memory_space<semaphore_mem>>)
    } else {
    }
    %c64_i32_431 = arith.constant 64 : i32
    %685 = arith.muli %arg0, %c64_i32_431 : i32
    %c60_i32_432 = arith.constant 60 : i32
    %686 = arith.addi %685, %c60_i32_432 : i32
    %687 = arith.cmpi slt, %686, %0 : i32
    %688 = arith.extui %687 : i1 to i32
    %c12_i32_433 = arith.constant 12 : i32
    %c0_i32_434 = arith.constant 0 : i32
    %689 = arith.cmpi ne, %688, %c0_i32_434 : i32
    scf.if %689 {
      %c0_i32_703 = arith.constant 0 : i32
      %1025 = tpu.memref_slice %arg3[%365, %c0_i32_703] : memref<40x128xf32, #tpu.memory_space<any>> -> memref<4x128xf32, #tpu.memory_space<any>>
      %c0_i32_704 = arith.constant 0 : i32
      %1026 = tpu.memref_slice %arg4[%366, %c0_i32_704] : memref<256x128xf32, #tpu.memory_space<any>> -> memref<4x128xf32, #tpu.memory_space<any>>
      %1027 = tpu.memref_slice %arg5[%c12_i32_433] : memref<16x!tpu.dma_semaphore, #tpu.memory_space<semaphore_mem>> -> memref<1x!tpu.dma_semaphore, #tpu.memory_space<semaphore_mem>>
      %1028 = tpu.memref_squeeze %1027 : memref<1x!tpu.dma_semaphore, #tpu.memory_space<semaphore_mem>> -> memref<!tpu.dma_semaphore, #tpu.memory_space<semaphore_mem>>
      tpu.enqueue_dma source(%1025 : memref<4x128xf32, #tpu.memory_space<any>>) target(%1026 : memref<4x128xf32, #tpu.memory_space<any>>) target_semaphore(%1028 : memref<!tpu.dma_semaphore, #tpu.memory_space<semaphore_mem>>)
    } else {
    }
    %c64_i32_435 = arith.constant 64 : i32
    %690 = arith.muli %arg0, %c64_i32_435 : i32
    %c61_i32_436 = arith.constant 61 : i32
    %691 = arith.addi %690, %c61_i32_436 : i32
    %692 = arith.cmpi slt, %691, %0 : i32
    %693 = arith.extui %692 : i1 to i32
    %c13_i32_437 = arith.constant 13 : i32
    %c0_i32_438 = arith.constant 0 : i32
    %694 = arith.cmpi ne, %693, %c0_i32_438 : i32
    scf.if %694 {
      %c0_i32_703 = arith.constant 0 : i32
      %1025 = tpu.memref_slice %arg3[%371, %c0_i32_703] : memref<40x128xf32, #tpu.memory_space<any>> -> memref<4x128xf32, #tpu.memory_space<any>>
      %c0_i32_704 = arith.constant 0 : i32
      %1026 = tpu.memref_slice %arg4[%372, %c0_i32_704] : memref<256x128xf32, #tpu.memory_space<any>> -> memref<4x128xf32, #tpu.memory_space<any>>
      %1027 = tpu.memref_slice %arg5[%c13_i32_437] : memref<16x!tpu.dma_semaphore, #tpu.memory_space<semaphore_mem>> -> memref<1x!tpu.dma_semaphore, #tpu.memory_space<semaphore_mem>>
      %1028 = tpu.memref_squeeze %1027 : memref<1x!tpu.dma_semaphore, #tpu.memory_space<semaphore_mem>> -> memref<!tpu.dma_semaphore, #tpu.memory_space<semaphore_mem>>
      tpu.enqueue_dma source(%1025 : memref<4x128xf32, #tpu.memory_space<any>>) target(%1026 : memref<4x128xf32, #tpu.memory_space<any>>) target_semaphore(%1028 : memref<!tpu.dma_semaphore, #tpu.memory_space<semaphore_mem>>)
    } else {
    }
    %c64_i32_439 = arith.constant 64 : i32
    %695 = arith.muli %arg0, %c64_i32_439 : i32
    %c62_i32_440 = arith.constant 62 : i32
    %696 = arith.addi %695, %c62_i32_440 : i32
    %697 = arith.cmpi slt, %696, %0 : i32
    %698 = arith.extui %697 : i1 to i32
    %c14_i32_441 = arith.constant 14 : i32
    %c0_i32_442 = arith.constant 0 : i32
    %699 = arith.cmpi ne, %698, %c0_i32_442 : i32
    scf.if %699 {
      %c0_i32_703 = arith.constant 0 : i32
      %1025 = tpu.memref_slice %arg3[%377, %c0_i32_703] : memref<40x128xf32, #tpu.memory_space<any>> -> memref<4x128xf32, #tpu.memory_space<any>>
      %c0_i32_704 = arith.constant 0 : i32
      %1026 = tpu.memref_slice %arg4[%378, %c0_i32_704] : memref<256x128xf32, #tpu.memory_space<any>> -> memref<4x128xf32, #tpu.memory_space<any>>
      %1027 = tpu.memref_slice %arg5[%c14_i32_441] : memref<16x!tpu.dma_semaphore, #tpu.memory_space<semaphore_mem>> -> memref<1x!tpu.dma_semaphore, #tpu.memory_space<semaphore_mem>>
      %1028 = tpu.memref_squeeze %1027 : memref<1x!tpu.dma_semaphore, #tpu.memory_space<semaphore_mem>> -> memref<!tpu.dma_semaphore, #tpu.memory_space<semaphore_mem>>
      tpu.enqueue_dma source(%1025 : memref<4x128xf32, #tpu.memory_space<any>>) target(%1026 : memref<4x128xf32, #tpu.memory_space<any>>) target_semaphore(%1028 : memref<!tpu.dma_semaphore, #tpu.memory_space<semaphore_mem>>)
    } else {
    }
    %c64_i32_443 = arith.constant 64 : i32
    %700 = arith.muli %arg0, %c64_i32_443 : i32
    %c63_i32_444 = arith.constant 63 : i32
    %701 = arith.addi %700, %c63_i32_444 : i32
    %702 = arith.cmpi slt, %701, %0 : i32
    %703 = arith.extui %702 : i1 to i32
    %c15_i32_445 = arith.constant 15 : i32
    %c0_i32_446 = arith.constant 0 : i32
    %704 = arith.cmpi ne, %703, %c0_i32_446 : i32
    scf.if %704 {
      %c0_i32_703 = arith.constant 0 : i32
      %1025 = tpu.memref_slice %arg3[%383, %c0_i32_703] : memref<40x128xf32, #tpu.memory_space<any>> -> memref<4x128xf32, #tpu.memory_space<any>>
      %c0_i32_704 = arith.constant 0 : i32
      %1026 = tpu.memref_slice %arg4[%384, %c0_i32_704] : memref<256x128xf32, #tpu.memory_space<any>> -> memref<4x128xf32, #tpu.memory_space<any>>
      %1027 = tpu.memref_slice %arg5[%c15_i32_445] : memref<16x!tpu.dma_semaphore, #tpu.memory_space<semaphore_mem>> -> memref<1x!tpu.dma_semaphore, #tpu.memory_space<semaphore_mem>>
      %1028 = tpu.memref_squeeze %1027 : memref<1x!tpu.dma_semaphore, #tpu.memory_space<semaphore_mem>> -> memref<!tpu.dma_semaphore, #tpu.memory_space<semaphore_mem>>
      tpu.enqueue_dma source(%1025 : memref<4x128xf32, #tpu.memory_space<any>>) target(%1026 : memref<4x128xf32, #tpu.memory_space<any>>) target_semaphore(%1028 : memref<!tpu.dma_semaphore, #tpu.memory_space<semaphore_mem>>)
    } else {
    }
    %c64_i32_447 = arith.constant 64 : i32
    %705 = arith.muli %arg0, %c64_i32_447 : i32
    %c0_i32_448 = arith.constant 0 : i32
    %706 = arith.addi %705, %c0_i32_448 : i32
    %707 = arith.cmpi slt, %706, %0 : i32
    %708 = arith.extui %707 : i1 to i32
    %c0_i32_449 = arith.constant 0 : i32
    %c0_i32_450 = arith.constant 0 : i32
    %709 = arith.cmpi ne, %708, %c0_i32_450 : i32
    scf.if %709 {
      %c0_i32_703 = arith.constant 0 : i32
      %1025 = tpu.memref_slice %arg3[%5, %c0_i32_703] : memref<40x128xf32, #tpu.memory_space<any>> -> memref<4x128xf32, #tpu.memory_space<any>>
      %c0_i32_704 = arith.constant 0 : i32
      %1026 = tpu.memref_slice %arg4[%6, %c0_i32_704] : memref<256x128xf32, #tpu.memory_space<any>> -> memref<4x128xf32, #tpu.memory_space<any>>
      %1027 = tpu.memref_slice %arg5[%c0_i32_449] : memref<16x!tpu.dma_semaphore, #tpu.memory_space<semaphore_mem>> -> memref<1x!tpu.dma_semaphore, #tpu.memory_space<semaphore_mem>>
      %1028 = tpu.memref_squeeze %1027 : memref<1x!tpu.dma_semaphore, #tpu.memory_space<semaphore_mem>> -> memref<!tpu.dma_semaphore, #tpu.memory_space<semaphore_mem>>
      tpu.wait_dma2 semaphore(%1028 : memref<!tpu.dma_semaphore, #tpu.memory_space<semaphore_mem>>) src(%1025 : memref<4x128xf32, #tpu.memory_space<any>>) dst(%1026 : memref<4x128xf32, #tpu.memory_space<any>>)
    } else {
    }
    %c64_i32_451 = arith.constant 64 : i32
    %710 = arith.muli %arg0, %c64_i32_451 : i32
    %c1_i32_452 = arith.constant 1 : i32
    %711 = arith.addi %710, %c1_i32_452 : i32
    %712 = arith.cmpi slt, %711, %0 : i32
    %713 = arith.extui %712 : i1 to i32
    %c1_i32_453 = arith.constant 1 : i32
    %c0_i32_454 = arith.constant 0 : i32
    %714 = arith.cmpi ne, %713, %c0_i32_454 : i32
    scf.if %714 {
      %c0_i32_703 = arith.constant 0 : i32
      %1025 = tpu.memref_slice %arg3[%11, %c0_i32_703] : memref<40x128xf32, #tpu.memory_space<any>> -> memref<4x128xf32, #tpu.memory_space<any>>
      %c0_i32_704 = arith.constant 0 : i32
      %1026 = tpu.memref_slice %arg4[%12, %c0_i32_704] : memref<256x128xf32, #tpu.memory_space<any>> -> memref<4x128xf32, #tpu.memory_space<any>>
      %1027 = tpu.memref_slice %arg5[%c1_i32_453] : memref<16x!tpu.dma_semaphore, #tpu.memory_space<semaphore_mem>> -> memref<1x!tpu.dma_semaphore, #tpu.memory_space<semaphore_mem>>
      %1028 = tpu.memref_squeeze %1027 : memref<1x!tpu.dma_semaphore, #tpu.memory_space<semaphore_mem>> -> memref<!tpu.dma_semaphore, #tpu.memory_space<semaphore_mem>>
      tpu.wait_dma2 semaphore(%1028 : memref<!tpu.dma_semaphore, #tpu.memory_space<semaphore_mem>>) src(%1025 : memref<4x128xf32, #tpu.memory_space<any>>) dst(%1026 : memref<4x128xf32, #tpu.memory_space<any>>)
    } else {
    }
    %c64_i32_455 = arith.constant 64 : i32
    %715 = arith.muli %arg0, %c64_i32_455 : i32
    %c2_i32_456 = arith.constant 2 : i32
    %716 = arith.addi %715, %c2_i32_456 : i32
    %717 = arith.cmpi slt, %716, %0 : i32
    %718 = arith.extui %717 : i1 to i32
    %c2_i32_457 = arith.constant 2 : i32
    %c0_i32_458 = arith.constant 0 : i32
    %719 = arith.cmpi ne, %718, %c0_i32_458 : i32
    scf.if %719 {
      %c0_i32_703 = arith.constant 0 : i32
      %1025 = tpu.memref_slice %arg3[%17, %c0_i32_703] : memref<40x128xf32, #tpu.memory_space<any>> -> memref<4x128xf32, #tpu.memory_space<any>>
      %c0_i32_704 = arith.constant 0 : i32
      %1026 = tpu.memref_slice %arg4[%18, %c0_i32_704] : memref<256x128xf32, #tpu.memory_space<any>> -> memref<4x128xf32, #tpu.memory_space<any>>
      %1027 = tpu.memref_slice %arg5[%c2_i32_457] : memref<16x!tpu.dma_semaphore, #tpu.memory_space<semaphore_mem>> -> memref<1x!tpu.dma_semaphore, #tpu.memory_space<semaphore_mem>>
      %1028 = tpu.memref_squeeze %1027 : memref<1x!tpu.dma_semaphore, #tpu.memory_space<semaphore_mem>> -> memref<!tpu.dma_semaphore, #tpu.memory_space<semaphore_mem>>
      tpu.wait_dma2 semaphore(%1028 : memref<!tpu.dma_semaphore, #tpu.memory_space<semaphore_mem>>) src(%1025 : memref<4x128xf32, #tpu.memory_space<any>>) dst(%1026 : memref<4x128xf32, #tpu.memory_space<any>>)
    } else {
    }
    %c64_i32_459 = arith.constant 64 : i32
    %720 = arith.muli %arg0, %c64_i32_459 : i32
    %c3_i32_460 = arith.constant 3 : i32
    %721 = arith.addi %720, %c3_i32_460 : i32
    %722 = arith.cmpi slt, %721, %0 : i32
    %723 = arith.extui %722 : i1 to i32
    %c3_i32_461 = arith.constant 3 : i32
    %c0_i32_462 = arith.constant 0 : i32
    %724 = arith.cmpi ne, %723, %c0_i32_462 : i32
    scf.if %724 {
      %c0_i32_703 = arith.constant 0 : i32
      %1025 = tpu.memref_slice %arg3[%23, %c0_i32_703] : memref<40x128xf32, #tpu.memory_space<any>> -> memref<4x128xf32, #tpu.memory_space<any>>
      %c0_i32_704 = arith.constant 0 : i32
      %1026 = tpu.memref_slice %arg4[%24, %c0_i32_704] : memref<256x128xf32, #tpu.memory_space<any>> -> memref<4x128xf32, #tpu.memory_space<any>>
      %1027 = tpu.memref_slice %arg5[%c3_i32_461] : memref<16x!tpu.dma_semaphore, #tpu.memory_space<semaphore_mem>> -> memref<1x!tpu.dma_semaphore, #tpu.memory_space<semaphore_mem>>
      %1028 = tpu.memref_squeeze %1027 : memref<1x!tpu.dma_semaphore, #tpu.memory_space<semaphore_mem>> -> memref<!tpu.dma_semaphore, #tpu.memory_space<semaphore_mem>>
      tpu.wait_dma2 semaphore(%1028 : memref<!tpu.dma_semaphore, #tpu.memory_space<semaphore_mem>>) src(%1025 : memref<4x128xf32, #tpu.memory_space<any>>) dst(%1026 : memref<4x128xf32, #tpu.memory_space<any>>)
    } else {
    }
    %c64_i32_463 = arith.constant 64 : i32
    %725 = arith.muli %arg0, %c64_i32_463 : i32
    %c4_i32_464 = arith.constant 4 : i32
    %726 = arith.addi %725, %c4_i32_464 : i32
    %727 = arith.cmpi slt, %726, %0 : i32
    %728 = arith.extui %727 : i1 to i32
    %c4_i32_465 = arith.constant 4 : i32
    %c0_i32_466 = arith.constant 0 : i32
    %729 = arith.cmpi ne, %728, %c0_i32_466 : i32
    scf.if %729 {
      %c0_i32_703 = arith.constant 0 : i32
      %1025 = tpu.memref_slice %arg3[%29, %c0_i32_703] : memref<40x128xf32, #tpu.memory_space<any>> -> memref<4x128xf32, #tpu.memory_space<any>>
      %c0_i32_704 = arith.constant 0 : i32
      %1026 = tpu.memref_slice %arg4[%30, %c0_i32_704] : memref<256x128xf32, #tpu.memory_space<any>> -> memref<4x128xf32, #tpu.memory_space<any>>
      %1027 = tpu.memref_slice %arg5[%c4_i32_465] : memref<16x!tpu.dma_semaphore, #tpu.memory_space<semaphore_mem>> -> memref<1x!tpu.dma_semaphore, #tpu.memory_space<semaphore_mem>>
      %1028 = tpu.memref_squeeze %1027 : memref<1x!tpu.dma_semaphore, #tpu.memory_space<semaphore_mem>> -> memref<!tpu.dma_semaphore, #tpu.memory_space<semaphore_mem>>
      tpu.wait_dma2 semaphore(%1028 : memref<!tpu.dma_semaphore, #tpu.memory_space<semaphore_mem>>) src(%1025 : memref<4x128xf32, #tpu.memory_space<any>>) dst(%1026 : memref<4x128xf32, #tpu.memory_space<any>>)
    } else {
    }
    %c64_i32_467 = arith.constant 64 : i32
    %730 = arith.muli %arg0, %c64_i32_467 : i32
    %c5_i32_468 = arith.constant 5 : i32
    %731 = arith.addi %730, %c5_i32_468 : i32
    %732 = arith.cmpi slt, %731, %0 : i32
    %733 = arith.extui %732 : i1 to i32
    %c5_i32_469 = arith.constant 5 : i32
    %c0_i32_470 = arith.constant 0 : i32
    %734 = arith.cmpi ne, %733, %c0_i32_470 : i32
    scf.if %734 {
      %c0_i32_703 = arith.constant 0 : i32
      %1025 = tpu.memref_slice %arg3[%35, %c0_i32_703] : memref<40x128xf32, #tpu.memory_space<any>> -> memref<4x128xf32, #tpu.memory_space<any>>
      %c0_i32_704 = arith.constant 0 : i32
      %1026 = tpu.memref_slice %arg4[%36, %c0_i32_704] : memref<256x128xf32, #tpu.memory_space<any>> -> memref<4x128xf32, #tpu.memory_space<any>>
      %1027 = tpu.memref_slice %arg5[%c5_i32_469] : memref<16x!tpu.dma_semaphore, #tpu.memory_space<semaphore_mem>> -> memref<1x!tpu.dma_semaphore, #tpu.memory_space<semaphore_mem>>
      %1028 = tpu.memref_squeeze %1027 : memref<1x!tpu.dma_semaphore, #tpu.memory_space<semaphore_mem>> -> memref<!tpu.dma_semaphore, #tpu.memory_space<semaphore_mem>>
      tpu.wait_dma2 semaphore(%1028 : memref<!tpu.dma_semaphore, #tpu.memory_space<semaphore_mem>>) src(%1025 : memref<4x128xf32, #tpu.memory_space<any>>) dst(%1026 : memref<4x128xf32, #tpu.memory_space<any>>)
    } else {
    }
    %c64_i32_471 = arith.constant 64 : i32
    %735 = arith.muli %arg0, %c64_i32_471 : i32
    %c6_i32_472 = arith.constant 6 : i32
    %736 = arith.addi %735, %c6_i32_472 : i32
    %737 = arith.cmpi slt, %736, %0 : i32
    %738 = arith.extui %737 : i1 to i32
    %c6_i32_473 = arith.constant 6 : i32
    %c0_i32_474 = arith.constant 0 : i32
    %739 = arith.cmpi ne, %738, %c0_i32_474 : i32
    scf.if %739 {
      %c0_i32_703 = arith.constant 0 : i32
      %1025 = tpu.memref_slice %arg3[%41, %c0_i32_703] : memref<40x128xf32, #tpu.memory_space<any>> -> memref<4x128xf32, #tpu.memory_space<any>>
      %c0_i32_704 = arith.constant 0 : i32
      %1026 = tpu.memref_slice %arg4[%42, %c0_i32_704] : memref<256x128xf32, #tpu.memory_space<any>> -> memref<4x128xf32, #tpu.memory_space<any>>
      %1027 = tpu.memref_slice %arg5[%c6_i32_473] : memref<16x!tpu.dma_semaphore, #tpu.memory_space<semaphore_mem>> -> memref<1x!tpu.dma_semaphore, #tpu.memory_space<semaphore_mem>>
      %1028 = tpu.memref_squeeze %1027 : memref<1x!tpu.dma_semaphore, #tpu.memory_space<semaphore_mem>> -> memref<!tpu.dma_semaphore, #tpu.memory_space<semaphore_mem>>
      tpu.wait_dma2 semaphore(%1028 : memref<!tpu.dma_semaphore, #tpu.memory_space<semaphore_mem>>) src(%1025 : memref<4x128xf32, #tpu.memory_space<any>>) dst(%1026 : memref<4x128xf32, #tpu.memory_space<any>>)
    } else {
    }
    %c64_i32_475 = arith.constant 64 : i32
    %740 = arith.muli %arg0, %c64_i32_475 : i32
    %c7_i32_476 = arith.constant 7 : i32
    %741 = arith.addi %740, %c7_i32_476 : i32
    %742 = arith.cmpi slt, %741, %0 : i32
    %743 = arith.extui %742 : i1 to i32
    %c7_i32_477 = arith.constant 7 : i32
    %c0_i32_478 = arith.constant 0 : i32
    %744 = arith.cmpi ne, %743, %c0_i32_478 : i32
    scf.if %744 {
      %c0_i32_703 = arith.constant 0 : i32
      %1025 = tpu.memref_slice %arg3[%47, %c0_i32_703] : memref<40x128xf32, #tpu.memory_space<any>> -> memref<4x128xf32, #tpu.memory_space<any>>
      %c0_i32_704 = arith.constant 0 : i32
      %1026 = tpu.memref_slice %arg4[%48, %c0_i32_704] : memref<256x128xf32, #tpu.memory_space<any>> -> memref<4x128xf32, #tpu.memory_space<any>>
      %1027 = tpu.memref_slice %arg5[%c7_i32_477] : memref<16x!tpu.dma_semaphore, #tpu.memory_space<semaphore_mem>> -> memref<1x!tpu.dma_semaphore, #tpu.memory_space<semaphore_mem>>
      %1028 = tpu.memref_squeeze %1027 : memref<1x!tpu.dma_semaphore, #tpu.memory_space<semaphore_mem>> -> memref<!tpu.dma_semaphore, #tpu.memory_space<semaphore_mem>>
      tpu.wait_dma2 semaphore(%1028 : memref<!tpu.dma_semaphore, #tpu.memory_space<semaphore_mem>>) src(%1025 : memref<4x128xf32, #tpu.memory_space<any>>) dst(%1026 : memref<4x128xf32, #tpu.memory_space<any>>)
    } else {
    }
    %c64_i32_479 = arith.constant 64 : i32
    %745 = arith.muli %arg0, %c64_i32_479 : i32
    %c8_i32_480 = arith.constant 8 : i32
    %746 = arith.addi %745, %c8_i32_480 : i32
    %747 = arith.cmpi slt, %746, %0 : i32
    %748 = arith.extui %747 : i1 to i32
    %c8_i32_481 = arith.constant 8 : i32
    %c0_i32_482 = arith.constant 0 : i32
    %749 = arith.cmpi ne, %748, %c0_i32_482 : i32
    scf.if %749 {
      %c0_i32_703 = arith.constant 0 : i32
      %1025 = tpu.memref_slice %arg3[%53, %c0_i32_703] : memref<40x128xf32, #tpu.memory_space<any>> -> memref<4x128xf32, #tpu.memory_space<any>>
      %c0_i32_704 = arith.constant 0 : i32
      %1026 = tpu.memref_slice %arg4[%54, %c0_i32_704] : memref<256x128xf32, #tpu.memory_space<any>> -> memref<4x128xf32, #tpu.memory_space<any>>
      %1027 = tpu.memref_slice %arg5[%c8_i32_481] : memref<16x!tpu.dma_semaphore, #tpu.memory_space<semaphore_mem>> -> memref<1x!tpu.dma_semaphore, #tpu.memory_space<semaphore_mem>>
      %1028 = tpu.memref_squeeze %1027 : memref<1x!tpu.dma_semaphore, #tpu.memory_space<semaphore_mem>> -> memref<!tpu.dma_semaphore, #tpu.memory_space<semaphore_mem>>
      tpu.wait_dma2 semaphore(%1028 : memref<!tpu.dma_semaphore, #tpu.memory_space<semaphore_mem>>) src(%1025 : memref<4x128xf32, #tpu.memory_space<any>>) dst(%1026 : memref<4x128xf32, #tpu.memory_space<any>>)
    } else {
    }
    %c64_i32_483 = arith.constant 64 : i32
    %750 = arith.muli %arg0, %c64_i32_483 : i32
    %c9_i32_484 = arith.constant 9 : i32
    %751 = arith.addi %750, %c9_i32_484 : i32
    %752 = arith.cmpi slt, %751, %0 : i32
    %753 = arith.extui %752 : i1 to i32
    %c9_i32_485 = arith.constant 9 : i32
    %c0_i32_486 = arith.constant 0 : i32
    %754 = arith.cmpi ne, %753, %c0_i32_486 : i32
    scf.if %754 {
      %c0_i32_703 = arith.constant 0 : i32
      %1025 = tpu.memref_slice %arg3[%59, %c0_i32_703] : memref<40x128xf32, #tpu.memory_space<any>> -> memref<4x128xf32, #tpu.memory_space<any>>
      %c0_i32_704 = arith.constant 0 : i32
      %1026 = tpu.memref_slice %arg4[%60, %c0_i32_704] : memref<256x128xf32, #tpu.memory_space<any>> -> memref<4x128xf32, #tpu.memory_space<any>>
      %1027 = tpu.memref_slice %arg5[%c9_i32_485] : memref<16x!tpu.dma_semaphore, #tpu.memory_space<semaphore_mem>> -> memref<1x!tpu.dma_semaphore, #tpu.memory_space<semaphore_mem>>
      %1028 = tpu.memref_squeeze %1027 : memref<1x!tpu.dma_semaphore, #tpu.memory_space<semaphore_mem>> -> memref<!tpu.dma_semaphore, #tpu.memory_space<semaphore_mem>>
      tpu.wait_dma2 semaphore(%1028 : memref<!tpu.dma_semaphore, #tpu.memory_space<semaphore_mem>>) src(%1025 : memref<4x128xf32, #tpu.memory_space<any>>) dst(%1026 : memref<4x128xf32, #tpu.memory_space<any>>)
    } else {
    }
    %c64_i32_487 = arith.constant 64 : i32
    %755 = arith.muli %arg0, %c64_i32_487 : i32
    %c10_i32_488 = arith.constant 10 : i32
    %756 = arith.addi %755, %c10_i32_488 : i32
    %757 = arith.cmpi slt, %756, %0 : i32
    %758 = arith.extui %757 : i1 to i32
    %c10_i32_489 = arith.constant 10 : i32
    %c0_i32_490 = arith.constant 0 : i32
    %759 = arith.cmpi ne, %758, %c0_i32_490 : i32
    scf.if %759 {
      %c0_i32_703 = arith.constant 0 : i32
      %1025 = tpu.memref_slice %arg3[%65, %c0_i32_703] : memref<40x128xf32, #tpu.memory_space<any>> -> memref<4x128xf32, #tpu.memory_space<any>>
      %c0_i32_704 = arith.constant 0 : i32
      %1026 = tpu.memref_slice %arg4[%66, %c0_i32_704] : memref<256x128xf32, #tpu.memory_space<any>> -> memref<4x128xf32, #tpu.memory_space<any>>
      %1027 = tpu.memref_slice %arg5[%c10_i32_489] : memref<16x!tpu.dma_semaphore, #tpu.memory_space<semaphore_mem>> -> memref<1x!tpu.dma_semaphore, #tpu.memory_space<semaphore_mem>>
      %1028 = tpu.memref_squeeze %1027 : memref<1x!tpu.dma_semaphore, #tpu.memory_space<semaphore_mem>> -> memref<!tpu.dma_semaphore, #tpu.memory_space<semaphore_mem>>
      tpu.wait_dma2 semaphore(%1028 : memref<!tpu.dma_semaphore, #tpu.memory_space<semaphore_mem>>) src(%1025 : memref<4x128xf32, #tpu.memory_space<any>>) dst(%1026 : memref<4x128xf32, #tpu.memory_space<any>>)
    } else {
    }
    %c64_i32_491 = arith.constant 64 : i32
    %760 = arith.muli %arg0, %c64_i32_491 : i32
    %c11_i32_492 = arith.constant 11 : i32
    %761 = arith.addi %760, %c11_i32_492 : i32
    %762 = arith.cmpi slt, %761, %0 : i32
    %763 = arith.extui %762 : i1 to i32
    %c11_i32_493 = arith.constant 11 : i32
    %c0_i32_494 = arith.constant 0 : i32
    %764 = arith.cmpi ne, %763, %c0_i32_494 : i32
    scf.if %764 {
      %c0_i32_703 = arith.constant 0 : i32
      %1025 = tpu.memref_slice %arg3[%71, %c0_i32_703] : memref<40x128xf32, #tpu.memory_space<any>> -> memref<4x128xf32, #tpu.memory_space<any>>
      %c0_i32_704 = arith.constant 0 : i32
      %1026 = tpu.memref_slice %arg4[%72, %c0_i32_704] : memref<256x128xf32, #tpu.memory_space<any>> -> memref<4x128xf32, #tpu.memory_space<any>>
      %1027 = tpu.memref_slice %arg5[%c11_i32_493] : memref<16x!tpu.dma_semaphore, #tpu.memory_space<semaphore_mem>> -> memref<1x!tpu.dma_semaphore, #tpu.memory_space<semaphore_mem>>
      %1028 = tpu.memref_squeeze %1027 : memref<1x!tpu.dma_semaphore, #tpu.memory_space<semaphore_mem>> -> memref<!tpu.dma_semaphore, #tpu.memory_space<semaphore_mem>>
      tpu.wait_dma2 semaphore(%1028 : memref<!tpu.dma_semaphore, #tpu.memory_space<semaphore_mem>>) src(%1025 : memref<4x128xf32, #tpu.memory_space<any>>) dst(%1026 : memref<4x128xf32, #tpu.memory_space<any>>)
    } else {
    }
    %c64_i32_495 = arith.constant 64 : i32
    %765 = arith.muli %arg0, %c64_i32_495 : i32
    %c12_i32_496 = arith.constant 12 : i32
    %766 = arith.addi %765, %c12_i32_496 : i32
    %767 = arith.cmpi slt, %766, %0 : i32
    %768 = arith.extui %767 : i1 to i32
    %c12_i32_497 = arith.constant 12 : i32
    %c0_i32_498 = arith.constant 0 : i32
    %769 = arith.cmpi ne, %768, %c0_i32_498 : i32
    scf.if %769 {
      %c0_i32_703 = arith.constant 0 : i32
      %1025 = tpu.memref_slice %arg3[%77, %c0_i32_703] : memref<40x128xf32, #tpu.memory_space<any>> -> memref<4x128xf32, #tpu.memory_space<any>>
      %c0_i32_704 = arith.constant 0 : i32
      %1026 = tpu.memref_slice %arg4[%78, %c0_i32_704] : memref<256x128xf32, #tpu.memory_space<any>> -> memref<4x128xf32, #tpu.memory_space<any>>
      %1027 = tpu.memref_slice %arg5[%c12_i32_497] : memref<16x!tpu.dma_semaphore, #tpu.memory_space<semaphore_mem>> -> memref<1x!tpu.dma_semaphore, #tpu.memory_space<semaphore_mem>>
      %1028 = tpu.memref_squeeze %1027 : memref<1x!tpu.dma_semaphore, #tpu.memory_space<semaphore_mem>> -> memref<!tpu.dma_semaphore, #tpu.memory_space<semaphore_mem>>
      tpu.wait_dma2 semaphore(%1028 : memref<!tpu.dma_semaphore, #tpu.memory_space<semaphore_mem>>) src(%1025 : memref<4x128xf32, #tpu.memory_space<any>>) dst(%1026 : memref<4x128xf32, #tpu.memory_space<any>>)
    } else {
    }
    %c64_i32_499 = arith.constant 64 : i32
    %770 = arith.muli %arg0, %c64_i32_499 : i32
    %c13_i32_500 = arith.constant 13 : i32
    %771 = arith.addi %770, %c13_i32_500 : i32
    %772 = arith.cmpi slt, %771, %0 : i32
    %773 = arith.extui %772 : i1 to i32
    %c13_i32_501 = arith.constant 13 : i32
    %c0_i32_502 = arith.constant 0 : i32
    %774 = arith.cmpi ne, %773, %c0_i32_502 : i32
    scf.if %774 {
      %c0_i32_703 = arith.constant 0 : i32
      %1025 = tpu.memref_slice %arg3[%83, %c0_i32_703] : memref<40x128xf32, #tpu.memory_space<any>> -> memref<4x128xf32, #tpu.memory_space<any>>
      %c0_i32_704 = arith.constant 0 : i32
      %1026 = tpu.memref_slice %arg4[%84, %c0_i32_704] : memref<256x128xf32, #tpu.memory_space<any>> -> memref<4x128xf32, #tpu.memory_space<any>>
      %1027 = tpu.memref_slice %arg5[%c13_i32_501] : memref<16x!tpu.dma_semaphore, #tpu.memory_space<semaphore_mem>> -> memref<1x!tpu.dma_semaphore, #tpu.memory_space<semaphore_mem>>
      %1028 = tpu.memref_squeeze %1027 : memref<1x!tpu.dma_semaphore, #tpu.memory_space<semaphore_mem>> -> memref<!tpu.dma_semaphore, #tpu.memory_space<semaphore_mem>>
      tpu.wait_dma2 semaphore(%1028 : memref<!tpu.dma_semaphore, #tpu.memory_space<semaphore_mem>>) src(%1025 : memref<4x128xf32, #tpu.memory_space<any>>) dst(%1026 : memref<4x128xf32, #tpu.memory_space<any>>)
    } else {
    }
    %c64_i32_503 = arith.constant 64 : i32
    %775 = arith.muli %arg0, %c64_i32_503 : i32
    %c14_i32_504 = arith.constant 14 : i32
    %776 = arith.addi %775, %c14_i32_504 : i32
    %777 = arith.cmpi slt, %776, %0 : i32
    %778 = arith.extui %777 : i1 to i32
    %c14_i32_505 = arith.constant 14 : i32
    %c0_i32_506 = arith.constant 0 : i32
    %779 = arith.cmpi ne, %778, %c0_i32_506 : i32
    scf.if %779 {
      %c0_i32_703 = arith.constant 0 : i32
      %1025 = tpu.memref_slice %arg3[%89, %c0_i32_703] : memref<40x128xf32, #tpu.memory_space<any>> -> memref<4x128xf32, #tpu.memory_space<any>>
      %c0_i32_704 = arith.constant 0 : i32
      %1026 = tpu.memref_slice %arg4[%90, %c0_i32_704] : memref<256x128xf32, #tpu.memory_space<any>> -> memref<4x128xf32, #tpu.memory_space<any>>
      %1027 = tpu.memref_slice %arg5[%c14_i32_505] : memref<16x!tpu.dma_semaphore, #tpu.memory_space<semaphore_mem>> -> memref<1x!tpu.dma_semaphore, #tpu.memory_space<semaphore_mem>>
      %1028 = tpu.memref_squeeze %1027 : memref<1x!tpu.dma_semaphore, #tpu.memory_space<semaphore_mem>> -> memref<!tpu.dma_semaphore, #tpu.memory_space<semaphore_mem>>
      tpu.wait_dma2 semaphore(%1028 : memref<!tpu.dma_semaphore, #tpu.memory_space<semaphore_mem>>) src(%1025 : memref<4x128xf32, #tpu.memory_space<any>>) dst(%1026 : memref<4x128xf32, #tpu.memory_space<any>>)
    } else {
    }
    %c64_i32_507 = arith.constant 64 : i32
    %780 = arith.muli %arg0, %c64_i32_507 : i32
    %c15_i32_508 = arith.constant 15 : i32
    %781 = arith.addi %780, %c15_i32_508 : i32
    %782 = arith.cmpi slt, %781, %0 : i32
    %783 = arith.extui %782 : i1 to i32
    %c15_i32_509 = arith.constant 15 : i32
    %c0_i32_510 = arith.constant 0 : i32
    %784 = arith.cmpi ne, %783, %c0_i32_510 : i32
    scf.if %784 {
      %c0_i32_703 = arith.constant 0 : i32
      %1025 = tpu.memref_slice %arg3[%95, %c0_i32_703] : memref<40x128xf32, #tpu.memory_space<any>> -> memref<4x128xf32, #tpu.memory_space<any>>
      %c0_i32_704 = arith.constant 0 : i32
      %1026 = tpu.memref_slice %arg4[%96, %c0_i32_704] : memref<256x128xf32, #tpu.memory_space<any>> -> memref<4x128xf32, #tpu.memory_space<any>>
      %1027 = tpu.memref_slice %arg5[%c15_i32_509] : memref<16x!tpu.dma_semaphore, #tpu.memory_space<semaphore_mem>> -> memref<1x!tpu.dma_semaphore, #tpu.memory_space<semaphore_mem>>
      %1028 = tpu.memref_squeeze %1027 : memref<1x!tpu.dma_semaphore, #tpu.memory_space<semaphore_mem>> -> memref<!tpu.dma_semaphore, #tpu.memory_space<semaphore_mem>>
      tpu.wait_dma2 semaphore(%1028 : memref<!tpu.dma_semaphore, #tpu.memory_space<semaphore_mem>>) src(%1025 : memref<4x128xf32, #tpu.memory_space<any>>) dst(%1026 : memref<4x128xf32, #tpu.memory_space<any>>)
    } else {
    }
    %c64_i32_511 = arith.constant 64 : i32
    %785 = arith.muli %arg0, %c64_i32_511 : i32
    %c16_i32_512 = arith.constant 16 : i32
    %786 = arith.addi %785, %c16_i32_512 : i32
    %787 = arith.cmpi slt, %786, %0 : i32
    %788 = arith.extui %787 : i1 to i32
    %c0_i32_513 = arith.constant 0 : i32
    %c0_i32_514 = arith.constant 0 : i32
    %789 = arith.cmpi ne, %788, %c0_i32_514 : i32
    scf.if %789 {
      %c0_i32_703 = arith.constant 0 : i32
      %1025 = tpu.memref_slice %arg3[%101, %c0_i32_703] : memref<40x128xf32, #tpu.memory_space<any>> -> memref<4x128xf32, #tpu.memory_space<any>>
      %c0_i32_704 = arith.constant 0 : i32
      %1026 = tpu.memref_slice %arg4[%102, %c0_i32_704] : memref<256x128xf32, #tpu.memory_space<any>> -> memref<4x128xf32, #tpu.memory_space<any>>
      %1027 = tpu.memref_slice %arg5[%c0_i32_513] : memref<16x!tpu.dma_semaphore, #tpu.memory_space<semaphore_mem>> -> memref<1x!tpu.dma_semaphore, #tpu.memory_space<semaphore_mem>>
      %1028 = tpu.memref_squeeze %1027 : memref<1x!tpu.dma_semaphore, #tpu.memory_space<semaphore_mem>> -> memref<!tpu.dma_semaphore, #tpu.memory_space<semaphore_mem>>
      tpu.wait_dma2 semaphore(%1028 : memref<!tpu.dma_semaphore, #tpu.memory_space<semaphore_mem>>) src(%1025 : memref<4x128xf32, #tpu.memory_space<any>>) dst(%1026 : memref<4x128xf32, #tpu.memory_space<any>>)
    } else {
    }
    %c64_i32_515 = arith.constant 64 : i32
    %790 = arith.muli %arg0, %c64_i32_515 : i32
    %c17_i32_516 = arith.constant 17 : i32
    %791 = arith.addi %790, %c17_i32_516 : i32
    %792 = arith.cmpi slt, %791, %0 : i32
    %793 = arith.extui %792 : i1 to i32
    %c1_i32_517 = arith.constant 1 : i32
    %c0_i32_518 = arith.constant 0 : i32
    %794 = arith.cmpi ne, %793, %c0_i32_518 : i32
    scf.if %794 {
      %c0_i32_703 = arith.constant 0 : i32
      %1025 = tpu.memref_slice %arg3[%107, %c0_i32_703] : memref<40x128xf32, #tpu.memory_space<any>> -> memref<4x128xf32, #tpu.memory_space<any>>
      %c0_i32_704 = arith.constant 0 : i32
      %1026 = tpu.memref_slice %arg4[%108, %c0_i32_704] : memref<256x128xf32, #tpu.memory_space<any>> -> memref<4x128xf32, #tpu.memory_space<any>>
      %1027 = tpu.memref_slice %arg5[%c1_i32_517] : memref<16x!tpu.dma_semaphore, #tpu.memory_space<semaphore_mem>> -> memref<1x!tpu.dma_semaphore, #tpu.memory_space<semaphore_mem>>
      %1028 = tpu.memref_squeeze %1027 : memref<1x!tpu.dma_semaphore, #tpu.memory_space<semaphore_mem>> -> memref<!tpu.dma_semaphore, #tpu.memory_space<semaphore_mem>>
      tpu.wait_dma2 semaphore(%1028 : memref<!tpu.dma_semaphore, #tpu.memory_space<semaphore_mem>>) src(%1025 : memref<4x128xf32, #tpu.memory_space<any>>) dst(%1026 : memref<4x128xf32, #tpu.memory_space<any>>)
    } else {
    }
    %c64_i32_519 = arith.constant 64 : i32
    %795 = arith.muli %arg0, %c64_i32_519 : i32
    %c18_i32_520 = arith.constant 18 : i32
    %796 = arith.addi %795, %c18_i32_520 : i32
    %797 = arith.cmpi slt, %796, %0 : i32
    %798 = arith.extui %797 : i1 to i32
    %c2_i32_521 = arith.constant 2 : i32
    %c0_i32_522 = arith.constant 0 : i32
    %799 = arith.cmpi ne, %798, %c0_i32_522 : i32
    scf.if %799 {
      %c0_i32_703 = arith.constant 0 : i32
      %1025 = tpu.memref_slice %arg3[%113, %c0_i32_703] : memref<40x128xf32, #tpu.memory_space<any>> -> memref<4x128xf32, #tpu.memory_space<any>>
      %c0_i32_704 = arith.constant 0 : i32
      %1026 = tpu.memref_slice %arg4[%114, %c0_i32_704] : memref<256x128xf32, #tpu.memory_space<any>> -> memref<4x128xf32, #tpu.memory_space<any>>
      %1027 = tpu.memref_slice %arg5[%c2_i32_521] : memref<16x!tpu.dma_semaphore, #tpu.memory_space<semaphore_mem>> -> memref<1x!tpu.dma_semaphore, #tpu.memory_space<semaphore_mem>>
      %1028 = tpu.memref_squeeze %1027 : memref<1x!tpu.dma_semaphore, #tpu.memory_space<semaphore_mem>> -> memref<!tpu.dma_semaphore, #tpu.memory_space<semaphore_mem>>
      tpu.wait_dma2 semaphore(%1028 : memref<!tpu.dma_semaphore, #tpu.memory_space<semaphore_mem>>) src(%1025 : memref<4x128xf32, #tpu.memory_space<any>>) dst(%1026 : memref<4x128xf32, #tpu.memory_space<any>>)
    } else {
    }
    %c64_i32_523 = arith.constant 64 : i32
    %800 = arith.muli %arg0, %c64_i32_523 : i32
    %c19_i32_524 = arith.constant 19 : i32
    %801 = arith.addi %800, %c19_i32_524 : i32
    %802 = arith.cmpi slt, %801, %0 : i32
    %803 = arith.extui %802 : i1 to i32
    %c3_i32_525 = arith.constant 3 : i32
    %c0_i32_526 = arith.constant 0 : i32
    %804 = arith.cmpi ne, %803, %c0_i32_526 : i32
    scf.if %804 {
      %c0_i32_703 = arith.constant 0 : i32
      %1025 = tpu.memref_slice %arg3[%119, %c0_i32_703] : memref<40x128xf32, #tpu.memory_space<any>> -> memref<4x128xf32, #tpu.memory_space<any>>
      %c0_i32_704 = arith.constant 0 : i32
      %1026 = tpu.memref_slice %arg4[%120, %c0_i32_704] : memref<256x128xf32, #tpu.memory_space<any>> -> memref<4x128xf32, #tpu.memory_space<any>>
      %1027 = tpu.memref_slice %arg5[%c3_i32_525] : memref<16x!tpu.dma_semaphore, #tpu.memory_space<semaphore_mem>> -> memref<1x!tpu.dma_semaphore, #tpu.memory_space<semaphore_mem>>
      %1028 = tpu.memref_squeeze %1027 : memref<1x!tpu.dma_semaphore, #tpu.memory_space<semaphore_mem>> -> memref<!tpu.dma_semaphore, #tpu.memory_space<semaphore_mem>>
      tpu.wait_dma2 semaphore(%1028 : memref<!tpu.dma_semaphore, #tpu.memory_space<semaphore_mem>>) src(%1025 : memref<4x128xf32, #tpu.memory_space<any>>) dst(%1026 : memref<4x128xf32, #tpu.memory_space<any>>)
    } else {
    }
    %c64_i32_527 = arith.constant 64 : i32
    %805 = arith.muli %arg0, %c64_i32_527 : i32
    %c20_i32_528 = arith.constant 20 : i32
    %806 = arith.addi %805, %c20_i32_528 : i32
    %807 = arith.cmpi slt, %806, %0 : i32
    %808 = arith.extui %807 : i1 to i32
    %c4_i32_529 = arith.constant 4 : i32
    %c0_i32_530 = arith.constant 0 : i32
    %809 = arith.cmpi ne, %808, %c0_i32_530 : i32
    scf.if %809 {
      %c0_i32_703 = arith.constant 0 : i32
      %1025 = tpu.memref_slice %arg3[%125, %c0_i32_703] : memref<40x128xf32, #tpu.memory_space<any>> -> memref<4x128xf32, #tpu.memory_space<any>>
      %c0_i32_704 = arith.constant 0 : i32
      %1026 = tpu.memref_slice %arg4[%126, %c0_i32_704] : memref<256x128xf32, #tpu.memory_space<any>> -> memref<4x128xf32, #tpu.memory_space<any>>
      %1027 = tpu.memref_slice %arg5[%c4_i32_529] : memref<16x!tpu.dma_semaphore, #tpu.memory_space<semaphore_mem>> -> memref<1x!tpu.dma_semaphore, #tpu.memory_space<semaphore_mem>>
      %1028 = tpu.memref_squeeze %1027 : memref<1x!tpu.dma_semaphore, #tpu.memory_space<semaphore_mem>> -> memref<!tpu.dma_semaphore, #tpu.memory_space<semaphore_mem>>
      tpu.wait_dma2 semaphore(%1028 : memref<!tpu.dma_semaphore, #tpu.memory_space<semaphore_mem>>) src(%1025 : memref<4x128xf32, #tpu.memory_space<any>>) dst(%1026 : memref<4x128xf32, #tpu.memory_space<any>>)
    } else {
    }
    %c64_i32_531 = arith.constant 64 : i32
    %810 = arith.muli %arg0, %c64_i32_531 : i32
    %c21_i32_532 = arith.constant 21 : i32
    %811 = arith.addi %810, %c21_i32_532 : i32
    %812 = arith.cmpi slt, %811, %0 : i32
    %813 = arith.extui %812 : i1 to i32
    %c5_i32_533 = arith.constant 5 : i32
    %c0_i32_534 = arith.constant 0 : i32
    %814 = arith.cmpi ne, %813, %c0_i32_534 : i32
    scf.if %814 {
      %c0_i32_703 = arith.constant 0 : i32
      %1025 = tpu.memref_slice %arg3[%131, %c0_i32_703] : memref<40x128xf32, #tpu.memory_space<any>> -> memref<4x128xf32, #tpu.memory_space<any>>
      %c0_i32_704 = arith.constant 0 : i32
      %1026 = tpu.memref_slice %arg4[%132, %c0_i32_704] : memref<256x128xf32, #tpu.memory_space<any>> -> memref<4x128xf32, #tpu.memory_space<any>>
      %1027 = tpu.memref_slice %arg5[%c5_i32_533] : memref<16x!tpu.dma_semaphore, #tpu.memory_space<semaphore_mem>> -> memref<1x!tpu.dma_semaphore, #tpu.memory_space<semaphore_mem>>
      %1028 = tpu.memref_squeeze %1027 : memref<1x!tpu.dma_semaphore, #tpu.memory_space<semaphore_mem>> -> memref<!tpu.dma_semaphore, #tpu.memory_space<semaphore_mem>>
      tpu.wait_dma2 semaphore(%1028 : memref<!tpu.dma_semaphore, #tpu.memory_space<semaphore_mem>>) src(%1025 : memref<4x128xf32, #tpu.memory_space<any>>) dst(%1026 : memref<4x128xf32, #tpu.memory_space<any>>)
    } else {
    }
    %c64_i32_535 = arith.constant 64 : i32
    %815 = arith.muli %arg0, %c64_i32_535 : i32
    %c22_i32_536 = arith.constant 22 : i32
    %816 = arith.addi %815, %c22_i32_536 : i32
    %817 = arith.cmpi slt, %816, %0 : i32
    %818 = arith.extui %817 : i1 to i32
    %c6_i32_537 = arith.constant 6 : i32
    %c0_i32_538 = arith.constant 0 : i32
    %819 = arith.cmpi ne, %818, %c0_i32_538 : i32
    scf.if %819 {
      %c0_i32_703 = arith.constant 0 : i32
      %1025 = tpu.memref_slice %arg3[%137, %c0_i32_703] : memref<40x128xf32, #tpu.memory_space<any>> -> memref<4x128xf32, #tpu.memory_space<any>>
      %c0_i32_704 = arith.constant 0 : i32
      %1026 = tpu.memref_slice %arg4[%138, %c0_i32_704] : memref<256x128xf32, #tpu.memory_space<any>> -> memref<4x128xf32, #tpu.memory_space<any>>
      %1027 = tpu.memref_slice %arg5[%c6_i32_537] : memref<16x!tpu.dma_semaphore, #tpu.memory_space<semaphore_mem>> -> memref<1x!tpu.dma_semaphore, #tpu.memory_space<semaphore_mem>>
      %1028 = tpu.memref_squeeze %1027 : memref<1x!tpu.dma_semaphore, #tpu.memory_space<semaphore_mem>> -> memref<!tpu.dma_semaphore, #tpu.memory_space<semaphore_mem>>
      tpu.wait_dma2 semaphore(%1028 : memref<!tpu.dma_semaphore, #tpu.memory_space<semaphore_mem>>) src(%1025 : memref<4x128xf32, #tpu.memory_space<any>>) dst(%1026 : memref<4x128xf32, #tpu.memory_space<any>>)
    } else {
    }
    %c64_i32_539 = arith.constant 64 : i32
    %820 = arith.muli %arg0, %c64_i32_539 : i32
    %c23_i32_540 = arith.constant 23 : i32
    %821 = arith.addi %820, %c23_i32_540 : i32
    %822 = arith.cmpi slt, %821, %0 : i32
    %823 = arith.extui %822 : i1 to i32
    %c7_i32_541 = arith.constant 7 : i32
    %c0_i32_542 = arith.constant 0 : i32
    %824 = arith.cmpi ne, %823, %c0_i32_542 : i32
    scf.if %824 {
      %c0_i32_703 = arith.constant 0 : i32
      %1025 = tpu.memref_slice %arg3[%143, %c0_i32_703] : memref<40x128xf32, #tpu.memory_space<any>> -> memref<4x128xf32, #tpu.memory_space<any>>
      %c0_i32_704 = arith.constant 0 : i32
      %1026 = tpu.memref_slice %arg4[%144, %c0_i32_704] : memref<256x128xf32, #tpu.memory_space<any>> -> memref<4x128xf32, #tpu.memory_space<any>>
      %1027 = tpu.memref_slice %arg5[%c7_i32_541] : memref<16x!tpu.dma_semaphore, #tpu.memory_space<semaphore_mem>> -> memref<1x!tpu.dma_semaphore, #tpu.memory_space<semaphore_mem>>
      %1028 = tpu.memref_squeeze %1027 : memref<1x!tpu.dma_semaphore, #tpu.memory_space<semaphore_mem>> -> memref<!tpu.dma_semaphore, #tpu.memory_space<semaphore_mem>>
      tpu.wait_dma2 semaphore(%1028 : memref<!tpu.dma_semaphore, #tpu.memory_space<semaphore_mem>>) src(%1025 : memref<4x128xf32, #tpu.memory_space<any>>) dst(%1026 : memref<4x128xf32, #tpu.memory_space<any>>)
    } else {
    }
    %c64_i32_543 = arith.constant 64 : i32
    %825 = arith.muli %arg0, %c64_i32_543 : i32
    %c24_i32_544 = arith.constant 24 : i32
    %826 = arith.addi %825, %c24_i32_544 : i32
    %827 = arith.cmpi slt, %826, %0 : i32
    %828 = arith.extui %827 : i1 to i32
    %c8_i32_545 = arith.constant 8 : i32
    %c0_i32_546 = arith.constant 0 : i32
    %829 = arith.cmpi ne, %828, %c0_i32_546 : i32
    scf.if %829 {
      %c0_i32_703 = arith.constant 0 : i32
      %1025 = tpu.memref_slice %arg3[%149, %c0_i32_703] : memref<40x128xf32, #tpu.memory_space<any>> -> memref<4x128xf32, #tpu.memory_space<any>>
      %c0_i32_704 = arith.constant 0 : i32
      %1026 = tpu.memref_slice %arg4[%150, %c0_i32_704] : memref<256x128xf32, #tpu.memory_space<any>> -> memref<4x128xf32, #tpu.memory_space<any>>
      %1027 = tpu.memref_slice %arg5[%c8_i32_545] : memref<16x!tpu.dma_semaphore, #tpu.memory_space<semaphore_mem>> -> memref<1x!tpu.dma_semaphore, #tpu.memory_space<semaphore_mem>>
      %1028 = tpu.memref_squeeze %1027 : memref<1x!tpu.dma_semaphore, #tpu.memory_space<semaphore_mem>> -> memref<!tpu.dma_semaphore, #tpu.memory_space<semaphore_mem>>
      tpu.wait_dma2 semaphore(%1028 : memref<!tpu.dma_semaphore, #tpu.memory_space<semaphore_mem>>) src(%1025 : memref<4x128xf32, #tpu.memory_space<any>>) dst(%1026 : memref<4x128xf32, #tpu.memory_space<any>>)
    } else {
    }
    %c64_i32_547 = arith.constant 64 : i32
    %830 = arith.muli %arg0, %c64_i32_547 : i32
    %c25_i32_548 = arith.constant 25 : i32
    %831 = arith.addi %830, %c25_i32_548 : i32
    %832 = arith.cmpi slt, %831, %0 : i32
    %833 = arith.extui %832 : i1 to i32
    %c9_i32_549 = arith.constant 9 : i32
    %c0_i32_550 = arith.constant 0 : i32
    %834 = arith.cmpi ne, %833, %c0_i32_550 : i32
    scf.if %834 {
      %c0_i32_703 = arith.constant 0 : i32
      %1025 = tpu.memref_slice %arg3[%155, %c0_i32_703] : memref<40x128xf32, #tpu.memory_space<any>> -> memref<4x128xf32, #tpu.memory_space<any>>
      %c0_i32_704 = arith.constant 0 : i32
      %1026 = tpu.memref_slice %arg4[%156, %c0_i32_704] : memref<256x128xf32, #tpu.memory_space<any>> -> memref<4x128xf32, #tpu.memory_space<any>>
      %1027 = tpu.memref_slice %arg5[%c9_i32_549] : memref<16x!tpu.dma_semaphore, #tpu.memory_space<semaphore_mem>> -> memref<1x!tpu.dma_semaphore, #tpu.memory_space<semaphore_mem>>
      %1028 = tpu.memref_squeeze %1027 : memref<1x!tpu.dma_semaphore, #tpu.memory_space<semaphore_mem>> -> memref<!tpu.dma_semaphore, #tpu.memory_space<semaphore_mem>>
      tpu.wait_dma2 semaphore(%1028 : memref<!tpu.dma_semaphore, #tpu.memory_space<semaphore_mem>>) src(%1025 : memref<4x128xf32, #tpu.memory_space<any>>) dst(%1026 : memref<4x128xf32, #tpu.memory_space<any>>)
    } else {
    }
    %c64_i32_551 = arith.constant 64 : i32
    %835 = arith.muli %arg0, %c64_i32_551 : i32
    %c26_i32_552 = arith.constant 26 : i32
    %836 = arith.addi %835, %c26_i32_552 : i32
    %837 = arith.cmpi slt, %836, %0 : i32
    %838 = arith.extui %837 : i1 to i32
    %c10_i32_553 = arith.constant 10 : i32
    %c0_i32_554 = arith.constant 0 : i32
    %839 = arith.cmpi ne, %838, %c0_i32_554 : i32
    scf.if %839 {
      %c0_i32_703 = arith.constant 0 : i32
      %1025 = tpu.memref_slice %arg3[%161, %c0_i32_703] : memref<40x128xf32, #tpu.memory_space<any>> -> memref<4x128xf32, #tpu.memory_space<any>>
      %c0_i32_704 = arith.constant 0 : i32
      %1026 = tpu.memref_slice %arg4[%162, %c0_i32_704] : memref<256x128xf32, #tpu.memory_space<any>> -> memref<4x128xf32, #tpu.memory_space<any>>
      %1027 = tpu.memref_slice %arg5[%c10_i32_553] : memref<16x!tpu.dma_semaphore, #tpu.memory_space<semaphore_mem>> -> memref<1x!tpu.dma_semaphore, #tpu.memory_space<semaphore_mem>>
      %1028 = tpu.memref_squeeze %1027 : memref<1x!tpu.dma_semaphore, #tpu.memory_space<semaphore_mem>> -> memref<!tpu.dma_semaphore, #tpu.memory_space<semaphore_mem>>
      tpu.wait_dma2 semaphore(%1028 : memref<!tpu.dma_semaphore, #tpu.memory_space<semaphore_mem>>) src(%1025 : memref<4x128xf32, #tpu.memory_space<any>>) dst(%1026 : memref<4x128xf32, #tpu.memory_space<any>>)
    } else {
    }
    %c64_i32_555 = arith.constant 64 : i32
    %840 = arith.muli %arg0, %c64_i32_555 : i32
    %c27_i32_556 = arith.constant 27 : i32
    %841 = arith.addi %840, %c27_i32_556 : i32
    %842 = arith.cmpi slt, %841, %0 : i32
    %843 = arith.extui %842 : i1 to i32
    %c11_i32_557 = arith.constant 11 : i32
    %c0_i32_558 = arith.constant 0 : i32
    %844 = arith.cmpi ne, %843, %c0_i32_558 : i32
    scf.if %844 {
      %c0_i32_703 = arith.constant 0 : i32
      %1025 = tpu.memref_slice %arg3[%167, %c0_i32_703] : memref<40x128xf32, #tpu.memory_space<any>> -> memref<4x128xf32, #tpu.memory_space<any>>
      %c0_i32_704 = arith.constant 0 : i32
      %1026 = tpu.memref_slice %arg4[%168, %c0_i32_704] : memref<256x128xf32, #tpu.memory_space<any>> -> memref<4x128xf32, #tpu.memory_space<any>>
      %1027 = tpu.memref_slice %arg5[%c11_i32_557] : memref<16x!tpu.dma_semaphore, #tpu.memory_space<semaphore_mem>> -> memref<1x!tpu.dma_semaphore, #tpu.memory_space<semaphore_mem>>
      %1028 = tpu.memref_squeeze %1027 : memref<1x!tpu.dma_semaphore, #tpu.memory_space<semaphore_mem>> -> memref<!tpu.dma_semaphore, #tpu.memory_space<semaphore_mem>>
      tpu.wait_dma2 semaphore(%1028 : memref<!tpu.dma_semaphore, #tpu.memory_space<semaphore_mem>>) src(%1025 : memref<4x128xf32, #tpu.memory_space<any>>) dst(%1026 : memref<4x128xf32, #tpu.memory_space<any>>)
    } else {
    }
    %c64_i32_559 = arith.constant 64 : i32
    %845 = arith.muli %arg0, %c64_i32_559 : i32
    %c28_i32_560 = arith.constant 28 : i32
    %846 = arith.addi %845, %c28_i32_560 : i32
    %847 = arith.cmpi slt, %846, %0 : i32
    %848 = arith.extui %847 : i1 to i32
    %c12_i32_561 = arith.constant 12 : i32
    %c0_i32_562 = arith.constant 0 : i32
    %849 = arith.cmpi ne, %848, %c0_i32_562 : i32
    scf.if %849 {
      %c0_i32_703 = arith.constant 0 : i32
      %1025 = tpu.memref_slice %arg3[%173, %c0_i32_703] : memref<40x128xf32, #tpu.memory_space<any>> -> memref<4x128xf32, #tpu.memory_space<any>>
      %c0_i32_704 = arith.constant 0 : i32
      %1026 = tpu.memref_slice %arg4[%174, %c0_i32_704] : memref<256x128xf32, #tpu.memory_space<any>> -> memref<4x128xf32, #tpu.memory_space<any>>
      %1027 = tpu.memref_slice %arg5[%c12_i32_561] : memref<16x!tpu.dma_semaphore, #tpu.memory_space<semaphore_mem>> -> memref<1x!tpu.dma_semaphore, #tpu.memory_space<semaphore_mem>>
      %1028 = tpu.memref_squeeze %1027 : memref<1x!tpu.dma_semaphore, #tpu.memory_space<semaphore_mem>> -> memref<!tpu.dma_semaphore, #tpu.memory_space<semaphore_mem>>
      tpu.wait_dma2 semaphore(%1028 : memref<!tpu.dma_semaphore, #tpu.memory_space<semaphore_mem>>) src(%1025 : memref<4x128xf32, #tpu.memory_space<any>>) dst(%1026 : memref<4x128xf32, #tpu.memory_space<any>>)
    } else {
    }
    %c64_i32_563 = arith.constant 64 : i32
    %850 = arith.muli %arg0, %c64_i32_563 : i32
    %c29_i32_564 = arith.constant 29 : i32
    %851 = arith.addi %850, %c29_i32_564 : i32
    %852 = arith.cmpi slt, %851, %0 : i32
    %853 = arith.extui %852 : i1 to i32
    %c13_i32_565 = arith.constant 13 : i32
    %c0_i32_566 = arith.constant 0 : i32
    %854 = arith.cmpi ne, %853, %c0_i32_566 : i32
    scf.if %854 {
      %c0_i32_703 = arith.constant 0 : i32
      %1025 = tpu.memref_slice %arg3[%179, %c0_i32_703] : memref<40x128xf32, #tpu.memory_space<any>> -> memref<4x128xf32, #tpu.memory_space<any>>
      %c0_i32_704 = arith.constant 0 : i32
      %1026 = tpu.memref_slice %arg4[%180, %c0_i32_704] : memref<256x128xf32, #tpu.memory_space<any>> -> memref<4x128xf32, #tpu.memory_space<any>>
      %1027 = tpu.memref_slice %arg5[%c13_i32_565] : memref<16x!tpu.dma_semaphore, #tpu.memory_space<semaphore_mem>> -> memref<1x!tpu.dma_semaphore, #tpu.memory_space<semaphore_mem>>
      %1028 = tpu.memref_squeeze %1027 : memref<1x!tpu.dma_semaphore, #tpu.memory_space<semaphore_mem>> -> memref<!tpu.dma_semaphore, #tpu.memory_space<semaphore_mem>>
      tpu.wait_dma2 semaphore(%1028 : memref<!tpu.dma_semaphore, #tpu.memory_space<semaphore_mem>>) src(%1025 : memref<4x128xf32, #tpu.memory_space<any>>) dst(%1026 : memref<4x128xf32, #tpu.memory_space<any>>)
    } else {
    }
    %c64_i32_567 = arith.constant 64 : i32
    %855 = arith.muli %arg0, %c64_i32_567 : i32
    %c30_i32_568 = arith.constant 30 : i32
    %856 = arith.addi %855, %c30_i32_568 : i32
    %857 = arith.cmpi slt, %856, %0 : i32
    %858 = arith.extui %857 : i1 to i32
    %c14_i32_569 = arith.constant 14 : i32
    %c0_i32_570 = arith.constant 0 : i32
    %859 = arith.cmpi ne, %858, %c0_i32_570 : i32
    scf.if %859 {
      %c0_i32_703 = arith.constant 0 : i32
      %1025 = tpu.memref_slice %arg3[%185, %c0_i32_703] : memref<40x128xf32, #tpu.memory_space<any>> -> memref<4x128xf32, #tpu.memory_space<any>>
      %c0_i32_704 = arith.constant 0 : i32
      %1026 = tpu.memref_slice %arg4[%186, %c0_i32_704] : memref<256x128xf32, #tpu.memory_space<any>> -> memref<4x128xf32, #tpu.memory_space<any>>
      %1027 = tpu.memref_slice %arg5[%c14_i32_569] : memref<16x!tpu.dma_semaphore, #tpu.memory_space<semaphore_mem>> -> memref<1x!tpu.dma_semaphore, #tpu.memory_space<semaphore_mem>>
      %1028 = tpu.memref_squeeze %1027 : memref<1x!tpu.dma_semaphore, #tpu.memory_space<semaphore_mem>> -> memref<!tpu.dma_semaphore, #tpu.memory_space<semaphore_mem>>
      tpu.wait_dma2 semaphore(%1028 : memref<!tpu.dma_semaphore, #tpu.memory_space<semaphore_mem>>) src(%1025 : memref<4x128xf32, #tpu.memory_space<any>>) dst(%1026 : memref<4x128xf32, #tpu.memory_space<any>>)
    } else {
    }
    %c64_i32_571 = arith.constant 64 : i32
    %860 = arith.muli %arg0, %c64_i32_571 : i32
    %c31_i32_572 = arith.constant 31 : i32
    %861 = arith.addi %860, %c31_i32_572 : i32
    %862 = arith.cmpi slt, %861, %0 : i32
    %863 = arith.extui %862 : i1 to i32
    %c15_i32_573 = arith.constant 15 : i32
    %c0_i32_574 = arith.constant 0 : i32
    %864 = arith.cmpi ne, %863, %c0_i32_574 : i32
    scf.if %864 {
      %c0_i32_703 = arith.constant 0 : i32
      %1025 = tpu.memref_slice %arg3[%191, %c0_i32_703] : memref<40x128xf32, #tpu.memory_space<any>> -> memref<4x128xf32, #tpu.memory_space<any>>
      %c0_i32_704 = arith.constant 0 : i32
      %1026 = tpu.memref_slice %arg4[%192, %c0_i32_704] : memref<256x128xf32, #tpu.memory_space<any>> -> memref<4x128xf32, #tpu.memory_space<any>>
      %1027 = tpu.memref_slice %arg5[%c15_i32_573] : memref<16x!tpu.dma_semaphore, #tpu.memory_space<semaphore_mem>> -> memref<1x!tpu.dma_semaphore, #tpu.memory_space<semaphore_mem>>
      %1028 = tpu.memref_squeeze %1027 : memref<1x!tpu.dma_semaphore, #tpu.memory_space<semaphore_mem>> -> memref<!tpu.dma_semaphore, #tpu.memory_space<semaphore_mem>>
      tpu.wait_dma2 semaphore(%1028 : memref<!tpu.dma_semaphore, #tpu.memory_space<semaphore_mem>>) src(%1025 : memref<4x128xf32, #tpu.memory_space<any>>) dst(%1026 : memref<4x128xf32, #tpu.memory_space<any>>)
    } else {
    }
    %c64_i32_575 = arith.constant 64 : i32
    %865 = arith.muli %arg0, %c64_i32_575 : i32
    %c32_i32_576 = arith.constant 32 : i32
    %866 = arith.addi %865, %c32_i32_576 : i32
    %867 = arith.cmpi slt, %866, %0 : i32
    %868 = arith.extui %867 : i1 to i32
    %c0_i32_577 = arith.constant 0 : i32
    %c0_i32_578 = arith.constant 0 : i32
    %869 = arith.cmpi ne, %868, %c0_i32_578 : i32
    scf.if %869 {
      %c0_i32_703 = arith.constant 0 : i32
      %1025 = tpu.memref_slice %arg3[%197, %c0_i32_703] : memref<40x128xf32, #tpu.memory_space<any>> -> memref<4x128xf32, #tpu.memory_space<any>>
      %c0_i32_704 = arith.constant 0 : i32
      %1026 = tpu.memref_slice %arg4[%198, %c0_i32_704] : memref<256x128xf32, #tpu.memory_space<any>> -> memref<4x128xf32, #tpu.memory_space<any>>
      %1027 = tpu.memref_slice %arg5[%c0_i32_577] : memref<16x!tpu.dma_semaphore, #tpu.memory_space<semaphore_mem>> -> memref<1x!tpu.dma_semaphore, #tpu.memory_space<semaphore_mem>>
      %1028 = tpu.memref_squeeze %1027 : memref<1x!tpu.dma_semaphore, #tpu.memory_space<semaphore_mem>> -> memref<!tpu.dma_semaphore, #tpu.memory_space<semaphore_mem>>
      tpu.wait_dma2 semaphore(%1028 : memref<!tpu.dma_semaphore, #tpu.memory_space<semaphore_mem>>) src(%1025 : memref<4x128xf32, #tpu.memory_space<any>>) dst(%1026 : memref<4x128xf32, #tpu.memory_space<any>>)
    } else {
    }
    %c64_i32_579 = arith.constant 64 : i32
    %870 = arith.muli %arg0, %c64_i32_579 : i32
    %c33_i32_580 = arith.constant 33 : i32
    %871 = arith.addi %870, %c33_i32_580 : i32
    %872 = arith.cmpi slt, %871, %0 : i32
    %873 = arith.extui %872 : i1 to i32
    %c1_i32_581 = arith.constant 1 : i32
    %c0_i32_582 = arith.constant 0 : i32
    %874 = arith.cmpi ne, %873, %c0_i32_582 : i32
    scf.if %874 {
      %c0_i32_703 = arith.constant 0 : i32
      %1025 = tpu.memref_slice %arg3[%203, %c0_i32_703] : memref<40x128xf32, #tpu.memory_space<any>> -> memref<4x128xf32, #tpu.memory_space<any>>
      %c0_i32_704 = arith.constant 0 : i32
      %1026 = tpu.memref_slice %arg4[%204, %c0_i32_704] : memref<256x128xf32, #tpu.memory_space<any>> -> memref<4x128xf32, #tpu.memory_space<any>>
      %1027 = tpu.memref_slice %arg5[%c1_i32_581] : memref<16x!tpu.dma_semaphore, #tpu.memory_space<semaphore_mem>> -> memref<1x!tpu.dma_semaphore, #tpu.memory_space<semaphore_mem>>
      %1028 = tpu.memref_squeeze %1027 : memref<1x!tpu.dma_semaphore, #tpu.memory_space<semaphore_mem>> -> memref<!tpu.dma_semaphore, #tpu.memory_space<semaphore_mem>>
      tpu.wait_dma2 semaphore(%1028 : memref<!tpu.dma_semaphore, #tpu.memory_space<semaphore_mem>>) src(%1025 : memref<4x128xf32, #tpu.memory_space<any>>) dst(%1026 : memref<4x128xf32, #tpu.memory_space<any>>)
    } else {
    }
    %c64_i32_583 = arith.constant 64 : i32
    %875 = arith.muli %arg0, %c64_i32_583 : i32
    %c34_i32_584 = arith.constant 34 : i32
    %876 = arith.addi %875, %c34_i32_584 : i32
    %877 = arith.cmpi slt, %876, %0 : i32
    %878 = arith.extui %877 : i1 to i32
    %c2_i32_585 = arith.constant 2 : i32
    %c0_i32_586 = arith.constant 0 : i32
    %879 = arith.cmpi ne, %878, %c0_i32_586 : i32
    scf.if %879 {
      %c0_i32_703 = arith.constant 0 : i32
      %1025 = tpu.memref_slice %arg3[%209, %c0_i32_703] : memref<40x128xf32, #tpu.memory_space<any>> -> memref<4x128xf32, #tpu.memory_space<any>>
      %c0_i32_704 = arith.constant 0 : i32
      %1026 = tpu.memref_slice %arg4[%210, %c0_i32_704] : memref<256x128xf32, #tpu.memory_space<any>> -> memref<4x128xf32, #tpu.memory_space<any>>
      %1027 = tpu.memref_slice %arg5[%c2_i32_585] : memref<16x!tpu.dma_semaphore, #tpu.memory_space<semaphore_mem>> -> memref<1x!tpu.dma_semaphore, #tpu.memory_space<semaphore_mem>>
      %1028 = tpu.memref_squeeze %1027 : memref<1x!tpu.dma_semaphore, #tpu.memory_space<semaphore_mem>> -> memref<!tpu.dma_semaphore, #tpu.memory_space<semaphore_mem>>
      tpu.wait_dma2 semaphore(%1028 : memref<!tpu.dma_semaphore, #tpu.memory_space<semaphore_mem>>) src(%1025 : memref<4x128xf32, #tpu.memory_space<any>>) dst(%1026 : memref<4x128xf32, #tpu.memory_space<any>>)
    } else {
    }
    %c64_i32_587 = arith.constant 64 : i32
    %880 = arith.muli %arg0, %c64_i32_587 : i32
    %c35_i32_588 = arith.constant 35 : i32
    %881 = arith.addi %880, %c35_i32_588 : i32
    %882 = arith.cmpi slt, %881, %0 : i32
    %883 = arith.extui %882 : i1 to i32
    %c3_i32_589 = arith.constant 3 : i32
    %c0_i32_590 = arith.constant 0 : i32
    %884 = arith.cmpi ne, %883, %c0_i32_590 : i32
    scf.if %884 {
      %c0_i32_703 = arith.constant 0 : i32
      %1025 = tpu.memref_slice %arg3[%215, %c0_i32_703] : memref<40x128xf32, #tpu.memory_space<any>> -> memref<4x128xf32, #tpu.memory_space<any>>
      %c0_i32_704 = arith.constant 0 : i32
      %1026 = tpu.memref_slice %arg4[%216, %c0_i32_704] : memref<256x128xf32, #tpu.memory_space<any>> -> memref<4x128xf32, #tpu.memory_space<any>>
      %1027 = tpu.memref_slice %arg5[%c3_i32_589] : memref<16x!tpu.dma_semaphore, #tpu.memory_space<semaphore_mem>> -> memref<1x!tpu.dma_semaphore, #tpu.memory_space<semaphore_mem>>
      %1028 = tpu.memref_squeeze %1027 : memref<1x!tpu.dma_semaphore, #tpu.memory_space<semaphore_mem>> -> memref<!tpu.dma_semaphore, #tpu.memory_space<semaphore_mem>>
      tpu.wait_dma2 semaphore(%1028 : memref<!tpu.dma_semaphore, #tpu.memory_space<semaphore_mem>>) src(%1025 : memref<4x128xf32, #tpu.memory_space<any>>) dst(%1026 : memref<4x128xf32, #tpu.memory_space<any>>)
    } else {
    }
    %c64_i32_591 = arith.constant 64 : i32
    %885 = arith.muli %arg0, %c64_i32_591 : i32
    %c36_i32_592 = arith.constant 36 : i32
    %886 = arith.addi %885, %c36_i32_592 : i32
    %887 = arith.cmpi slt, %886, %0 : i32
    %888 = arith.extui %887 : i1 to i32
    %c4_i32_593 = arith.constant 4 : i32
    %c0_i32_594 = arith.constant 0 : i32
    %889 = arith.cmpi ne, %888, %c0_i32_594 : i32
    scf.if %889 {
      %c0_i32_703 = arith.constant 0 : i32
      %1025 = tpu.memref_slice %arg3[%221, %c0_i32_703] : memref<40x128xf32, #tpu.memory_space<any>> -> memref<4x128xf32, #tpu.memory_space<any>>
      %c0_i32_704 = arith.constant 0 : i32
      %1026 = tpu.memref_slice %arg4[%222, %c0_i32_704] : memref<256x128xf32, #tpu.memory_space<any>> -> memref<4x128xf32, #tpu.memory_space<any>>
      %1027 = tpu.memref_slice %arg5[%c4_i32_593] : memref<16x!tpu.dma_semaphore, #tpu.memory_space<semaphore_mem>> -> memref<1x!tpu.dma_semaphore, #tpu.memory_space<semaphore_mem>>
      %1028 = tpu.memref_squeeze %1027 : memref<1x!tpu.dma_semaphore, #tpu.memory_space<semaphore_mem>> -> memref<!tpu.dma_semaphore, #tpu.memory_space<semaphore_mem>>
      tpu.wait_dma2 semaphore(%1028 : memref<!tpu.dma_semaphore, #tpu.memory_space<semaphore_mem>>) src(%1025 : memref<4x128xf32, #tpu.memory_space<any>>) dst(%1026 : memref<4x128xf32, #tpu.memory_space<any>>)
    } else {
    }
    %c64_i32_595 = arith.constant 64 : i32
    %890 = arith.muli %arg0, %c64_i32_595 : i32
    %c37_i32_596 = arith.constant 37 : i32
    %891 = arith.addi %890, %c37_i32_596 : i32
    %892 = arith.cmpi slt, %891, %0 : i32
    %893 = arith.extui %892 : i1 to i32
    %c5_i32_597 = arith.constant 5 : i32
    %c0_i32_598 = arith.constant 0 : i32
    %894 = arith.cmpi ne, %893, %c0_i32_598 : i32
    scf.if %894 {
      %c0_i32_703 = arith.constant 0 : i32
      %1025 = tpu.memref_slice %arg3[%227, %c0_i32_703] : memref<40x128xf32, #tpu.memory_space<any>> -> memref<4x128xf32, #tpu.memory_space<any>>
      %c0_i32_704 = arith.constant 0 : i32
      %1026 = tpu.memref_slice %arg4[%228, %c0_i32_704] : memref<256x128xf32, #tpu.memory_space<any>> -> memref<4x128xf32, #tpu.memory_space<any>>
      %1027 = tpu.memref_slice %arg5[%c5_i32_597] : memref<16x!tpu.dma_semaphore, #tpu.memory_space<semaphore_mem>> -> memref<1x!tpu.dma_semaphore, #tpu.memory_space<semaphore_mem>>
      %1028 = tpu.memref_squeeze %1027 : memref<1x!tpu.dma_semaphore, #tpu.memory_space<semaphore_mem>> -> memref<!tpu.dma_semaphore, #tpu.memory_space<semaphore_mem>>
      tpu.wait_dma2 semaphore(%1028 : memref<!tpu.dma_semaphore, #tpu.memory_space<semaphore_mem>>) src(%1025 : memref<4x128xf32, #tpu.memory_space<any>>) dst(%1026 : memref<4x128xf32, #tpu.memory_space<any>>)
    } else {
    }
    %c64_i32_599 = arith.constant 64 : i32
    %895 = arith.muli %arg0, %c64_i32_599 : i32
    %c38_i32_600 = arith.constant 38 : i32
    %896 = arith.addi %895, %c38_i32_600 : i32
    %897 = arith.cmpi slt, %896, %0 : i32
    %898 = arith.extui %897 : i1 to i32
    %c6_i32_601 = arith.constant 6 : i32
    %c0_i32_602 = arith.constant 0 : i32
    %899 = arith.cmpi ne, %898, %c0_i32_602 : i32
    scf.if %899 {
      %c0_i32_703 = arith.constant 0 : i32
      %1025 = tpu.memref_slice %arg3[%233, %c0_i32_703] : memref<40x128xf32, #tpu.memory_space<any>> -> memref<4x128xf32, #tpu.memory_space<any>>
      %c0_i32_704 = arith.constant 0 : i32
      %1026 = tpu.memref_slice %arg4[%234, %c0_i32_704] : memref<256x128xf32, #tpu.memory_space<any>> -> memref<4x128xf32, #tpu.memory_space<any>>
      %1027 = tpu.memref_slice %arg5[%c6_i32_601] : memref<16x!tpu.dma_semaphore, #tpu.memory_space<semaphore_mem>> -> memref<1x!tpu.dma_semaphore, #tpu.memory_space<semaphore_mem>>
      %1028 = tpu.memref_squeeze %1027 : memref<1x!tpu.dma_semaphore, #tpu.memory_space<semaphore_mem>> -> memref<!tpu.dma_semaphore, #tpu.memory_space<semaphore_mem>>
      tpu.wait_dma2 semaphore(%1028 : memref<!tpu.dma_semaphore, #tpu.memory_space<semaphore_mem>>) src(%1025 : memref<4x128xf32, #tpu.memory_space<any>>) dst(%1026 : memref<4x128xf32, #tpu.memory_space<any>>)
    } else {
    }
    %c64_i32_603 = arith.constant 64 : i32
    %900 = arith.muli %arg0, %c64_i32_603 : i32
    %c39_i32_604 = arith.constant 39 : i32
    %901 = arith.addi %900, %c39_i32_604 : i32
    %902 = arith.cmpi slt, %901, %0 : i32
    %903 = arith.extui %902 : i1 to i32
    %c7_i32_605 = arith.constant 7 : i32
    %c0_i32_606 = arith.constant 0 : i32
    %904 = arith.cmpi ne, %903, %c0_i32_606 : i32
    scf.if %904 {
      %c0_i32_703 = arith.constant 0 : i32
      %1025 = tpu.memref_slice %arg3[%239, %c0_i32_703] : memref<40x128xf32, #tpu.memory_space<any>> -> memref<4x128xf32, #tpu.memory_space<any>>
      %c0_i32_704 = arith.constant 0 : i32
      %1026 = tpu.memref_slice %arg4[%240, %c0_i32_704] : memref<256x128xf32, #tpu.memory_space<any>> -> memref<4x128xf32, #tpu.memory_space<any>>
      %1027 = tpu.memref_slice %arg5[%c7_i32_605] : memref<16x!tpu.dma_semaphore, #tpu.memory_space<semaphore_mem>> -> memref<1x!tpu.dma_semaphore, #tpu.memory_space<semaphore_mem>>
      %1028 = tpu.memref_squeeze %1027 : memref<1x!tpu.dma_semaphore, #tpu.memory_space<semaphore_mem>> -> memref<!tpu.dma_semaphore, #tpu.memory_space<semaphore_mem>>
      tpu.wait_dma2 semaphore(%1028 : memref<!tpu.dma_semaphore, #tpu.memory_space<semaphore_mem>>) src(%1025 : memref<4x128xf32, #tpu.memory_space<any>>) dst(%1026 : memref<4x128xf32, #tpu.memory_space<any>>)
    } else {
    }
    %c64_i32_607 = arith.constant 64 : i32
    %905 = arith.muli %arg0, %c64_i32_607 : i32
    %c40_i32_608 = arith.constant 40 : i32
    %906 = arith.addi %905, %c40_i32_608 : i32
    %907 = arith.cmpi slt, %906, %0 : i32
    %908 = arith.extui %907 : i1 to i32
    %c8_i32_609 = arith.constant 8 : i32
    %c0_i32_610 = arith.constant 0 : i32
    %909 = arith.cmpi ne, %908, %c0_i32_610 : i32
    scf.if %909 {
      %c0_i32_703 = arith.constant 0 : i32
      %1025 = tpu.memref_slice %arg3[%245, %c0_i32_703] : memref<40x128xf32, #tpu.memory_space<any>> -> memref<4x128xf32, #tpu.memory_space<any>>
      %c0_i32_704 = arith.constant 0 : i32
      %1026 = tpu.memref_slice %arg4[%246, %c0_i32_704] : memref<256x128xf32, #tpu.memory_space<any>> -> memref<4x128xf32, #tpu.memory_space<any>>
      %1027 = tpu.memref_slice %arg5[%c8_i32_609] : memref<16x!tpu.dma_semaphore, #tpu.memory_space<semaphore_mem>> -> memref<1x!tpu.dma_semaphore, #tpu.memory_space<semaphore_mem>>
      %1028 = tpu.memref_squeeze %1027 : memref<1x!tpu.dma_semaphore, #tpu.memory_space<semaphore_mem>> -> memref<!tpu.dma_semaphore, #tpu.memory_space<semaphore_mem>>
      tpu.wait_dma2 semaphore(%1028 : memref<!tpu.dma_semaphore, #tpu.memory_space<semaphore_mem>>) src(%1025 : memref<4x128xf32, #tpu.memory_space<any>>) dst(%1026 : memref<4x128xf32, #tpu.memory_space<any>>)
    } else {
    }
    %c64_i32_611 = arith.constant 64 : i32
    %910 = arith.muli %arg0, %c64_i32_611 : i32
    %c41_i32_612 = arith.constant 41 : i32
    %911 = arith.addi %910, %c41_i32_612 : i32
    %912 = arith.cmpi slt, %911, %0 : i32
    %913 = arith.extui %912 : i1 to i32
    %c9_i32_613 = arith.constant 9 : i32
    %c0_i32_614 = arith.constant 0 : i32
    %914 = arith.cmpi ne, %913, %c0_i32_614 : i32
    scf.if %914 {
      %c0_i32_703 = arith.constant 0 : i32
      %1025 = tpu.memref_slice %arg3[%251, %c0_i32_703] : memref<40x128xf32, #tpu.memory_space<any>> -> memref<4x128xf32, #tpu.memory_space<any>>
      %c0_i32_704 = arith.constant 0 : i32
      %1026 = tpu.memref_slice %arg4[%252, %c0_i32_704] : memref<256x128xf32, #tpu.memory_space<any>> -> memref<4x128xf32, #tpu.memory_space<any>>
      %1027 = tpu.memref_slice %arg5[%c9_i32_613] : memref<16x!tpu.dma_semaphore, #tpu.memory_space<semaphore_mem>> -> memref<1x!tpu.dma_semaphore, #tpu.memory_space<semaphore_mem>>
      %1028 = tpu.memref_squeeze %1027 : memref<1x!tpu.dma_semaphore, #tpu.memory_space<semaphore_mem>> -> memref<!tpu.dma_semaphore, #tpu.memory_space<semaphore_mem>>
      tpu.wait_dma2 semaphore(%1028 : memref<!tpu.dma_semaphore, #tpu.memory_space<semaphore_mem>>) src(%1025 : memref<4x128xf32, #tpu.memory_space<any>>) dst(%1026 : memref<4x128xf32, #tpu.memory_space<any>>)
    } else {
    }
    %c64_i32_615 = arith.constant 64 : i32
    %915 = arith.muli %arg0, %c64_i32_615 : i32
    %c42_i32_616 = arith.constant 42 : i32
    %916 = arith.addi %915, %c42_i32_616 : i32
    %917 = arith.cmpi slt, %916, %0 : i32
    %918 = arith.extui %917 : i1 to i32
    %c10_i32_617 = arith.constant 10 : i32
    %c0_i32_618 = arith.constant 0 : i32
    %919 = arith.cmpi ne, %918, %c0_i32_618 : i32
    scf.if %919 {
      %c0_i32_703 = arith.constant 0 : i32
      %1025 = tpu.memref_slice %arg3[%257, %c0_i32_703] : memref<40x128xf32, #tpu.memory_space<any>> -> memref<4x128xf32, #tpu.memory_space<any>>
      %c0_i32_704 = arith.constant 0 : i32
      %1026 = tpu.memref_slice %arg4[%258, %c0_i32_704] : memref<256x128xf32, #tpu.memory_space<any>> -> memref<4x128xf32, #tpu.memory_space<any>>
      %1027 = tpu.memref_slice %arg5[%c10_i32_617] : memref<16x!tpu.dma_semaphore, #tpu.memory_space<semaphore_mem>> -> memref<1x!tpu.dma_semaphore, #tpu.memory_space<semaphore_mem>>
      %1028 = tpu.memref_squeeze %1027 : memref<1x!tpu.dma_semaphore, #tpu.memory_space<semaphore_mem>> -> memref<!tpu.dma_semaphore, #tpu.memory_space<semaphore_mem>>
      tpu.wait_dma2 semaphore(%1028 : memref<!tpu.dma_semaphore, #tpu.memory_space<semaphore_mem>>) src(%1025 : memref<4x128xf32, #tpu.memory_space<any>>) dst(%1026 : memref<4x128xf32, #tpu.memory_space<any>>)
    } else {
    }
    %c64_i32_619 = arith.constant 64 : i32
    %920 = arith.muli %arg0, %c64_i32_619 : i32
    %c43_i32_620 = arith.constant 43 : i32
    %921 = arith.addi %920, %c43_i32_620 : i32
    %922 = arith.cmpi slt, %921, %0 : i32
    %923 = arith.extui %922 : i1 to i32
    %c11_i32_621 = arith.constant 11 : i32
    %c0_i32_622 = arith.constant 0 : i32
    %924 = arith.cmpi ne, %923, %c0_i32_622 : i32
    scf.if %924 {
      %c0_i32_703 = arith.constant 0 : i32
      %1025 = tpu.memref_slice %arg3[%263, %c0_i32_703] : memref<40x128xf32, #tpu.memory_space<any>> -> memref<4x128xf32, #tpu.memory_space<any>>
      %c0_i32_704 = arith.constant 0 : i32
      %1026 = tpu.memref_slice %arg4[%264, %c0_i32_704] : memref<256x128xf32, #tpu.memory_space<any>> -> memref<4x128xf32, #tpu.memory_space<any>>
      %1027 = tpu.memref_slice %arg5[%c11_i32_621] : memref<16x!tpu.dma_semaphore, #tpu.memory_space<semaphore_mem>> -> memref<1x!tpu.dma_semaphore, #tpu.memory_space<semaphore_mem>>
      %1028 = tpu.memref_squeeze %1027 : memref<1x!tpu.dma_semaphore, #tpu.memory_space<semaphore_mem>> -> memref<!tpu.dma_semaphore, #tpu.memory_space<semaphore_mem>>
      tpu.wait_dma2 semaphore(%1028 : memref<!tpu.dma_semaphore, #tpu.memory_space<semaphore_mem>>) src(%1025 : memref<4x128xf32, #tpu.memory_space<any>>) dst(%1026 : memref<4x128xf32, #tpu.memory_space<any>>)
    } else {
    }
    %c64_i32_623 = arith.constant 64 : i32
    %925 = arith.muli %arg0, %c64_i32_623 : i32
    %c44_i32_624 = arith.constant 44 : i32
    %926 = arith.addi %925, %c44_i32_624 : i32
    %927 = arith.cmpi slt, %926, %0 : i32
    %928 = arith.extui %927 : i1 to i32
    %c12_i32_625 = arith.constant 12 : i32
    %c0_i32_626 = arith.constant 0 : i32
    %929 = arith.cmpi ne, %928, %c0_i32_626 : i32
    scf.if %929 {
      %c0_i32_703 = arith.constant 0 : i32
      %1025 = tpu.memref_slice %arg3[%269, %c0_i32_703] : memref<40x128xf32, #tpu.memory_space<any>> -> memref<4x128xf32, #tpu.memory_space<any>>
      %c0_i32_704 = arith.constant 0 : i32
      %1026 = tpu.memref_slice %arg4[%270, %c0_i32_704] : memref<256x128xf32, #tpu.memory_space<any>> -> memref<4x128xf32, #tpu.memory_space<any>>
      %1027 = tpu.memref_slice %arg5[%c12_i32_625] : memref<16x!tpu.dma_semaphore, #tpu.memory_space<semaphore_mem>> -> memref<1x!tpu.dma_semaphore, #tpu.memory_space<semaphore_mem>>
      %1028 = tpu.memref_squeeze %1027 : memref<1x!tpu.dma_semaphore, #tpu.memory_space<semaphore_mem>> -> memref<!tpu.dma_semaphore, #tpu.memory_space<semaphore_mem>>
      tpu.wait_dma2 semaphore(%1028 : memref<!tpu.dma_semaphore, #tpu.memory_space<semaphore_mem>>) src(%1025 : memref<4x128xf32, #tpu.memory_space<any>>) dst(%1026 : memref<4x128xf32, #tpu.memory_space<any>>)
    } else {
    }
    %c64_i32_627 = arith.constant 64 : i32
    %930 = arith.muli %arg0, %c64_i32_627 : i32
    %c45_i32_628 = arith.constant 45 : i32
    %931 = arith.addi %930, %c45_i32_628 : i32
    %932 = arith.cmpi slt, %931, %0 : i32
    %933 = arith.extui %932 : i1 to i32
    %c13_i32_629 = arith.constant 13 : i32
    %c0_i32_630 = arith.constant 0 : i32
    %934 = arith.cmpi ne, %933, %c0_i32_630 : i32
    scf.if %934 {
      %c0_i32_703 = arith.constant 0 : i32
      %1025 = tpu.memref_slice %arg3[%275, %c0_i32_703] : memref<40x128xf32, #tpu.memory_space<any>> -> memref<4x128xf32, #tpu.memory_space<any>>
      %c0_i32_704 = arith.constant 0 : i32
      %1026 = tpu.memref_slice %arg4[%276, %c0_i32_704] : memref<256x128xf32, #tpu.memory_space<any>> -> memref<4x128xf32, #tpu.memory_space<any>>
      %1027 = tpu.memref_slice %arg5[%c13_i32_629] : memref<16x!tpu.dma_semaphore, #tpu.memory_space<semaphore_mem>> -> memref<1x!tpu.dma_semaphore, #tpu.memory_space<semaphore_mem>>
      %1028 = tpu.memref_squeeze %1027 : memref<1x!tpu.dma_semaphore, #tpu.memory_space<semaphore_mem>> -> memref<!tpu.dma_semaphore, #tpu.memory_space<semaphore_mem>>
      tpu.wait_dma2 semaphore(%1028 : memref<!tpu.dma_semaphore, #tpu.memory_space<semaphore_mem>>) src(%1025 : memref<4x128xf32, #tpu.memory_space<any>>) dst(%1026 : memref<4x128xf32, #tpu.memory_space<any>>)
    } else {
    }
    %c64_i32_631 = arith.constant 64 : i32
    %935 = arith.muli %arg0, %c64_i32_631 : i32
    %c46_i32_632 = arith.constant 46 : i32
    %936 = arith.addi %935, %c46_i32_632 : i32
    %937 = arith.cmpi slt, %936, %0 : i32
    %938 = arith.extui %937 : i1 to i32
    %c14_i32_633 = arith.constant 14 : i32
    %c0_i32_634 = arith.constant 0 : i32
    %939 = arith.cmpi ne, %938, %c0_i32_634 : i32
    scf.if %939 {
      %c0_i32_703 = arith.constant 0 : i32
      %1025 = tpu.memref_slice %arg3[%281, %c0_i32_703] : memref<40x128xf32, #tpu.memory_space<any>> -> memref<4x128xf32, #tpu.memory_space<any>>
      %c0_i32_704 = arith.constant 0 : i32
      %1026 = tpu.memref_slice %arg4[%282, %c0_i32_704] : memref<256x128xf32, #tpu.memory_space<any>> -> memref<4x128xf32, #tpu.memory_space<any>>
      %1027 = tpu.memref_slice %arg5[%c14_i32_633] : memref<16x!tpu.dma_semaphore, #tpu.memory_space<semaphore_mem>> -> memref<1x!tpu.dma_semaphore, #tpu.memory_space<semaphore_mem>>
      %1028 = tpu.memref_squeeze %1027 : memref<1x!tpu.dma_semaphore, #tpu.memory_space<semaphore_mem>> -> memref<!tpu.dma_semaphore, #tpu.memory_space<semaphore_mem>>
      tpu.wait_dma2 semaphore(%1028 : memref<!tpu.dma_semaphore, #tpu.memory_space<semaphore_mem>>) src(%1025 : memref<4x128xf32, #tpu.memory_space<any>>) dst(%1026 : memref<4x128xf32, #tpu.memory_space<any>>)
    } else {
    }
    %c64_i32_635 = arith.constant 64 : i32
    %940 = arith.muli %arg0, %c64_i32_635 : i32
    %c47_i32_636 = arith.constant 47 : i32
    %941 = arith.addi %940, %c47_i32_636 : i32
    %942 = arith.cmpi slt, %941, %0 : i32
    %943 = arith.extui %942 : i1 to i32
    %c15_i32_637 = arith.constant 15 : i32
    %c0_i32_638 = arith.constant 0 : i32
    %944 = arith.cmpi ne, %943, %c0_i32_638 : i32
    scf.if %944 {
      %c0_i32_703 = arith.constant 0 : i32
      %1025 = tpu.memref_slice %arg3[%287, %c0_i32_703] : memref<40x128xf32, #tpu.memory_space<any>> -> memref<4x128xf32, #tpu.memory_space<any>>
      %c0_i32_704 = arith.constant 0 : i32
      %1026 = tpu.memref_slice %arg4[%288, %c0_i32_704] : memref<256x128xf32, #tpu.memory_space<any>> -> memref<4x128xf32, #tpu.memory_space<any>>
      %1027 = tpu.memref_slice %arg5[%c15_i32_637] : memref<16x!tpu.dma_semaphore, #tpu.memory_space<semaphore_mem>> -> memref<1x!tpu.dma_semaphore, #tpu.memory_space<semaphore_mem>>
      %1028 = tpu.memref_squeeze %1027 : memref<1x!tpu.dma_semaphore, #tpu.memory_space<semaphore_mem>> -> memref<!tpu.dma_semaphore, #tpu.memory_space<semaphore_mem>>
      tpu.wait_dma2 semaphore(%1028 : memref<!tpu.dma_semaphore, #tpu.memory_space<semaphore_mem>>) src(%1025 : memref<4x128xf32, #tpu.memory_space<any>>) dst(%1026 : memref<4x128xf32, #tpu.memory_space<any>>)
    } else {
    }
    %c64_i32_639 = arith.constant 64 : i32
    %945 = arith.muli %arg0, %c64_i32_639 : i32
    %c48_i32_640 = arith.constant 48 : i32
    %946 = arith.addi %945, %c48_i32_640 : i32
    %947 = arith.cmpi slt, %946, %0 : i32
    %948 = arith.extui %947 : i1 to i32
    %c0_i32_641 = arith.constant 0 : i32
    %c0_i32_642 = arith.constant 0 : i32
    %949 = arith.cmpi ne, %948, %c0_i32_642 : i32
    scf.if %949 {
      %c0_i32_703 = arith.constant 0 : i32
      %1025 = tpu.memref_slice %arg3[%293, %c0_i32_703] : memref<40x128xf32, #tpu.memory_space<any>> -> memref<4x128xf32, #tpu.memory_space<any>>
      %c0_i32_704 = arith.constant 0 : i32
      %1026 = tpu.memref_slice %arg4[%294, %c0_i32_704] : memref<256x128xf32, #tpu.memory_space<any>> -> memref<4x128xf32, #tpu.memory_space<any>>
      %1027 = tpu.memref_slice %arg5[%c0_i32_641] : memref<16x!tpu.dma_semaphore, #tpu.memory_space<semaphore_mem>> -> memref<1x!tpu.dma_semaphore, #tpu.memory_space<semaphore_mem>>
      %1028 = tpu.memref_squeeze %1027 : memref<1x!tpu.dma_semaphore, #tpu.memory_space<semaphore_mem>> -> memref<!tpu.dma_semaphore, #tpu.memory_space<semaphore_mem>>
      tpu.wait_dma2 semaphore(%1028 : memref<!tpu.dma_semaphore, #tpu.memory_space<semaphore_mem>>) src(%1025 : memref<4x128xf32, #tpu.memory_space<any>>) dst(%1026 : memref<4x128xf32, #tpu.memory_space<any>>)
    } else {
    }
    %c64_i32_643 = arith.constant 64 : i32
    %950 = arith.muli %arg0, %c64_i32_643 : i32
    %c49_i32_644 = arith.constant 49 : i32
    %951 = arith.addi %950, %c49_i32_644 : i32
    %952 = arith.cmpi slt, %951, %0 : i32
    %953 = arith.extui %952 : i1 to i32
    %c1_i32_645 = arith.constant 1 : i32
    %c0_i32_646 = arith.constant 0 : i32
    %954 = arith.cmpi ne, %953, %c0_i32_646 : i32
    scf.if %954 {
      %c0_i32_703 = arith.constant 0 : i32
      %1025 = tpu.memref_slice %arg3[%299, %c0_i32_703] : memref<40x128xf32, #tpu.memory_space<any>> -> memref<4x128xf32, #tpu.memory_space<any>>
      %c0_i32_704 = arith.constant 0 : i32
      %1026 = tpu.memref_slice %arg4[%300, %c0_i32_704] : memref<256x128xf32, #tpu.memory_space<any>> -> memref<4x128xf32, #tpu.memory_space<any>>
      %1027 = tpu.memref_slice %arg5[%c1_i32_645] : memref<16x!tpu.dma_semaphore, #tpu.memory_space<semaphore_mem>> -> memref<1x!tpu.dma_semaphore, #tpu.memory_space<semaphore_mem>>
      %1028 = tpu.memref_squeeze %1027 : memref<1x!tpu.dma_semaphore, #tpu.memory_space<semaphore_mem>> -> memref<!tpu.dma_semaphore, #tpu.memory_space<semaphore_mem>>
      tpu.wait_dma2 semaphore(%1028 : memref<!tpu.dma_semaphore, #tpu.memory_space<semaphore_mem>>) src(%1025 : memref<4x128xf32, #tpu.memory_space<any>>) dst(%1026 : memref<4x128xf32, #tpu.memory_space<any>>)
    } else {
    }
    %c64_i32_647 = arith.constant 64 : i32
    %955 = arith.muli %arg0, %c64_i32_647 : i32
    %c50_i32_648 = arith.constant 50 : i32
    %956 = arith.addi %955, %c50_i32_648 : i32
    %957 = arith.cmpi slt, %956, %0 : i32
    %958 = arith.extui %957 : i1 to i32
    %c2_i32_649 = arith.constant 2 : i32
    %c0_i32_650 = arith.constant 0 : i32
    %959 = arith.cmpi ne, %958, %c0_i32_650 : i32
    scf.if %959 {
      %c0_i32_703 = arith.constant 0 : i32
      %1025 = tpu.memref_slice %arg3[%305, %c0_i32_703] : memref<40x128xf32, #tpu.memory_space<any>> -> memref<4x128xf32, #tpu.memory_space<any>>
      %c0_i32_704 = arith.constant 0 : i32
      %1026 = tpu.memref_slice %arg4[%306, %c0_i32_704] : memref<256x128xf32, #tpu.memory_space<any>> -> memref<4x128xf32, #tpu.memory_space<any>>
      %1027 = tpu.memref_slice %arg5[%c2_i32_649] : memref<16x!tpu.dma_semaphore, #tpu.memory_space<semaphore_mem>> -> memref<1x!tpu.dma_semaphore, #tpu.memory_space<semaphore_mem>>
      %1028 = tpu.memref_squeeze %1027 : memref<1x!tpu.dma_semaphore, #tpu.memory_space<semaphore_mem>> -> memref<!tpu.dma_semaphore, #tpu.memory_space<semaphore_mem>>
      tpu.wait_dma2 semaphore(%1028 : memref<!tpu.dma_semaphore, #tpu.memory_space<semaphore_mem>>) src(%1025 : memref<4x128xf32, #tpu.memory_space<any>>) dst(%1026 : memref<4x128xf32, #tpu.memory_space<any>>)
    } else {
    }
    %c64_i32_651 = arith.constant 64 : i32
    %960 = arith.muli %arg0, %c64_i32_651 : i32
    %c51_i32_652 = arith.constant 51 : i32
    %961 = arith.addi %960, %c51_i32_652 : i32
    %962 = arith.cmpi slt, %961, %0 : i32
    %963 = arith.extui %962 : i1 to i32
    %c3_i32_653 = arith.constant 3 : i32
    %c0_i32_654 = arith.constant 0 : i32
    %964 = arith.cmpi ne, %963, %c0_i32_654 : i32
    scf.if %964 {
      %c0_i32_703 = arith.constant 0 : i32
      %1025 = tpu.memref_slice %arg3[%311, %c0_i32_703] : memref<40x128xf32, #tpu.memory_space<any>> -> memref<4x128xf32, #tpu.memory_space<any>>
      %c0_i32_704 = arith.constant 0 : i32
      %1026 = tpu.memref_slice %arg4[%312, %c0_i32_704] : memref<256x128xf32, #tpu.memory_space<any>> -> memref<4x128xf32, #tpu.memory_space<any>>
      %1027 = tpu.memref_slice %arg5[%c3_i32_653] : memref<16x!tpu.dma_semaphore, #tpu.memory_space<semaphore_mem>> -> memref<1x!tpu.dma_semaphore, #tpu.memory_space<semaphore_mem>>
      %1028 = tpu.memref_squeeze %1027 : memref<1x!tpu.dma_semaphore, #tpu.memory_space<semaphore_mem>> -> memref<!tpu.dma_semaphore, #tpu.memory_space<semaphore_mem>>
      tpu.wait_dma2 semaphore(%1028 : memref<!tpu.dma_semaphore, #tpu.memory_space<semaphore_mem>>) src(%1025 : memref<4x128xf32, #tpu.memory_space<any>>) dst(%1026 : memref<4x128xf32, #tpu.memory_space<any>>)
    } else {
    }
    %c64_i32_655 = arith.constant 64 : i32
    %965 = arith.muli %arg0, %c64_i32_655 : i32
    %c52_i32_656 = arith.constant 52 : i32
    %966 = arith.addi %965, %c52_i32_656 : i32
    %967 = arith.cmpi slt, %966, %0 : i32
    %968 = arith.extui %967 : i1 to i32
    %c4_i32_657 = arith.constant 4 : i32
    %c0_i32_658 = arith.constant 0 : i32
    %969 = arith.cmpi ne, %968, %c0_i32_658 : i32
    scf.if %969 {
      %c0_i32_703 = arith.constant 0 : i32
      %1025 = tpu.memref_slice %arg3[%317, %c0_i32_703] : memref<40x128xf32, #tpu.memory_space<any>> -> memref<4x128xf32, #tpu.memory_space<any>>
      %c0_i32_704 = arith.constant 0 : i32
      %1026 = tpu.memref_slice %arg4[%318, %c0_i32_704] : memref<256x128xf32, #tpu.memory_space<any>> -> memref<4x128xf32, #tpu.memory_space<any>>
      %1027 = tpu.memref_slice %arg5[%c4_i32_657] : memref<16x!tpu.dma_semaphore, #tpu.memory_space<semaphore_mem>> -> memref<1x!tpu.dma_semaphore, #tpu.memory_space<semaphore_mem>>
      %1028 = tpu.memref_squeeze %1027 : memref<1x!tpu.dma_semaphore, #tpu.memory_space<semaphore_mem>> -> memref<!tpu.dma_semaphore, #tpu.memory_space<semaphore_mem>>
      tpu.wait_dma2 semaphore(%1028 : memref<!tpu.dma_semaphore, #tpu.memory_space<semaphore_mem>>) src(%1025 : memref<4x128xf32, #tpu.memory_space<any>>) dst(%1026 : memref<4x128xf32, #tpu.memory_space<any>>)
    } else {
    }
    %c64_i32_659 = arith.constant 64 : i32
    %970 = arith.muli %arg0, %c64_i32_659 : i32
    %c53_i32_660 = arith.constant 53 : i32
    %971 = arith.addi %970, %c53_i32_660 : i32
    %972 = arith.cmpi slt, %971, %0 : i32
    %973 = arith.extui %972 : i1 to i32
    %c5_i32_661 = arith.constant 5 : i32
    %c0_i32_662 = arith.constant 0 : i32
    %974 = arith.cmpi ne, %973, %c0_i32_662 : i32
    scf.if %974 {
      %c0_i32_703 = arith.constant 0 : i32
      %1025 = tpu.memref_slice %arg3[%323, %c0_i32_703] : memref<40x128xf32, #tpu.memory_space<any>> -> memref<4x128xf32, #tpu.memory_space<any>>
      %c0_i32_704 = arith.constant 0 : i32
      %1026 = tpu.memref_slice %arg4[%324, %c0_i32_704] : memref<256x128xf32, #tpu.memory_space<any>> -> memref<4x128xf32, #tpu.memory_space<any>>
      %1027 = tpu.memref_slice %arg5[%c5_i32_661] : memref<16x!tpu.dma_semaphore, #tpu.memory_space<semaphore_mem>> -> memref<1x!tpu.dma_semaphore, #tpu.memory_space<semaphore_mem>>
      %1028 = tpu.memref_squeeze %1027 : memref<1x!tpu.dma_semaphore, #tpu.memory_space<semaphore_mem>> -> memref<!tpu.dma_semaphore, #tpu.memory_space<semaphore_mem>>
      tpu.wait_dma2 semaphore(%1028 : memref<!tpu.dma_semaphore, #tpu.memory_space<semaphore_mem>>) src(%1025 : memref<4x128xf32, #tpu.memory_space<any>>) dst(%1026 : memref<4x128xf32, #tpu.memory_space<any>>)
    } else {
    }
    %c64_i32_663 = arith.constant 64 : i32
    %975 = arith.muli %arg0, %c64_i32_663 : i32
    %c54_i32_664 = arith.constant 54 : i32
    %976 = arith.addi %975, %c54_i32_664 : i32
    %977 = arith.cmpi slt, %976, %0 : i32
    %978 = arith.extui %977 : i1 to i32
    %c6_i32_665 = arith.constant 6 : i32
    %c0_i32_666 = arith.constant 0 : i32
    %979 = arith.cmpi ne, %978, %c0_i32_666 : i32
    scf.if %979 {
      %c0_i32_703 = arith.constant 0 : i32
      %1025 = tpu.memref_slice %arg3[%329, %c0_i32_703] : memref<40x128xf32, #tpu.memory_space<any>> -> memref<4x128xf32, #tpu.memory_space<any>>
      %c0_i32_704 = arith.constant 0 : i32
      %1026 = tpu.memref_slice %arg4[%330, %c0_i32_704] : memref<256x128xf32, #tpu.memory_space<any>> -> memref<4x128xf32, #tpu.memory_space<any>>
      %1027 = tpu.memref_slice %arg5[%c6_i32_665] : memref<16x!tpu.dma_semaphore, #tpu.memory_space<semaphore_mem>> -> memref<1x!tpu.dma_semaphore, #tpu.memory_space<semaphore_mem>>
      %1028 = tpu.memref_squeeze %1027 : memref<1x!tpu.dma_semaphore, #tpu.memory_space<semaphore_mem>> -> memref<!tpu.dma_semaphore, #tpu.memory_space<semaphore_mem>>
      tpu.wait_dma2 semaphore(%1028 : memref<!tpu.dma_semaphore, #tpu.memory_space<semaphore_mem>>) src(%1025 : memref<4x128xf32, #tpu.memory_space<any>>) dst(%1026 : memref<4x128xf32, #tpu.memory_space<any>>)
    } else {
    }
    %c64_i32_667 = arith.constant 64 : i32
    %980 = arith.muli %arg0, %c64_i32_667 : i32
    %c55_i32_668 = arith.constant 55 : i32
    %981 = arith.addi %980, %c55_i32_668 : i32
    %982 = arith.cmpi slt, %981, %0 : i32
    %983 = arith.extui %982 : i1 to i32
    %c7_i32_669 = arith.constant 7 : i32
    %c0_i32_670 = arith.constant 0 : i32
    %984 = arith.cmpi ne, %983, %c0_i32_670 : i32
    scf.if %984 {
      %c0_i32_703 = arith.constant 0 : i32
      %1025 = tpu.memref_slice %arg3[%335, %c0_i32_703] : memref<40x128xf32, #tpu.memory_space<any>> -> memref<4x128xf32, #tpu.memory_space<any>>
      %c0_i32_704 = arith.constant 0 : i32
      %1026 = tpu.memref_slice %arg4[%336, %c0_i32_704] : memref<256x128xf32, #tpu.memory_space<any>> -> memref<4x128xf32, #tpu.memory_space<any>>
      %1027 = tpu.memref_slice %arg5[%c7_i32_669] : memref<16x!tpu.dma_semaphore, #tpu.memory_space<semaphore_mem>> -> memref<1x!tpu.dma_semaphore, #tpu.memory_space<semaphore_mem>>
      %1028 = tpu.memref_squeeze %1027 : memref<1x!tpu.dma_semaphore, #tpu.memory_space<semaphore_mem>> -> memref<!tpu.dma_semaphore, #tpu.memory_space<semaphore_mem>>
      tpu.wait_dma2 semaphore(%1028 : memref<!tpu.dma_semaphore, #tpu.memory_space<semaphore_mem>>) src(%1025 : memref<4x128xf32, #tpu.memory_space<any>>) dst(%1026 : memref<4x128xf32, #tpu.memory_space<any>>)
    } else {
    }
    %c64_i32_671 = arith.constant 64 : i32
    %985 = arith.muli %arg0, %c64_i32_671 : i32
    %c56_i32_672 = arith.constant 56 : i32
    %986 = arith.addi %985, %c56_i32_672 : i32
    %987 = arith.cmpi slt, %986, %0 : i32
    %988 = arith.extui %987 : i1 to i32
    %c8_i32_673 = arith.constant 8 : i32
    %c0_i32_674 = arith.constant 0 : i32
    %989 = arith.cmpi ne, %988, %c0_i32_674 : i32
    scf.if %989 {
      %c0_i32_703 = arith.constant 0 : i32
      %1025 = tpu.memref_slice %arg3[%341, %c0_i32_703] : memref<40x128xf32, #tpu.memory_space<any>> -> memref<4x128xf32, #tpu.memory_space<any>>
      %c0_i32_704 = arith.constant 0 : i32
      %1026 = tpu.memref_slice %arg4[%342, %c0_i32_704] : memref<256x128xf32, #tpu.memory_space<any>> -> memref<4x128xf32, #tpu.memory_space<any>>
      %1027 = tpu.memref_slice %arg5[%c8_i32_673] : memref<16x!tpu.dma_semaphore, #tpu.memory_space<semaphore_mem>> -> memref<1x!tpu.dma_semaphore, #tpu.memory_space<semaphore_mem>>
      %1028 = tpu.memref_squeeze %1027 : memref<1x!tpu.dma_semaphore, #tpu.memory_space<semaphore_mem>> -> memref<!tpu.dma_semaphore, #tpu.memory_space<semaphore_mem>>
      tpu.wait_dma2 semaphore(%1028 : memref<!tpu.dma_semaphore, #tpu.memory_space<semaphore_mem>>) src(%1025 : memref<4x128xf32, #tpu.memory_space<any>>) dst(%1026 : memref<4x128xf32, #tpu.memory_space<any>>)
    } else {
    }
    %c64_i32_675 = arith.constant 64 : i32
    %990 = arith.muli %arg0, %c64_i32_675 : i32
    %c57_i32_676 = arith.constant 57 : i32
    %991 = arith.addi %990, %c57_i32_676 : i32
    %992 = arith.cmpi slt, %991, %0 : i32
    %993 = arith.extui %992 : i1 to i32
    %c9_i32_677 = arith.constant 9 : i32
    %c0_i32_678 = arith.constant 0 : i32
    %994 = arith.cmpi ne, %993, %c0_i32_678 : i32
    scf.if %994 {
      %c0_i32_703 = arith.constant 0 : i32
      %1025 = tpu.memref_slice %arg3[%347, %c0_i32_703] : memref<40x128xf32, #tpu.memory_space<any>> -> memref<4x128xf32, #tpu.memory_space<any>>
      %c0_i32_704 = arith.constant 0 : i32
      %1026 = tpu.memref_slice %arg4[%348, %c0_i32_704] : memref<256x128xf32, #tpu.memory_space<any>> -> memref<4x128xf32, #tpu.memory_space<any>>
      %1027 = tpu.memref_slice %arg5[%c9_i32_677] : memref<16x!tpu.dma_semaphore, #tpu.memory_space<semaphore_mem>> -> memref<1x!tpu.dma_semaphore, #tpu.memory_space<semaphore_mem>>
      %1028 = tpu.memref_squeeze %1027 : memref<1x!tpu.dma_semaphore, #tpu.memory_space<semaphore_mem>> -> memref<!tpu.dma_semaphore, #tpu.memory_space<semaphore_mem>>
      tpu.wait_dma2 semaphore(%1028 : memref<!tpu.dma_semaphore, #tpu.memory_space<semaphore_mem>>) src(%1025 : memref<4x128xf32, #tpu.memory_space<any>>) dst(%1026 : memref<4x128xf32, #tpu.memory_space<any>>)
    } else {
    }
    %c64_i32_679 = arith.constant 64 : i32
    %995 = arith.muli %arg0, %c64_i32_679 : i32
    %c58_i32_680 = arith.constant 58 : i32
    %996 = arith.addi %995, %c58_i32_680 : i32
    %997 = arith.cmpi slt, %996, %0 : i32
    %998 = arith.extui %997 : i1 to i32
    %c10_i32_681 = arith.constant 10 : i32
    %c0_i32_682 = arith.constant 0 : i32
    %999 = arith.cmpi ne, %998, %c0_i32_682 : i32
    scf.if %999 {
      %c0_i32_703 = arith.constant 0 : i32
      %1025 = tpu.memref_slice %arg3[%353, %c0_i32_703] : memref<40x128xf32, #tpu.memory_space<any>> -> memref<4x128xf32, #tpu.memory_space<any>>
      %c0_i32_704 = arith.constant 0 : i32
      %1026 = tpu.memref_slice %arg4[%354, %c0_i32_704] : memref<256x128xf32, #tpu.memory_space<any>> -> memref<4x128xf32, #tpu.memory_space<any>>
      %1027 = tpu.memref_slice %arg5[%c10_i32_681] : memref<16x!tpu.dma_semaphore, #tpu.memory_space<semaphore_mem>> -> memref<1x!tpu.dma_semaphore, #tpu.memory_space<semaphore_mem>>
      %1028 = tpu.memref_squeeze %1027 : memref<1x!tpu.dma_semaphore, #tpu.memory_space<semaphore_mem>> -> memref<!tpu.dma_semaphore, #tpu.memory_space<semaphore_mem>>
      tpu.wait_dma2 semaphore(%1028 : memref<!tpu.dma_semaphore, #tpu.memory_space<semaphore_mem>>) src(%1025 : memref<4x128xf32, #tpu.memory_space<any>>) dst(%1026 : memref<4x128xf32, #tpu.memory_space<any>>)
    } else {
    }
    %c64_i32_683 = arith.constant 64 : i32
    %1000 = arith.muli %arg0, %c64_i32_683 : i32
    %c59_i32_684 = arith.constant 59 : i32
    %1001 = arith.addi %1000, %c59_i32_684 : i32
    %1002 = arith.cmpi slt, %1001, %0 : i32
    %1003 = arith.extui %1002 : i1 to i32
    %c11_i32_685 = arith.constant 11 : i32
    %c0_i32_686 = arith.constant 0 : i32
    %1004 = arith.cmpi ne, %1003, %c0_i32_686 : i32
    scf.if %1004 {
      %c0_i32_703 = arith.constant 0 : i32
      %1025 = tpu.memref_slice %arg3[%359, %c0_i32_703] : memref<40x128xf32, #tpu.memory_space<any>> -> memref<4x128xf32, #tpu.memory_space<any>>
      %c0_i32_704 = arith.constant 0 : i32
      %1026 = tpu.memref_slice %arg4[%360, %c0_i32_704] : memref<256x128xf32, #tpu.memory_space<any>> -> memref<4x128xf32, #tpu.memory_space<any>>
      %1027 = tpu.memref_slice %arg5[%c11_i32_685] : memref<16x!tpu.dma_semaphore, #tpu.memory_space<semaphore_mem>> -> memref<1x!tpu.dma_semaphore, #tpu.memory_space<semaphore_mem>>
      %1028 = tpu.memref_squeeze %1027 : memref<1x!tpu.dma_semaphore, #tpu.memory_space<semaphore_mem>> -> memref<!tpu.dma_semaphore, #tpu.memory_space<semaphore_mem>>
      tpu.wait_dma2 semaphore(%1028 : memref<!tpu.dma_semaphore, #tpu.memory_space<semaphore_mem>>) src(%1025 : memref<4x128xf32, #tpu.memory_space<any>>) dst(%1026 : memref<4x128xf32, #tpu.memory_space<any>>)
    } else {
    }
    %c64_i32_687 = arith.constant 64 : i32
    %1005 = arith.muli %arg0, %c64_i32_687 : i32
    %c60_i32_688 = arith.constant 60 : i32
    %1006 = arith.addi %1005, %c60_i32_688 : i32
    %1007 = arith.cmpi slt, %1006, %0 : i32
    %1008 = arith.extui %1007 : i1 to i32
    %c12_i32_689 = arith.constant 12 : i32
    %c0_i32_690 = arith.constant 0 : i32
    %1009 = arith.cmpi ne, %1008, %c0_i32_690 : i32
    scf.if %1009 {
      %c0_i32_703 = arith.constant 0 : i32
      %1025 = tpu.memref_slice %arg3[%365, %c0_i32_703] : memref<40x128xf32, #tpu.memory_space<any>> -> memref<4x128xf32, #tpu.memory_space<any>>
      %c0_i32_704 = arith.constant 0 : i32
      %1026 = tpu.memref_slice %arg4[%366, %c0_i32_704] : memref<256x128xf32, #tpu.memory_space<any>> -> memref<4x128xf32, #tpu.memory_space<any>>
      %1027 = tpu.memref_slice %arg5[%c12_i32_689] : memref<16x!tpu.dma_semaphore, #tpu.memory_space<semaphore_mem>> -> memref<1x!tpu.dma_semaphore, #tpu.memory_space<semaphore_mem>>
      %1028 = tpu.memref_squeeze %1027 : memref<1x!tpu.dma_semaphore, #tpu.memory_space<semaphore_mem>> -> memref<!tpu.dma_semaphore, #tpu.memory_space<semaphore_mem>>
      tpu.wait_dma2 semaphore(%1028 : memref<!tpu.dma_semaphore, #tpu.memory_space<semaphore_mem>>) src(%1025 : memref<4x128xf32, #tpu.memory_space<any>>) dst(%1026 : memref<4x128xf32, #tpu.memory_space<any>>)
    } else {
    }
    %c64_i32_691 = arith.constant 64 : i32
    %1010 = arith.muli %arg0, %c64_i32_691 : i32
    %c61_i32_692 = arith.constant 61 : i32
    %1011 = arith.addi %1010, %c61_i32_692 : i32
    %1012 = arith.cmpi slt, %1011, %0 : i32
    %1013 = arith.extui %1012 : i1 to i32
    %c13_i32_693 = arith.constant 13 : i32
    %c0_i32_694 = arith.constant 0 : i32
    %1014 = arith.cmpi ne, %1013, %c0_i32_694 : i32
    scf.if %1014 {
      %c0_i32_703 = arith.constant 0 : i32
      %1025 = tpu.memref_slice %arg3[%371, %c0_i32_703] : memref<40x128xf32, #tpu.memory_space<any>> -> memref<4x128xf32, #tpu.memory_space<any>>
      %c0_i32_704 = arith.constant 0 : i32
      %1026 = tpu.memref_slice %arg4[%372, %c0_i32_704] : memref<256x128xf32, #tpu.memory_space<any>> -> memref<4x128xf32, #tpu.memory_space<any>>
      %1027 = tpu.memref_slice %arg5[%c13_i32_693] : memref<16x!tpu.dma_semaphore, #tpu.memory_space<semaphore_mem>> -> memref<1x!tpu.dma_semaphore, #tpu.memory_space<semaphore_mem>>
      %1028 = tpu.memref_squeeze %1027 : memref<1x!tpu.dma_semaphore, #tpu.memory_space<semaphore_mem>> -> memref<!tpu.dma_semaphore, #tpu.memory_space<semaphore_mem>>
      tpu.wait_dma2 semaphore(%1028 : memref<!tpu.dma_semaphore, #tpu.memory_space<semaphore_mem>>) src(%1025 : memref<4x128xf32, #tpu.memory_space<any>>) dst(%1026 : memref<4x128xf32, #tpu.memory_space<any>>)
    } else {
    }
    %c64_i32_695 = arith.constant 64 : i32
    %1015 = arith.muli %arg0, %c64_i32_695 : i32
    %c62_i32_696 = arith.constant 62 : i32
    %1016 = arith.addi %1015, %c62_i32_696 : i32
    %1017 = arith.cmpi slt, %1016, %0 : i32
    %1018 = arith.extui %1017 : i1 to i32
    %c14_i32_697 = arith.constant 14 : i32
    %c0_i32_698 = arith.constant 0 : i32
    %1019 = arith.cmpi ne, %1018, %c0_i32_698 : i32
    scf.if %1019 {
      %c0_i32_703 = arith.constant 0 : i32
      %1025 = tpu.memref_slice %arg3[%377, %c0_i32_703] : memref<40x128xf32, #tpu.memory_space<any>> -> memref<4x128xf32, #tpu.memory_space<any>>
      %c0_i32_704 = arith.constant 0 : i32
      %1026 = tpu.memref_slice %arg4[%378, %c0_i32_704] : memref<256x128xf32, #tpu.memory_space<any>> -> memref<4x128xf32, #tpu.memory_space<any>>
      %1027 = tpu.memref_slice %arg5[%c14_i32_697] : memref<16x!tpu.dma_semaphore, #tpu.memory_space<semaphore_mem>> -> memref<1x!tpu.dma_semaphore, #tpu.memory_space<semaphore_mem>>
      %1028 = tpu.memref_squeeze %1027 : memref<1x!tpu.dma_semaphore, #tpu.memory_space<semaphore_mem>> -> memref<!tpu.dma_semaphore, #tpu.memory_space<semaphore_mem>>
      tpu.wait_dma2 semaphore(%1028 : memref<!tpu.dma_semaphore, #tpu.memory_space<semaphore_mem>>) src(%1025 : memref<4x128xf32, #tpu.memory_space<any>>) dst(%1026 : memref<4x128xf32, #tpu.memory_space<any>>)
    } else {
    }
    %c64_i32_699 = arith.constant 64 : i32
    %1020 = arith.muli %arg0, %c64_i32_699 : i32
    %c63_i32_700 = arith.constant 63 : i32
    %1021 = arith.addi %1020, %c63_i32_700 : i32
    %1022 = arith.cmpi slt, %1021, %0 : i32
    %1023 = arith.extui %1022 : i1 to i32
    %c15_i32_701 = arith.constant 15 : i32
    %c0_i32_702 = arith.constant 0 : i32
    %1024 = arith.cmpi ne, %1023, %c0_i32_702 : i32
    scf.if %1024 {
      %c0_i32_703 = arith.constant 0 : i32
      %1025 = tpu.memref_slice %arg3[%383, %c0_i32_703] : memref<40x128xf32, #tpu.memory_space<any>> -> memref<4x128xf32, #tpu.memory_space<any>>
      %c0_i32_704 = arith.constant 0 : i32
      %1026 = tpu.memref_slice %arg4[%384, %c0_i32_704] : memref<256x128xf32, #tpu.memory_space<any>> -> memref<4x128xf32, #tpu.memory_space<any>>
      %1027 = tpu.memref_slice %arg5[%c15_i32_701] : memref<16x!tpu.dma_semaphore, #tpu.memory_space<semaphore_mem>> -> memref<1x!tpu.dma_semaphore, #tpu.memory_space<semaphore_mem>>
      %1028 = tpu.memref_squeeze %1027 : memref<1x!tpu.dma_semaphore, #tpu.memory_space<semaphore_mem>> -> memref<!tpu.dma_semaphore, #tpu.memory_space<semaphore_mem>>
      tpu.wait_dma2 semaphore(%1028 : memref<!tpu.dma_semaphore, #tpu.memory_space<semaphore_mem>>) src(%1025 : memref<4x128xf32, #tpu.memory_space<any>>) dst(%1026 : memref<4x128xf32, #tpu.memory_space<any>>)
    } else {
    }
    return
  }
}

</mosaic_0001>

<bundles_post_ra>
// kernel: _remove_silence_device.2
= control target key start
LH: loop header
LB: loop body
LE: loop exit
PB: predicated region body
PF: predicated region fallthrough
CT: control target
= control target key end

     0   :  { %vm28_vm0 = vcmask 7168   ;;  %s78_s0 = inlined_call_operand.vmem [shape: f32[40,128], index: 0, kind: input, shape index: {}]   ;;  %s79_s1 = inlined_call_operand.vmem [shape: f32[40,1], index: 1, kind: output, shape index: {}]  }
   0x1   :  { %v8_v0 = vld [vmem:[%s78_s0] sm:$0xff]  ;;  %v10_v1 = vld [vmem:[%s78_s0 + $0x10] sm:$0xff]  ;;  %v9_v2 = vld [vmem:[%s78_s0 + $0x8] sm:$0xff] }
   0x2   :  { %v13_v3 = vmul.f32 %v8_v0, %v8_v0  ;;  %v15_v4 = vmul.f32 %v10_v1, %v10_v1  ;;  %v11_v5 = vld [vmem:[%s78_s0 + $0x18] sm:$0xff]  ;;  %v14_v6 = vmul.f32 %v9_v2, %v9_v2  ;;  %v12_v8 = vld [vmem:[%s78_s0 + $0x20] sm:$0xff] }
   0x3   :  { %v16_v7 = vmul.f32 %v11_v5, %v11_v5  ;;  %v17_v9 = vmul.f32 %v12_v8, %v12_v8 }
   0x4   :  { %18 = vadd.xlane.f32.xlu0 %v13_v3  ;;  %22 = vadd.xlane.f32.xlu1 %v15_v4 }
   0x8   :  { %20 = vadd.xlane.f32.xlu0 %v14_v6  ;;  %24 = vadd.xlane.f32.xlu1 %v16_v7 }
   0xc   :  { %26 = vadd.xlane.f32.xlu0 %v17_v9 }
  0x8d   :  { %v19_v10 = vpop.xlane.xlu0 %18  ;;  %v23_v11 = vpop.xlane.xlu1 %22 }
  0x8e   :  { %29 = vst.msk [vmem:[%s79_s1] sm:$0xff] %vm28_vm0, %v19_v10  ;;  %31 = vst.msk [vmem:[%s79_s1 + $0x10] sm:$0xff] %vm28_vm0, %v23_v11 }
  0x91   :  { %v21_v12 = vpop.xlane.xlu0 %20  ;;  %v25_v13 = vpop.xlane.xlu1 %24 }
  0x92   :  { %30 = vst.msk [vmem:[%s79_s1 + $0x8] sm:$0xff] %vm28_vm0, %v21_v12  ;;  %32 = vst.msk [vmem:[%s79_s1 + $0x18] sm:$0xff] %vm28_vm0, %v25_v13 }
  0x95   :  { %v27_v14 = vpop.xlane.xlu0 %26 }
  0x96   :  { %33 = vst.msk [vmem:[%s79_s1 + $0x20] sm:$0xff] %vm28_vm0, %v27_v14 }

// kernel: _remove_silence_device.3
= control target key start
LH: loop header
LB: loop body
LE: loop exit
PB: predicated region body
PF: predicated region fallthrough
CT: control target
= control target key end

     0   :  { %s7145_s0 = inlined_call_operand.vmem [shape: s32[64], index: 0, kind: input, shape index: {}]   ;;  %s7146_s1 = inlined_call_operand.<no memory space> [shape: s32[1], index: 1, kind: input, shape index: {}]   ;;  %s7147_s2 = inlined_call_operand.vmem [shape: f32[40,128], index: 2, kind: input, shape index: {}]   ;;  %s7148_s3 = inlined_call_operand.vmem [shape: f32[256,128], index: 3, kind: output, shape index: {}]  }
   0x1   :  { %s8_s14 = sshll.u32 %s7145_s0, 4  ;;  %s9_s14 = int_to_ptr.vmem [resolvable:$true] %s8_s14 }
   0x2   :  { %s5891_s15 = scalar_lea.vmem %s9_s14, 16  ;;  %p5896_p1 = scmp.lt.s32.totalorder %s9_s14, %s9_s14 }
   0x3   :  { %p5892_p0 = scmp.ne.s32.totalorder %s9_s14, %s5891_s15  ;;  %p5897_p2 = scmp.lt.s32.totalorder %s5891_s15, %s5891_s15 }
   0x5   :  { %p5898_p3 = por %p5897_p2, %p5896_p1 }
   0x7   :  { %p5899_p4 = pnand %p5898_p3, %p5892_p0 }
   0x9   :  { %5902 = shalt.err (!%p5899_p4)  }
   0xa   :  { %s6161_s16 = smov [#allocation4]  }
   0xb   :  { %11 = dma.vmem_to_smem %s9_s14, 16, %s6161_s16, [#allocation3] }
   0xc   :  { %5903 = dma.done.wait [#allocation3], 16 }
   0xd   :  { %5904 = vsyncadd [#allocation3], 4294967280 }
   0xe   :  { %14 = sfence }
   0xf   :  { %s6185_s17 = sld [smem:[#allocation4]]  ;;  %p5237_p5 = scmp.le.s32.totalorder %s7146_s1, 0 }
  0x10   :  { %s6187_s18 = sld [smem:[#allocation4 + $0x1]] }
  0x11   :  { %s6189_s19 = sld [smem:[#allocation4 + $0x2]] }
  0x12   :  { %s6191_s0 = sld [smem:[#allocation4 + $0x3]] }
  0x13   :  { %s6193_s20 = sld [smem:[#allocation4 + $0x4]] }
  0x14   :  { %s6195_s21 = sld [smem:[#allocation4 + $0x5]] }
  0x15   :  { %s6197_s22 = sld [smem:[#allocation4 + $0x6]] }
  0x16   :  { %s6199_s23 = sld [smem:[#allocation4 + $0x7]] }
  0x17   :  { %s6201_s24 = sld [smem:[#allocation4 + $0x8]] }
  0x18   :  { %s6203_s25 = sld [smem:[#allocation4 + $0x9]] }
  0x19   :  { %s6205_s26 = sld [smem:[#allocation4 + $0xa]] }
  0x1a   :  { %s6207_s27 = sld [smem:[#allocation4 + $0xb]] }
  0x1b   :  { %s6209_s28 = sld [smem:[#allocation4 + $0xc]] }
  0x1c   :  { %s6211_s29 = sld [smem:[#allocation4 + $0xd]] }
  0x1d   :  { %s6213_s30 = sld [smem:[#allocation4 + $0xe]] }
  0x1e   :  { %s6215_s4 = sld [smem:[#allocation4 + $0xf]] }
  0x1f   :  { %s6217_s5 = sld [smem:[#allocation4 + $0x10]] }
  0x20   :  { %s6219_s6 = sld [smem:[#allocation4 + $0x11]] }
  0x21   :  { %s6221_s7 = sld [smem:[#allocation4 + $0x12]] }
  0x22   :  { %s6223_s8 = sld [smem:[#allocation4 + $0x13]] }
  0x23   :  { %s6225_s9 = sld [smem:[#allocation4 + $0x14]] }
  0x24   :  { %s6227_s10 = sld [smem:[#allocation4 + $0x15]] }
  0x25   :  { %s6229_s11 = sld [smem:[#allocation4 + $0x16]] }
  0x26   :  { %7149 = sst [smem:[#allocation135_spill]] %s6219_s6 }
  0x27   :  { %7150 = sst [smem:[#allocation136_spill]] %s6221_s7 }
  0x28   :  { %7151 = sst [smem:[#allocation137_spill]] %s6223_s8 }
  0x29   :  { %7152 = sst [smem:[#allocation138_spill]] %s6225_s9 }
  0x2a   :  { %7153 = sst [smem:[#allocation139_spill]] %s6227_s10 }
  0x2b   :  { %7154 = sst [smem:[#allocation140_spill]] %s6229_s11 }
  0x2c   :  { %s6231_s12 = sld [smem:[#allocation4 + $0x17]] }
  0x2d   :  { %s6233_s13 = sld [smem:[#allocation4 + $0x18]] }
  0x2e   :  { %s6235_s14 = sld [smem:[#allocation4 + $0x19]] }
  0x2f   :  { %s6237_s15 = sld [smem:[#allocation4 + $0x1a]] }
  0x30   :  { %s6239_s16 = sld [smem:[#allocation4 + $0x1b]] }
  0x31   :  { %s6241_s6 = sld [smem:[#allocation4 + $0x1c]] }
  0x32   :  { %7155 = sst [smem:[#allocation141_spill]] %s6231_s12 }
  0x33   :  { %7156 = sst [smem:[#allocation142_spill]] %s6233_s13 }
  0x34   :  { %7157 = sst [smem:[#allocation143_spill]] %s6235_s14 }
  0x35   :  { %7158 = sst [smem:[#allocation144_spill]] %s6237_s15 }
  0x36   :  { %7159 = sst [smem:[#allocation145_spill]] %s6239_s16 }
  0x37   :  { %7160 = sst [smem:[#allocation146_spill]] %s6241_s6 }
  0x38   :  { %s6243_s7 = sld [smem:[#allocation4 + $0x1d]] }
  0x39   :  { %s6245_s8 = sld [smem:[#allocation4 + $0x1e]] }
  0x3a   :  { %s6247_s9 = sld [smem:[#allocation4 + $0x1f]] }
  0x3b   :  { %s6249_s10 = sld [smem:[#allocation4 + $0x20]] }
  0x3c   :  { %s6251_s11 = sld [smem:[#allocation4 + $0x21]] }
  0x3d   :  { %s6253_s12 = sld [smem:[#allocation4 + $0x22]] }
  0x3e   :  { %7161 = sst [smem:[#allocation147_spill]] %s6243_s7 }
  0x3f   :  { %7162 = sst [smem:[#allocation148_spill]] %s6245_s8 }
  0x40   :  { %7163 = sst [smem:[#allocation149_spill]] %s6247_s9 }
  0x41   :  { %7164 = sst [smem:[#allocation150_spill]] %s6249_s10 }
  0x42   :  { %7165 = sst [smem:[#allocation151_spill]] %s6251_s11 }
  0x43   :  { %7166 = sst [smem:[#allocation152_spill]] %s6253_s12 }
  0x44   :  { %s6255_s13 = sld [smem:[#allocation4 + $0x23]] }
  0x45   :  { %s6257_s14 = sld [smem:[#allocation4 + $0x24]] }
  0x46   :  { %s6259_s15 = sld [smem:[#allocation4 + $0x25]] }
  0x47   :  { %s6261_s16 = sld [smem:[#allocation4 + $0x26]] }
  0x48   :  { %s6263_s6 = sld [smem:[#allocation4 + $0x27]] }
  0x49   :  { %s6265_s7 = sld [smem:[#allocation4 + $0x28]] }
  0x4a   :  { %7167 = sst [smem:[#allocation153_spill]] %s6255_s13 }
  0x4b   :  { %7168 = sst [smem:[#allocation154_spill]] %s6257_s14 }
  0x4c   :  { %7169 = sst [smem:[#allocation155_spill]] %s6259_s15 }
  0x4d   :  { %7170 = sst [smem:[#allocation156_spill]] %s6261_s16 }
  0x4e   :  { %7171 = sst [smem:[#allocation157_spill]] %s6263_s6 }
  0x4f   :  { %7172 = sst [smem:[#allocation158_spill]] %s6265_s7 }
  0x50   :  { %s6267_s8 = sld [smem:[#allocation4 + $0x29]] }
  0x51   :  { %s6269_s9 = sld [smem:[#allocation4 + $0x2a]] }
  0x52   :  { %s6271_s10 = sld [smem:[#allocation4 + $0x2b]] }
  0x53   :  { %s6273_s11 = sld [smem:[#allocation4 + $0x2c]] }
  0x54   :  { %s6275_s12 = sld [smem:[#allocation4 + $0x2d]] }
  0x55   :  { %s6277_s13 = sld [smem:[#allocation4 + $0x2e]] }
  0x56   :  { %7173 = sst [smem:[#allocation159_spill]] %s6267_s8 }
  0x57   :  { %7174 = sst [smem:[#allocation160_spill]] %s6269_s9 }
  0x58   :  { %7175 = sst [smem:[#allocation161_spill]] %s6271_s10 }
  0x59   :  { %7176 = sst [smem:[#allocation162_spill]] %s6273_s11 }
  0x5a   :  { %7177 = sst [smem:[#allocation163_spill]] %s6275_s12 }
  0x5b   :  { %7178 = sst [smem:[#allocation164_spill]] %s6277_s13 }
  0x5c   :  { %s6279_s14 = sld [smem:[#allocation4 + $0x2f]] }
  0x5d   :  { %s6281_s15 = sld [smem:[#allocation4 + $0x30]] }
  0x5e   :  { %s6283_s16 = sld [smem:[#allocation4 + $0x31]] }
  0x5f   :  { %s6285_s6 = sld [smem:[#allocation4 + $0x32]] }
  0x60   :  { %s6287_s7 = sld [smem:[#allocation4 + $0x33]] }
  0x61   :  { %s6289_s8 = sld [smem:[#allocation4 + $0x34]] }
  0x62   :  { %7179 = sst [smem:[#allocation165_spill]] %s6279_s14 }
  0x63   :  { %7180 = sst [smem:[#allocation166_spill]] %s6281_s15 }
  0x64   :  { %7181 = sst [smem:[#allocation167_spill]] %s6283_s16 }
  0x65   :  { %7182 = sst [smem:[#allocation168_spill]] %s6285_s6 }
  0x66   :  { %7183 = sst [smem:[#allocation169_spill]] %s6287_s7 }
  0x67   :  { %7184 = sst [smem:[#allocation170_spill]] %s6289_s8 }
  0x68   :  { %s6291_s9 = sld [smem:[#allocation4 + $0x35]] }
  0x69   :  { %s6293_s10 = sld [smem:[#allocation4 + $0x36]] }
  0x6a   :  { %s6295_s11 = sld [smem:[#allocation4 + $0x37]] }
  0x6b   :  { %s6297_s12 = sld [smem:[#allocation4 + $0x38]] }
  0x6c   :  { %s6299_s13 = sld [smem:[#allocation4 + $0x39]] }
  0x6d   :  { %s6301_s14 = sld [smem:[#allocation4 + $0x3a]] }
  0x6e   :  { %7185 = sst [smem:[#allocation171_spill]] %s6291_s9 }
  0x6f   :  { %7186 = sst [smem:[#allocation172_spill]] %s6293_s10 }
  0x70   :  { %7187 = sst [smem:[#allocation173_spill]] %s6295_s11 }
  0x71   :  { %7188 = sst [smem:[#allocation174_spill]] %s6297_s12 }
  0x72   :  { %7189 = sst [smem:[#allocation175_spill]] %s6299_s13 }
  0x73   :  { %7190 = sst [smem:[#allocation176_spill]] %s6301_s14  ;;  %s4215_s14 = scalar_lea.vmem (!%p5237_p5), %s7147_s2, %s6185_s17 }
  0x74   :  { %s6303_s15 = sld [smem:[#allocation4 + $0x3b]] }
  0x75   :  { %s6305_s16 = sld [smem:[#allocation4 + $0x3c]] }
  0x76   :  { %s6307_s6 = sld [smem:[#allocation4 + $0x3d]] }
  0x77   :  { %s6309_s7 = sld [smem:[#allocation4 + $0x3e]] }
  0x78   :  { %s6311_s8 = sld [smem:[#allocation4 + $0x3f]] }
  0x7a   :  { %7191 = sst [smem:[#allocation177_spill]] %s6303_s15  ;;  %275 = sbr.rel (%p5237_p5) target bundleno = 130 (0x82), region = 5 }
  0x7c   :  { %7192 = sst [smem:[#allocation178_spill]] %s6307_s6 }
  0x7d   :  { %7193 = sst [smem:[#allocation179_spill]] %s6309_s7 }
  0x7e   :  { %7194 = sst [smem:[#allocation180_spill]] %s6311_s8 }
  0x7f   :  { %v5239_v0 = vld [vmem:[%s4215_s14 + $0x2] sm:$0xf] }
  0x80   :  { %297 = vst [vmem:[%s7148_s3] sm:$0xf] %v5239_v0 }
  0x81   :  { %323 = vsyncadd [#allocation2], 64 }
  0x82 PF:  { %p5241_p6 = scmp.le.s32.totalorder %s7146_s1, 1 }
  0x83   :  { %s4220_s8 = scalar_lea.vmem (!%p5241_p6), %s7147_s2, %s6187_s18 }
  0x84   :  { %327 = sbr.rel (%p5241_p6) target bundleno = 140 (0x8c), region = 39 }
  0x89   :  { %v5244_v1 = vld [vmem:[%s4220_s8 + $0x2] sm:$0xf] }
  0x8a   :  { %5245 = vst [vmem:[%s7148_s3 + $0x4] sm:$0xf] %v5244_v1 }
  0x8b   :  { %376 = vsyncadd [#allocation2 + $0x1], 64 }
  0x8c PF:  { %p5247_p7 = scmp.le.s32.totalorder %s7146_s1, 2 }
  0x8d   :  { %s4227_s14 = scalar_lea.vmem (!%p5247_p7), %s7147_s2, %s6189_s19 }
  0x8e   :  { %380 = sbr.rel (%p5247_p7) target bundleno = 150 (0x96), region = 73 }
  0x93   :  { %v5250_v2 = vld [vmem:[%s4227_s14 + $0x2] sm:$0xf] }
  0x94   :  { %5251 = vst [vmem:[%s7148_s3 + $0x8] sm:$0xf] %v5250_v2 }
  0x95   :  { %429 = vsyncadd [#allocation2 + $0x2], 64 }
  0x96 PF:  { %p5253_p8 = scmp.le.s32.totalorder %s7146_s1, 3 }
  0x97   :  { %s4234_s17 = scalar_lea.vmem (!%p5253_p8), %s7147_s2, %s6191_s0 }
  0x98   :  { %433 = sbr.rel (%p5253_p8) target bundleno = 160 (0xa0), region = 107 }
  0x9d   :  { %v5256_v3 = vld [vmem:[%s4234_s17 + $0x2] sm:$0xf] }
  0x9e   :  { %5257 = vst [vmem:[%s7148_s3 + $0xc] sm:$0xf] %v5256_v3 }
  0x9f   :  { %482 = vsyncadd [#allocation2 + $0x3], 64 }
  0xa0 PF:  { %p5259_p9 = scmp.le.s32.totalorder %s7146_s1, 4 }
  0xa1   :  { %s4241_s15 = scalar_lea.vmem (!%p5259_p9), %s7147_s2, %s6193_s20 }
  0xa2   :  { %486 = sbr.rel (%p5259_p9) target bundleno = 170 (0xaa), region = 141 }
  0xa7   :  { %v5262_v4 = vld [vmem:[%s4241_s15 + $0x2] sm:$0xf] }
  0xa8   :  { %5263 = vst [vmem:[%s7148_s3 + $0x10] sm:$0xf] %v5262_v4 }
  0xa9   :  { %535 = vsyncadd [#allocation2 + $0x4], 64 }
  0xaa PF:  { %p5265_p10 = scmp.le.s32.totalorder %s7146_s1, 5 }
  0xab   :  { %s4248_s17 = scalar_lea.vmem (!%p5265_p10), %s7147_s2, %s6195_s21 }
  0xac   :  { %539 = sbr.rel (%p5265_p10) target bundleno = 180 (0xb4), region = 175 }
  0xb1   :  { %v5268_v5 = vld [vmem:[%s4248_s17 + $0x2] sm:$0xf] }
  0xb2   :  { %5269 = vst [vmem:[%s7148_s3 + $0x14] sm:$0xf] %v5268_v5 }
  0xb3   :  { %588 = vsyncadd [#allocation2 + $0x5], 64 }
  0xb4 PF:  { %p5271_p11 = scmp.le.s32.totalorder %s7146_s1, 6 }
  0xb5   :  { %s4255_s14 = scalar_lea.vmem (!%p5271_p11), %s7147_s2, %s6197_s22 }
  0xb6   :  { %592 = sbr.rel (%p5271_p11) target bundleno = 190 (0xbe), region = 209 }
  0xbb   :  { %v5274_v6 = vld [vmem:[%s4255_s14 + $0x2] sm:$0xf] }
  0xbc   :  { %5275 = vst [vmem:[%s7148_s3 + $0x18] sm:$0xf] %v5274_v6 }
  0xbd   :  { %641 = vsyncadd [#allocation2 + $0x6], 64 }
  0xbe PF:  { %p5277_p12 = scmp.le.s32.totalorder %s7146_s1, 7 }
  0xbf   :  { %s4262_s10 = scalar_lea.vmem (!%p5277_p12), %s7147_s2, %s6199_s23 }
  0xc0   :  { %645 = sbr.rel (%p5277_p12) target bundleno = 200 (0xc8), region = 243 }
  0xc5   :  { %v5280_v7 = vld [vmem:[%s4262_s10 + $0x2] sm:$0xf] }
  0xc6   :  { %5281 = vst [vmem:[%s7148_s3 + $0x1c] sm:$0xf] %v5280_v7 }
  0xc7   :  { %694 = vsyncadd [#allocation2 + $0x7], 64 }
  0xc8 PF:  { %p5283_p13 = scmp.le.s32.totalorder %s7146_s1, 8 }
  0xc9   :  { %s4269_s13 = scalar_lea.vmem (!%p5283_p13), %s7147_s2, %s6201_s24 }
  0xca   :  { %698 = sbr.rel (%p5283_p13) target bundleno = 210 (0xd2), region = 277 }
  0xcf   :  { %v5286_v8 = vld [vmem:[%s4269_s13 + $0x2] sm:$0xf] }
  0xd0   :  { %5287 = vst [vmem:[%s7148_s3 + $0x20] sm:$0xf] %v5286_v8 }
  0xd1   :  { %747 = vsyncadd [#allocation2 + $0x8], 64 }
  0xd2 PF:  { %p5289_p0 = scmp.le.s32.totalorder %s7146_s1, 9 }
  0xd3   :  { %s4276_s18 = scalar_lea.vmem (!%p5289_p0), %s7147_s2, %s6203_s25 }
  0xd4   :  { %751 = sbr.rel (%p5289_p0) target bundleno = 220 (0xdc), region = 311 }
  0xd9   :  { %v5292_v9 = vld [vmem:[%s4276_s18 + $0x2] sm:$0xf] }
  0xda   :  { %5293 = vst [vmem:[%s7148_s3 + $0x24] sm:$0xf] %v5292_v9 }
  0xdb   :  { %800 = vsyncadd [#allocation2 + $0x9], 64 }
  0xdc PF:  { %p5295_p1 = scmp.le.s32.totalorder %s7146_s1, 10 }
  0xdd   :  { %s4283_s22 = scalar_lea.vmem (!%p5295_p1), %s7147_s2, %s6205_s26 }
  0xde   :  { %804 = sbr.rel (%p5295_p1) target bundleno = 230 (0xe6), region = 345 }
  0xe3   :  { %v5298_v10 = vld [vmem:[%s4283_s22 + $0x2] sm:$0xf] }
  0xe4   :  { %5299 = vst [vmem:[%s7148_s3 + $0x28] sm:$0xf] %v5298_v10 }
  0xe5   :  { %853 = vsyncadd [#allocation2 + $0xa], 64 }
  0xe6 PF:  { %p5301_p2 = scmp.le.s32.totalorder %s7146_s1, 11 }
  0xe7   :  { %s4290_s6 = scalar_lea.vmem (!%p5301_p2), %s7147_s2, %s6207_s27 }
  0xe8   :  { %857 = sbr.rel (%p5301_p2) target bundleno = 240 (0xf0), region = 379 }
  0xed   :  { %v5304_v11 = vld [vmem:[%s4290_s6 + $0x2] sm:$0xf] }
  0xee   :  { %5305 = vst [vmem:[%s7148_s3 + $0x2c] sm:$0xf] %v5304_v11 }
  0xef   :  { %906 = vsyncadd [#allocation2 + $0xb], 64 }
  0xf0 PF:  { %p5307_p3 = scmp.le.s32.totalorder %s7146_s1, 12 }
  0xf1   :  { %s4297_s18 = scalar_lea.vmem (!%p5307_p3), %s7147_s2, %s6209_s28 }
  0xf2   :  { %910 = sbr.rel (%p5307_p3) target bundleno = 250 (0xfa), region = 413 }
  0xf7   :  { %v5310_v12 = vld [vmem:[%s4297_s18 + $0x2] sm:$0xf] }
  0xf8   :  { %5311 = vst [vmem:[%s7148_s3 + $0x30] sm:$0xf] %v5310_v12 }
  0xf9   :  { %959 = vsyncadd [#allocation2 + $0xc], 64 }
  0xfa PF:  { %p5313_p4 = scmp.le.s32.totalorder %s7146_s1, 13 }
  0xfb   :  { %s4304_s12 = scalar_lea.vmem (!%p5313_p4), %s7147_s2, %s6211_s29 }
  0xfc   :  { %963 = sbr.rel (%p5313_p4) target bundleno = 260 (0x104), region = 447 }
 0x101   :  { %v5316_v13 = vld [vmem:[%s4304_s12 + $0x2] sm:$0xf] }
 0x102   :  { %5317 = vst [vmem:[%s7148_s3 + $0x34] sm:$0xf] %v5316_v13 }
 0x103   :  { %1012 = vsyncadd [#allocation2 + $0xd], 64 }
 0x104 PF:  { %p5319_p5 = scmp.le.s32.totalorder %s7146_s1, 14 }
 0x105   :  { %s4311_s19 = scalar_lea.vmem (!%p5319_p5), %s7147_s2, %s6213_s30 }
 0x106   :  { %1016 = sbr.rel (%p5319_p5) target bundleno = 270 (0x10e), region = 481 }
 0x10b   :  { %v5322_v14 = vld [vmem:[%s4311_s19 + $0x2] sm:$0xf] }
 0x10c   :  { %5323 = vst [vmem:[%s7148_s3 + $0x38] sm:$0xf] %v5322_v14 }
 0x10d   :  { %1065 = vsyncadd [#allocation2 + $0xe], 64 }
 0x10e PF:  { %p5325_p6 = scmp.le.s32.totalorder %s7146_s1, 15 }
 0x10f   :  { %s4318_s14 = scalar_lea.vmem (!%p5325_p6), %s7147_s2, %s6215_s4 }
 0x110   :  { %1069 = sbr.rel (%p5325_p6) target bundleno = 280 (0x118), region = 515 }
 0x115   :  { %v5328_v15 = vld [vmem:[%s4318_s14 + $0x2] sm:$0xf] }
 0x116   :  { %5329 = vst [vmem:[%s7148_s3 + $0x3c] sm:$0xf] %v5328_v15 }
 0x117   :  { %1118 = vsyncadd [#allocation2 + $0xf], 64 }
 0x118 PF:  { %p5331_p7 = scmp.le.s32.totalorder %s7146_s1, 16 }
 0x119   :  { %s4325_s24 = scalar_lea.vmem (!%p5331_p7), %s7147_s2, %s6217_s5 }
 0x11a   :  { %1122 = sbr.rel (%p5331_p7) target bundleno = 290 (0x122), region = 549 }
 0x11f   :  { %v5334_v16 = vld [vmem:[%s4325_s24 + $0x2] sm:$0xf] }
 0x120   :  { %5335 = vst [vmem:[%s7148_s3 + $0x40] sm:$0xf] %v5334_v16 }
 0x121   :  { %1170 = vsyncadd [#allocation2], 64 }
 0x122 PF:  { %p5337_p8 = scmp.le.s32.totalorder %s7146_s1, 17 }
 0x123   :  { %s7195_s12 = sld [smem:[#allocation135_spill]] (!%p5337_p8) }
 0x124   :  { %1174 = sbr.rel (%p5337_p8) target bundleno = 301 (0x12d), region = 583 }
 0x129   :  { %s4332_s17 = scalar_lea.vmem %s7147_s2, %s7195_s12 }
 0x12a   :  { %v5340_v17 = vld [vmem:[%s4332_s17 + $0x2] sm:$0xf] }
 0x12b   :  { %5341 = vst [vmem:[%s7148_s3 + $0x44] sm:$0xf] %v5340_v17 }
 0x12c   :  { %1223 = vsyncadd [#allocation2 + $0x1], 64 }
 0x12d PF:  { %p5343_p9 = scmp.le.s32.totalorder %s7146_s1, 18 }
 0x12e   :  { %s7196_s19 = sld [smem:[#allocation136_spill]] (!%p5343_p9) }
 0x12f   :  { %1227 = sbr.rel (%p5343_p9) target bundleno = 312 (0x138), region = 617 }
 0x134   :  { %s4339_s6 = scalar_lea.vmem %s7147_s2, %s7196_s19 }
 0x135   :  { %v5346_v18 = vld [vmem:[%s4339_s6 + $0x2] sm:$0xf] }
 0x136   :  { %5347 = vst [vmem:[%s7148_s3 + $0x48] sm:$0xf] %v5346_v18 }
 0x137   :  { %1276 = vsyncadd [#allocation2 + $0x2], 64 }
 0x138 PF:  { %p5349_p10 = scmp.le.s32.totalorder %s7146_s1, 19 }
 0x139   :  { %s7197_s15 = sld [smem:[#allocation137_spill]] (!%p5349_p10) }
 0x13a   :  { %1280 = sbr.rel (%p5349_p10) target bundleno = 323 (0x143), region = 651 }
 0x13f   :  { %s4346_s18 = scalar_lea.vmem %s7147_s2, %s7197_s15 }
 0x140   :  { %v5352_v19 = vld [vmem:[%s4346_s18 + $0x2] sm:$0xf] }
 0x141   :  { %5353 = vst [vmem:[%s7148_s3 + $0x4c] sm:$0xf] %v5352_v19 }
 0x142   :  { %1329 = vsyncadd [#allocation2 + $0x3], 64 }
 0x143 PF:  { %p5355_p11 = scmp.le.s32.totalorder %s7146_s1, 20 }
 0x144   :  { %s7198_s4 = sld [smem:[#allocation138_spill]] (!%p5355_p11) }
 0x145   :  { %1333 = sbr.rel (%p5355_p11) target bundleno = 334 (0x14e), region = 685 }
 0x14a   :  { %s4353_s12 = scalar_lea.vmem %s7147_s2, %s7198_s4 }
 0x14b   :  { %v5358_v20 = vld [vmem:[%s4353_s12 + $0x2] sm:$0xf] }
 0x14c   :  { %5359 = vst [vmem:[%s7148_s3 + $0x50] sm:$0xf] %v5358_v20 }
 0x14d   :  { %1382 = vsyncadd [#allocation2 + $0x4], 64 }
 0x14e PF:  { %p5361_p12 = scmp.le.s32.totalorder %s7146_s1, 21 }
 0x14f   :  { %s7199_s5 = sld [smem:[#allocation139_spill]] (!%p5361_p12) }
 0x150   :  { %1386 = sbr.rel (%p5361_p12) target bundleno = 345 (0x159), region = 719 }
 0x155   :  { %s4360_s19 = scalar_lea.vmem %s7147_s2, %s7199_s5 }
 0x156   :  { %v5364_v21 = vld [vmem:[%s4360_s19 + $0x2] sm:$0xf] }
 0x157   :  { %5365 = vst [vmem:[%s7148_s3 + $0x54] sm:$0xf] %v5364_v21 }
 0x158   :  { %1435 = vsyncadd [#allocation2 + $0x5], 64 }
 0x159 PF:  { %p5367_p13 = scmp.le.s32.totalorder %s7146_s1, 22 }
 0x15a   :  { %s7200_s26 = sld [smem:[#allocation140_spill]] (!%p5367_p13) }
 0x15b   :  { %1439 = sbr.rel (%p5367_p13) target bundleno = 356 (0x164), region = 753 }
 0x160   :  { %s4367_s15 = scalar_lea.vmem %s7147_s2, %s7200_s26 }
 0x161   :  { %v5370_v22 = vld [vmem:[%s4367_s15 + $0x2] sm:$0xf] }
 0x162   :  { %5371 = vst [vmem:[%s7148_s3 + $0x58] sm:$0xf] %v5370_v22 }
 0x163   :  { %1488 = vsyncadd [#allocation2 + $0x6], 64 }
 0x164 PF:  { %p5373_p0 = scmp.le.s32.totalorder %s7146_s1, 23 }
 0x165   :  { %s7201_s27 = sld [smem:[#allocation141_spill]] (!%p5373_p0) }
 0x166   :  { %1492 = sbr.rel (%p5373_p0) target bundleno = 367 (0x16f), region = 787 }
 0x16b   :  { %s4374_s4 = scalar_lea.vmem %s7147_s2, %s7201_s27 }
 0x16c   :  { %v5376_v23 = vld [vmem:[%s4374_s4 + $0x2] sm:$0xf] }
 0x16d   :  { %5377 = vst [vmem:[%s7148_s3 + $0x5c] sm:$0xf] %v5376_v23 }
 0x16e   :  { %1541 = vsyncadd [#allocation2 + $0x7], 64 }
 0x16f PF:  { %p5379_p1 = scmp.le.s32.totalorder %s7146_s1, 24 }
 0x170   :  { %s7202_s28 = sld [smem:[#allocation142_spill]] (!%p5379_p1) }
 0x171   :  { %1545 = sbr.rel (%p5379_p1) target bundleno = 378 (0x17a), region = 821 }
 0x176   :  { %s4381_s5 = scalar_lea.vmem %s7147_s2, %s7202_s28 }
 0x177   :  { %v5382_v24 = vld [vmem:[%s4381_s5 + $0x2] sm:$0xf] }
 0x178   :  { %5383 = vst [vmem:[%s7148_s3 + $0x60] sm:$0xf] %v5382_v24 }
 0x179   :  { %1594 = vsyncadd [#allocation2 + $0x8], 64 }
 0x17a PF:  { %p5385_p2 = scmp.le.s32.totalorder %s7146_s1, 25 }
 0x17b   :  { %s7203_s29 = sld [smem:[#allocation143_spill]] (!%p5385_p2) }
 0x17c   :  { %1598 = sbr.rel (%p5385_p2) target bundleno = 389 (0x185), region = 855 }
 0x181   :  { %s4388_s26 = scalar_lea.vmem %s7147_s2, %s7203_s29 }
 0x182   :  { %v5388_v25 = vld [vmem:[%s4388_s26 + $0x2] sm:$0xf] }
 0x183   :  { %5389 = vst [vmem:[%s7148_s3 + $0x64] sm:$0xf] %v5388_v25 }
 0x184   :  { %1647 = vsyncadd [#allocation2 + $0x9], 64 }
 0x185 PF:  { %p5391_p3 = scmp.le.s32.totalorder %s7146_s1, 26 }
 0x186   :  { %s7204_s21 = sld [smem:[#allocation144_spill]] (!%p5391_p3) }
 0x187   :  { %1651 = sbr.rel (%p5391_p3) target bundleno = 400 (0x190), region = 889 }
 0x18c   :  { %s4395_s27 = scalar_lea.vmem %s7147_s2, %s7204_s21 }
 0x18d   :  { %v5394_v26 = vld [vmem:[%s4395_s27 + $0x2] sm:$0xf] }
 0x18e   :  { %5395 = vst [vmem:[%s7148_s3 + $0x68] sm:$0xf] %v5394_v26 }
 0x18f   :  { %1700 = vsyncadd [#allocation2 + $0xa], 64 }
 0x190 PF:  { %p5397_p4 = scmp.le.s32.totalorder %s7146_s1, 27 }
 0x191   :  { %s7205_s10 = sld [smem:[#allocation145_spill]] (!%p5397_p4) }
 0x192   :  { %1704 = sbr.rel (%p5397_p4) target bundleno = 411 (0x19b), region = 923 }
 0x197   :  { %s4402_s28 = scalar_lea.vmem %s7147_s2, %s7205_s10 }
 0x198   :  { %v5400_v27 = vld [vmem:[%s4402_s28 + $0x2] sm:$0xf] }
 0x199   :  { %5401 = vst [vmem:[%s7148_s3 + $0x6c] sm:$0xf] %v5400_v27 }
 0x19a   :  { %1753 = vsyncadd [#allocation2 + $0xb], 64 }
 0x19b PF:  { %p5403_p5 = scmp.le.s32.totalorder %s7146_s1, 28 }
 0x19c   :  { %s7206_s20 = sld [smem:[#allocation146_spill]] (!%p5403_p5) }
 0x19d   :  { %1757 = sbr.rel (%p5403_p5) target bundleno = 422 (0x1a6), region = 957 }
 0x1a2   :  { %s4409_s29 = scalar_lea.vmem %s7147_s2, %s7206_s20 }
 0x1a3   :  { %v5406_v28 = vld [vmem:[%s4409_s29 + $0x2] sm:$0xf] }
 0x1a4   :  { %5407 = vst [vmem:[%s7148_s3 + $0x70] sm:$0xf] %v5406_v28 }
 0x1a5   :  { %1806 = vsyncadd [#allocation2 + $0xc], 64 }
 0x1a6 PF:  { %p5409_p6 = scmp.le.s32.totalorder %s7146_s1, 29 }
 0x1a7   :  { %s7207_s14 = sld [smem:[#allocation147_spill]] (!%p5409_p6) }
 0x1a8   :  { %1810 = sbr.rel (%p5409_p6) target bundleno = 433 (0x1b1), region = 991 }
 0x1ad   :  { %s4416_s21 = scalar_lea.vmem %s7147_s2, %s7207_s14 }
 0x1ae   :  { %v5412_v29 = vld [vmem:[%s4416_s21 + $0x2] sm:$0xf] }
 0x1af   :  { %5413 = vst [vmem:[%s7148_s3 + $0x74] sm:$0xf] %v5412_v29 }
 0x1b0   :  { %1859 = vsyncadd [#allocation2 + $0xd], 64 }
 0x1b1 PF:  { %p5415_p7 = scmp.le.s32.totalorder %s7146_s1, 30 }
 0x1b2   :  { %s7208_s8 = sld [smem:[#allocation148_spill]] (!%p5415_p7) }
 0x1b3   :  { %1863 = sbr.rel (%p5415_p7) target bundleno = 444 (0x1bc), region = 1025 }
 0x1b8   :  { %s4423_s10 = scalar_lea.vmem %s7147_s2, %s7208_s8 }
 0x1b9   :  { %v5418_v30 = vld [vmem:[%s4423_s10 + $0x2] sm:$0xf] }
 0x1ba   :  { %5419 = vst [vmem:[%s7148_s3 + $0x78] sm:$0xf] %v5418_v30 }
 0x1bb   :  { %1912 = vsyncadd [#allocation2 + $0xe], 64 }
 0x1bc PF:  { %p5421_p8 = scmp.le.s32.totalorder %s7146_s1, 31 }
 0x1bd   :  { %s7209_s25 = sld [smem:[#allocation149_spill]] (!%p5421_p8) }
 0x1be   :  { %1916 = sbr.rel (%p5421_p8) target bundleno = 455 (0x1c7), region = 1059 }
 0x1c3   :  { %s4430_s20 = scalar_lea.vmem %s7147_s2, %s7209_s25 }
 0x1c4   :  { %v5424_v31 = vld [vmem:[%s4430_s20 + $0x2] sm:$0xf] }
 0x1c5   :  { %5425 = vst [vmem:[%s7148_s3 + $0x7c] sm:$0xf] %v5424_v31 }
 0x1c6   :  { %1965 = vsyncadd [#allocation2 + $0xf], 64 }
 0x1c7 PF:  { %p5427_p9 = scmp.le.s32.totalorder %s7146_s1, 32 }
 0x1c8   :  { %s7210_s23 = sld [smem:[#allocation150_spill]] (!%p5427_p9) }
 0x1c9   :  { %1969 = sbr.rel (%p5427_p9) target bundleno = 466 (0x1d2), region = 1093 }
 0x1ce   :  { %s4437_s14 = scalar_lea.vmem %s7147_s2, %s7210_s23 }
 0x1cf   :  { %v5430_v32 = vld [vmem:[%s4437_s14 + $0x2] sm:$0xf] }
 0x1d0   :  { %5431 = vst [vmem:[%s7148_s3 + $0x80] sm:$0xf] %v5430_v32 }
 0x1d1   :  { %2017 = vsyncadd [#allocation2], 64 }
 0x1d2 PF:  { %p5433_p10 = scmp.le.s32.totalorder %s7146_s1, 33 }
 0x1d3   :  { %s7211_s0 = sld [smem:[#allocation151_spill]] (!%p5433_p10) }
 0x1d4   :  { %2021 = sbr.rel (%p5433_p10) target bundleno = 477 (0x1dd), region = 1127 }
 0x1d9   :  { %s4444_s8 = scalar_lea.vmem %s7147_s2, %s7211_s0 }
 0x1da   :  { %v5436_v33 = vld [vmem:[%s4444_s8 + $0x2] sm:$0xf] }
 0x1db   :  { %5437 = vst [vmem:[%s7148_s3 + $0x84] sm:$0xf] %v5436_v33 }
 0x1dc   :  { %2070 = vsyncadd [#allocation2 + $0x1], 64 }
 0x1dd PF:  { %p5439_p11 = scmp.le.s32.totalorder %s7146_s1, 34 }
 0x1de   :  { %s7212_s22 = sld [smem:[#allocation152_spill]] (!%p5439_p11) }
 0x1df   :  { %2074 = sbr.rel (%p5439_p11) target bundleno = 488 (0x1e8), region = 1161 }
 0x1e4   :  { %s4451_s25 = scalar_lea.vmem %s7147_s2, %s7212_s22 }
 0x1e5   :  { %v5442_v34 = vld [vmem:[%s4451_s25 + $0x2] sm:$0xf] }
 0x1e6   :  { %5443 = vst [vmem:[%s7148_s3 + $0x88] sm:$0xf] %v5442_v34 }
 0x1e7   :  { %2123 = vsyncadd [#allocation2 + $0x2], 64 }
 0x1e8 PF:  { %p5445_p12 = scmp.le.s32.totalorder %s7146_s1, 35 }
 0x1e9   :  { %s7213_s13 = sld [smem:[#allocation153_spill]] (!%p5445_p12) }
 0x1ea   :  { %2127 = sbr.rel (%p5445_p12) target bundleno = 499 (0x1f3), region = 1195 }
 0x1ef   :  { %s4458_s23 = scalar_lea.vmem %s7147_s2, %s7213_s13 }
 0x1f0   :  { %v5448_v35 = vld [vmem:[%s4458_s23 + $0x2] sm:$0xf] }
 0x1f1   :  { %5449 = vst [vmem:[%s7148_s3 + $0x8c] sm:$0xf] %v5448_v35 }
 0x1f2   :  { %2176 = vsyncadd [#allocation2 + $0x3], 64 }
 0x1f3 PF:  { %p5451_p13 = scmp.le.s32.totalorder %s7146_s1, 36 }
 0x1f4   :  { %s7214_s30 = sld [smem:[#allocation154_spill]] (!%p5451_p13) }
 0x1f5   :  { %2180 = sbr.rel (%p5451_p13) target bundleno = 510 (0x1fe), region = 1229 }
 0x1fa   :  { %s4465_s0 = scalar_lea.vmem %s7147_s2, %s7214_s30 }
 0x1fb   :  { %v5454_v36 = vld [vmem:[%s4465_s0 + $0x2] sm:$0xf] }
 0x1fc   :  { %5455 = vst [vmem:[%s7148_s3 + $0x90] sm:$0xf] %v5454_v36 }
 0x1fd   :  { %2229 = vsyncadd [#allocation2 + $0x4], 64 }
 0x1fe PF:  { %p5457_p0 = scmp.le.s32.totalorder %s7146_s1, 37 }
 0x1ff   :  { %s7215_s9 = sld [smem:[#allocation155_spill]] (!%p5457_p0) }
 0x200   :  { %2233 = sbr.rel (%p5457_p0) target bundleno = 521 (0x209), region = 1263 }
 0x205   :  { %s4472_s22 = scalar_lea.vmem %s7147_s2, %s7215_s9 }
 0x206   :  { %v5460_v37 = vld [vmem:[%s4472_s22 + $0x2] sm:$0xf] }
 0x207   :  { %5461 = vst [vmem:[%s7148_s3 + $0x94] sm:$0xf] %v5460_v37 }
 0x208   :  { %2282 = vsyncadd [#allocation2 + $0x5], 64 }
 0x209 PF:  { %p5463_p1 = scmp.le.s32.totalorder %s7146_s1, 38 }
 0x20a   :  { %s7216_s11 = sld [smem:[#allocation156_spill]] (!%p5463_p1) }
 0x20b   :  { %2286 = sbr.rel (%p5463_p1) target bundleno = 532 (0x214), region = 1297 }
 0x210   :  { %s4479_s13 = scalar_lea.vmem %s7147_s2, %s7216_s11 }
 0x211   :  { %v5466_v38 = vld [vmem:[%s4479_s13 + $0x2] sm:$0xf] }
 0x212   :  { %5467 = vst [vmem:[%s7148_s3 + $0x98] sm:$0xf] %v5466_v38 }
 0x213   :  { %2335 = vsyncadd [#allocation2 + $0x6], 64 }
 0x214 PF:  { %p5469_p2 = scmp.le.s32.totalorder %s7146_s1, 39 }
 0x215   :  { %s7217_s7 = sld [smem:[#allocation157_spill]] (!%p5469_p2) }
 0x216   :  { %2339 = sbr.rel (%p5469_p2) target bundleno = 543 (0x21f), region = 1331 }
 0x21b   :  { %s4486_s30 = scalar_lea.vmem %s7147_s2, %s7217_s7 }
 0x21c   :  { %v5472_v39 = vld [vmem:[%s4486_s30 + $0x2] sm:$0xf] }
 0x21d   :  { %5473 = vst [vmem:[%s7148_s3 + $0x9c] sm:$0xf] %v5472_v39 }
 0x21e   :  { %2388 = vsyncadd [#allocation2 + $0x7], 64 }
 0x21f PF:  { %p5475_p3 = scmp.le.s32.totalorder %s7146_s1, 40 }
 0x220   :  { %s7218_s24 = sld [smem:[#allocation158_spill]] (!%p5475_p3) }
 0x221   :  { %2392 = sbr.rel (%p5475_p3) target bundleno = 554 (0x22a), region = 1365 }
 0x226   :  { %s4493_s9 = scalar_lea.vmem %s7147_s2, %s7218_s24 }
 0x227   :  { %v5478_v40 = vld [vmem:[%s4493_s9 + $0x2] sm:$0xf] }
 0x228   :  { %5479 = vst [vmem:[%s7148_s3 + $0xa0] sm:$0xf] %v5478_v40 }
 0x229   :  { %2441 = vsyncadd [#allocation2 + $0x8], 64 }
 0x22a PF:  { %p5481_p4 = scmp.le.s32.totalorder %s7146_s1, 41 }
 0x22b   :  { %s7219_s17 = sld [smem:[#allocation159_spill]] (!%p5481_p4) }
 0x22c   :  { %2445 = sbr.rel (%p5481_p4) target bundleno = 565 (0x235), region = 1399 }
 0x231   :  { %s4500_s11 = scalar_lea.vmem %s7147_s2, %s7219_s17 }
 0x232   :  { %v5484_v41 = vld [vmem:[%s4500_s11 + $0x2] sm:$0xf] }
 0x233   :  { %5485 = vst [vmem:[%s7148_s3 + $0xa4] sm:$0xf] %v5484_v41 }
 0x234   :  { %2494 = vsyncadd [#allocation2 + $0x9], 64 }
 0x235 PF:  { %p5487_p5 = scmp.le.s32.totalorder %s7146_s1, 42 }
 0x236   :  { %s7220_s6 = sld [smem:[#allocation160_spill]] (!%p5487_p5) }
 0x237   :  { %2498 = sbr.rel (%p5487_p5) target bundleno = 576 (0x240), region = 1433 }
 0x23c   :  { %s4507_s7 = scalar_lea.vmem %s7147_s2, %s7220_s6 }
 0x23d   :  { %v5490_v42 = vld [vmem:[%s4507_s7 + $0x2] sm:$0xf] }
 0x23e   :  { %5491 = vst [vmem:[%s7148_s3 + $0xa8] sm:$0xf] %v5490_v42 }
 0x23f   :  { %2547 = vsyncadd [#allocation2 + $0xa], 64 }
 0x240 PF:  { %p5493_p6 = scmp.le.s32.totalorder %s7146_s1, 43 }
 0x241   :  { %s7221_s18 = sld [smem:[#allocation161_spill]] (!%p5493_p6) }
 0x242   :  { %2551 = sbr.rel (%p5493_p6) target bundleno = 587 (0x24b), region = 1467 }
 0x247   :  { %s4514_s24 = scalar_lea.vmem %s7147_s2, %s7221_s18 }
 0x248   :  { %v5496_v43 = vld [vmem:[%s4514_s24 + $0x2] sm:$0xf] }
 0x249   :  { %5497 = vst [vmem:[%s7148_s3 + $0xac] sm:$0xf] %v5496_v43 }
 0x24a   :  { %2600 = vsyncadd [#allocation2 + $0xb], 64 }
 0x24b PF:  { %p5499_p7 = scmp.le.s32.totalorder %s7146_s1, 44 }
 0x24c   :  { %s7222_s12 = sld [smem:[#allocation162_spill]] (!%p5499_p7) }
 0x24d   :  { %2604 = sbr.rel (%p5499_p7) target bundleno = 598 (0x256), region = 1501 }
 0x252   :  { %s4521_s17 = scalar_lea.vmem %s7147_s2, %s7222_s12 }
 0x253   :  { %v5502_v44 = vld [vmem:[%s4521_s17 + $0x2] sm:$0xf] }
 0x254   :  { %5503 = vst [vmem:[%s7148_s3 + $0xb0] sm:$0xf] %v5502_v44 }
 0x255   :  { %2653 = vsyncadd [#allocation2 + $0xc], 64 }
 0x256 PF:  { %p5505_p8 = scmp.le.s32.totalorder %s7146_s1, 45 }
 0x257   :  { %s7223_s19 = sld [smem:[#allocation163_spill]] (!%p5505_p8) }
 0x258   :  { %2657 = sbr.rel (%p5505_p8) target bundleno = 609 (0x261), region = 1535 }
 0x25d   :  { %s4528_s6 = scalar_lea.vmem %s7147_s2, %s7223_s19 }
 0x25e   :  { %v5508_v45 = vld [vmem:[%s4528_s6 + $0x2] sm:$0xf] }
 0x25f   :  { %5509 = vst [vmem:[%s7148_s3 + $0xb4] sm:$0xf] %v5508_v45 }
 0x260   :  { %2706 = vsyncadd [#allocation2 + $0xd], 64 }
 0x261 PF:  { %p5511_p9 = scmp.le.s32.totalorder %s7146_s1, 46 }
 0x262   :  { %s7224_s15 = sld [smem:[#allocation164_spill]] (!%p5511_p9) }
 0x263   :  { %2710 = sbr.rel (%p5511_p9) target bundleno = 620 (0x26c), region = 1569 }
 0x268   :  { %s4535_s18 = scalar_lea.vmem %s7147_s2, %s7224_s15 }
 0x269   :  { %v5514_v46 = vld [vmem:[%s4535_s18 + $0x2] sm:$0xf] }
 0x26a   :  { %5515 = vst [vmem:[%s7148_s3 + $0xb8] sm:$0xf] %v5514_v46 }
 0x26b   :  { %2759 = vsyncadd [#allocation2 + $0xe], 64 }
 0x26c PF:  { %p5517_p10 = scmp.le.s32.totalorder %s7146_s1, 47 }
 0x26d   :  { %s7225_s4 = sld [smem:[#allocation165_spill]] (!%p5517_p10) }
 0x26e   :  { %2763 = sbr.rel (%p5517_p10) target bundleno = 631 (0x277), region = 1603 }
 0x273   :  { %s4542_s12 = scalar_lea.vmem %s7147_s2, %s7225_s4 }
 0x274   :  { %v5520_v47 = vld [vmem:[%s4542_s12 + $0x2] sm:$0xf] }
 0x275   :  { %5521 = vst [vmem:[%s7148_s3 + $0xbc] sm:$0xf] %v5520_v47 }
 0x276   :  { %2812 = vsyncadd [#allocation2 + $0xf], 64 }
 0x277 PF:  { %p5523_p11 = scmp.le.s32.totalorder %s7146_s1, 48 }
 0x278   :  { %s7226_s5 = sld [smem:[#allocation166_spill]] (!%p5523_p11) }
 0x279   :  { %2816 = sbr.rel (%p5523_p11) target bundleno = 642 (0x282), region = 1637 }
 0x27e   :  { %s4549_s19 = scalar_lea.vmem %s7147_s2, %s7226_s5 }
 0x27f   :  { %v5526_v48 = vld [vmem:[%s4549_s19 + $0x2] sm:$0xf] }
 0x280   :  { %5527 = vst [vmem:[%s7148_s3 + $0xc0] sm:$0xf] %v5526_v48 }
 0x281   :  { %2864 = vsyncadd [#allocation2], 64 }
 0x282 PF:  { %p5529_p12 = scmp.le.s32.totalorder %s7146_s1, 49 }
 0x283   :  { %s7227_s26 = sld [smem:[#allocation167_spill]] (!%p5529_p12) }
 0x284   :  { %2868 = sbr.rel (%p5529_p12) target bundleno = 653 (0x28d), region = 1671 }
 0x289   :  { %s4556_s15 = scalar_lea.vmem %s7147_s2, %s7227_s26 }
 0x28a   :  { %v5532_v49 = vld [vmem:[%s4556_s15 + $0x2] sm:$0xf] }
 0x28b   :  { %5533 = vst [vmem:[%s7148_s3 + $0xc4] sm:$0xf] %v5532_v49 }
 0x28c   :  { %2917 = vsyncadd [#allocation2 + $0x1], 64 }
 0x28d PF:  { %p5535_p13 = scmp.le.s32.totalorder %s7146_s1, 50 }
 0x28e   :  { %s7228_s27 = sld [smem:[#allocation168_spill]] (!%p5535_p13) }
 0x28f   :  { %2921 = sbr.rel (%p5535_p13) target bundleno = 664 (0x298), region = 1705 }
 0x294   :  { %s4563_s4 = scalar_lea.vmem %s7147_s2, %s7228_s27 }
 0x295   :  { %v5538_v50 = vld [vmem:[%s4563_s4 + $0x2] sm:$0xf] }
 0x296   :  { %5539 = vst [vmem:[%s7148_s3 + $0xc8] sm:$0xf] %v5538_v50 }
 0x297   :  { %2970 = vsyncadd [#allocation2 + $0x2], 64 }
 0x298 PF:  { %p5541_p0 = scmp.le.s32.totalorder %s7146_s1, 51 }
 0x299   :  { %s7229_s28 = sld [smem:[#allocation169_spill]] (!%p5541_p0) }
 0x29a   :  { %2974 = sbr.rel (%p5541_p0) target bundleno = 675 (0x2a3), region = 1739 }
 0x29f   :  { %s4570_s5 = scalar_lea.vmem %s7147_s2, %s7229_s28 }
 0x2a0   :  { %v5544_v51 = vld [vmem:[%s4570_s5 + $0x2] sm:$0xf] }
 0x2a1   :  { %5545 = vst [vmem:[%s7148_s3 + $0xcc] sm:$0xf] %v5544_v51 }
 0x2a2   :  { %3023 = vsyncadd [#allocation2 + $0x3], 64 }
 0x2a3 PF:  { %p5547_p1 = scmp.le.s32.totalorder %s7146_s1, 52 }
 0x2a4   :  { %s7230_s29 = sld [smem:[#allocation170_spill]] (!%p5547_p1) }
 0x2a5   :  { %3027 = sbr.rel (%p5547_p1) target bundleno = 686 (0x2ae), region = 1773 }
 0x2aa   :  { %s4577_s26 = scalar_lea.vmem %s7147_s2, %s7230_s29 }
 0x2ab   :  { %v5550_v52 = vld [vmem:[%s4577_s26 + $0x2] sm:$0xf] }
 0x2ac   :  { %5551 = vst [vmem:[%s7148_s3 + $0xd0] sm:$0xf] %v5550_v52 }
 0x2ad   :  { %3076 = vsyncadd [#allocation2 + $0x4], 64 }
 0x2ae PF:  { %p5553_p2 = scmp.le.s32.totalorder %s7146_s1, 53 }
 0x2af   :  { %s7231_s21 = sld [smem:[#allocation171_spill]] (!%p5553_p2) }
 0x2b0   :  { %3080 = sbr.rel (%p5553_p2) target bundleno = 697 (0x2b9), region = 1807 }
 0x2b5   :  { %s4584_s27 = scalar_lea.vmem %s7147_s2, %s7231_s21 }
 0x2b6   :  { %v5556_v53 = vld [vmem:[%s4584_s27 + $0x2] sm:$0xf] }
 0x2b7   :  { %5557 = vst [vmem:[%s7148_s3 + $0xd4] sm:$0xf] %v5556_v53 }
 0x2b8   :  { %3129 = vsyncadd [#allocation2 + $0x5], 64 }
 0x2b9 PF:  { %p5559_p3 = scmp.le.s32.totalorder %s7146_s1, 54 }
 0x2ba   :  { %s7232_s10 = sld [smem:[#allocation172_spill]] (!%p5559_p3) }
 0x2bb   :  { %3133 = sbr.rel (%p5559_p3) target bundleno = 708 (0x2c4), region = 1841 }
 0x2c0   :  { %s4591_s28 = scalar_lea.vmem %s7147_s2, %s7232_s10 }
 0x2c1   :  { %v5562_v54 = vld [vmem:[%s4591_s28 + $0x2] sm:$0xf] }
 0x2c2   :  { %5563 = vst [vmem:[%s7148_s3 + $0xd8] sm:$0xf] %v5562_v54 }
 0x2c3   :  { %3182 = vsyncadd [#allocation2 + $0x6], 64 }
 0x2c4 PF:  { %p5565_p4 = scmp.le.s32.totalorder %s7146_s1, 55 }
 0x2c5   :  { %s7233_s20 = sld [smem:[#allocation173_spill]] (!%p5565_p4) }
 0x2c6   :  { %3186 = sbr.rel (%p5565_p4) target bundleno = 719 (0x2cf), region = 1875 }
 0x2cb   :  { %s4598_s29 = scalar_lea.vmem %s7147_s2, %s7233_s20 }
 0x2cc   :  { %v5568_v55 = vld [vmem:[%s4598_s29 + $0x2] sm:$0xf] }
 0x2cd   :  { %5569 = vst [vmem:[%s7148_s3 + $0xdc] sm:$0xf] %v5568_v55 }
 0x2ce   :  { %3235 = vsyncadd [#allocation2 + $0x7], 64 }
 0x2cf PF:  { %p5571_p5 = scmp.le.s32.totalorder %s7146_s1, 56 }
 0x2d0   :  { %s7234_s14 = sld [smem:[#allocation174_spill]] (!%p5571_p5) }
 0x2d1   :  { %3239 = sbr.rel (%p5571_p5) target bundleno = 730 (0x2da), region = 1909 }
 0x2d6   :  { %s4605_s21 = scalar_lea.vmem %s7147_s2, %s7234_s14 }
 0x2d7   :  { %v5574_v56 = vld [vmem:[%s4605_s21 + $0x2] sm:$0xf] }
 0x2d8   :  { %5575 = vst [vmem:[%s7148_s3 + $0xe0] sm:$0xf] %v5574_v56 }
 0x2d9   :  { %3288 = vsyncadd [#allocation2 + $0x8], 64 }
 0x2da PF:  { %p5577_p6 = scmp.le.s32.totalorder %s7146_s1, 57 }
 0x2db   :  { %s7235_s8 = sld [smem:[#allocation175_spill]] (!%p5577_p6) }
 0x2dc   :  { %3292 = sbr.rel (%p5577_p6) target bundleno = 741 (0x2e5), region = 1943 }
 0x2e1   :  { %s4612_s10 = scalar_lea.vmem %s7147_s2, %s7235_s8 }
 0x2e2   :  { %v5580_v57 = vld [vmem:[%s4612_s10 + $0x2] sm:$0xf] }
 0x2e3   :  { %5581 = vst [vmem:[%s7148_s3 + $0xe4] sm:$0xf] %v5580_v57 }
 0x2e4   :  { %3341 = vsyncadd [#allocation2 + $0x9], 64 }
 0x2e5 PF:  { %p5583_p7 = scmp.le.s32.totalorder %s7146_s1, 58 }
 0x2e6   :  { %s7236_s25 = sld [smem:[#allocation176_spill]] (!%p5583_p7) }
 0x2e7   :  { %3345 = sbr.rel (%p5583_p7) target bundleno = 752 (0x2f0), region = 1977 }
 0x2ec   :  { %s4619_s20 = scalar_lea.vmem %s7147_s2, %s7236_s25 }
 0x2ed   :  { %v5586_v58 = vld [vmem:[%s4619_s20 + $0x2] sm:$0xf] }
 0x2ee   :  { %5587 = vst [vmem:[%s7148_s3 + $0xe8] sm:$0xf] %v5586_v58 }
 0x2ef   :  { %3394 = vsyncadd [#allocation2 + $0xa], 64 }
 0x2f0 PF:  { %p5589_p8 = scmp.le.s32.totalorder %s7146_s1, 59 }
 0x2f1   :  { %s7237_s23 = sld [smem:[#allocation177_spill]] (!%p5589_p8) }
 0x2f2   :  { %3398 = sbr.rel (%p5589_p8) target bundleno = 763 (0x2fb), region = 2011 }
 0x2f7   :  { %s4626_s14 = scalar_lea.vmem %s7147_s2, %s7237_s23 }
 0x2f8   :  { %v5592_v59 = vld [vmem:[%s4626_s14 + $0x2] sm:$0xf] }
 0x2f9   :  { %5593 = vst [vmem:[%s7148_s3 + $0xec] sm:$0xf] %v5592_v59 }
 0x2fa   :  { %3447 = vsyncadd [#allocation2 + $0xb], 64 }
 0x2fb PF:  { %p5595_p9 = scmp.le.s32.totalorder %s7146_s1, 60 }
 0x2fc   :  { %s4633_s24 = scalar_lea.vmem (!%p5595_p9), %s7147_s2, %s6305_s16 }
 0x2fd   :  { %3451 = sbr.rel (%p5595_p9) target bundleno = 773 (0x305), region = 2045 }
 0x302   :  { %v5598_v60 = vld [vmem:[%s4633_s24 + $0x2] sm:$0xf] }
 0x303   :  { %5599 = vst [vmem:[%s7148_s3 + $0xf0] sm:$0xf] %v5598_v60 }
 0x304   :  { %3500 = vsyncadd [#allocation2 + $0xc], 64 }
 0x305 PF:  { %p5601_p10 = scmp.le.s32.totalorder %s7146_s1, 61 }
 0x306   :  { %s7238_s12 = sld [smem:[#allocation178_spill]] (!%p5601_p10) }
 0x307   :  { %3504 = sbr.rel (%p5601_p10) target bundleno = 784 (0x310), region = 2079 }
 0x30c   :  { %s4640_s17 = scalar_lea.vmem %s7147_s2, %s7238_s12 }
 0x30d   :  { %v5604_v61 = vld [vmem:[%s4640_s17 + $0x2] sm:$0xf] }
 0x30e   :  { %5605 = vst [vmem:[%s7148_s3 + $0xf4] sm:$0xf] %v5604_v61 }
 0x30f   :  { %3553 = vsyncadd [#allocation2 + $0xd], 64 }
 0x310 PF:  { %p5607_p11 = scmp.le.s32.totalorder %s7146_s1, 62 }
 0x311   :  { %s7239_s20 = sld [smem:[#allocation179_spill]] (!%p5607_p11) }
 0x312   :  { %3557 = sbr.rel (%p5607_p11) target bundleno = 795 (0x31b), region = 2113 }
 0x317   :  { %s4647_s29 = scalar_lea.vmem %s7147_s2, %s7239_s20 }
 0x318   :  { %v5610_v62 = vld [vmem:[%s4647_s29 + $0x2] sm:$0xf] }
 0x319   :  { %5611 = vst [vmem:[%s7148_s3 + $0xf8] sm:$0xf] %v5610_v62 }
 0x31a   :  { %3606 = vsyncadd [#allocation2 + $0xe], 64 }
 0x31b PF:  { %p5613_p12 = scmp.le.s32.totalorder %s7146_s1, 63 }
 0x31c   :  { %s7240_s14 = sld [smem:[#allocation180_spill]] (!%p5613_p12) }
 0x31d   :  { %3610 = sbr.rel (%p5613_p12) target bundleno = 806 (0x326), region = 2147 }
 0x322   :  { %s4654_s21 = scalar_lea.vmem %s7147_s2, %s7240_s14 }
 0x323   :  { %v5616_v63 = vld [vmem:[%s4654_s21 + $0x2] sm:$0xf] }
 0x324   :  { %5617 = vst [vmem:[%s7148_s3 + $0xfc] sm:$0xf] %v5616_v63 }
 0x325   :  { %3659 = vsyncadd [#allocation2 + $0xf], 64 }
 0x326 PF:  { %p5826_p13 = scmp.gt.s32.totalorder %s7146_s1, 0 }
 0x328   :  { %5906 = dma.done.wait (%p5826_p13), [#allocation2], 64 }
 0x329   :  { %5908 = vsyncadd (%p5826_p13), [#allocation2], 4294967232  ;;  %p5827_p0 = scmp.gt.s32.totalorder %s7146_s1, 1 }
 0x32b   :  { %5910 = dma.done.wait (%p5827_p0), [#allocation2 + $0x1], 64 }
 0x32c   :  { %5912 = vsyncadd (%p5827_p0), [#allocation2 + $0x1], 4294967232  ;;  %p5828_p1 = scmp.gt.s32.totalorder %s7146_s1, 2 }
 0x32e   :  { %5914 = dma.done.wait (%p5828_p1), [#allocation2 + $0x2], 64 }
 0x32f   :  { %5916 = vsyncadd (%p5828_p1), [#allocation2 + $0x2], 4294967232  ;;  %p5829_p2 = scmp.gt.s32.totalorder %s7146_s1, 3 }
 0x331   :  { %5918 = dma.done.wait (%p5829_p2), [#allocation2 + $0x3], 64 }
 0x332   :  { %5920 = vsyncadd (%p5829_p2), [#allocation2 + $0x3], 4294967232  ;;  %p5830_p3 = scmp.gt.s32.totalorder %s7146_s1, 4 }
 0x334   :  { %5922 = dma.done.wait (%p5830_p3), [#allocation2 + $0x4], 64 }
 0x335   :  { %5924 = vsyncadd (%p5830_p3), [#allocation2 + $0x4], 4294967232  ;;  %p5831_p4 = scmp.gt.s32.totalorder %s7146_s1, 5 }
 0x337   :  { %5926 = dma.done.wait (%p5831_p4), [#allocation2 + $0x5], 64 }
 0x338   :  { %5928 = vsyncadd (%p5831_p4), [#allocation2 + $0x5], 4294967232  ;;  %p5832_p5 = scmp.gt.s32.totalorder %s7146_s1, 6 }
 0x33a   :  { %5930 = dma.done.wait (%p5832_p5), [#allocation2 + $0x6], 64 }
 0x33b   :  { %5932 = vsyncadd (%p5832_p5), [#allocation2 + $0x6], 4294967232  ;;  %p5833_p6 = scmp.gt.s32.totalorder %s7146_s1, 7 }
 0x33d   :  { %5934 = dma.done.wait (%p5833_p6), [#allocation2 + $0x7], 64 }
 0x33e   :  { %5936 = vsyncadd (%p5833_p6), [#allocation2 + $0x7], 4294967232  ;;  %p5834_p7 = scmp.gt.s32.totalorder %s7146_s1, 8 }
 0x340   :  { %5938 = dma.done.wait (%p5834_p7), [#allocation2 + $0x8], 64 }
 0x341   :  { %5940 = vsyncadd (%p5834_p7), [#allocation2 + $0x8], 4294967232  ;;  %p5835_p8 = scmp.gt.s32.totalorder %s7146_s1, 9 }
 0x343   :  { %5942 = dma.done.wait (%p5835_p8), [#allocation2 + $0x9], 64 }
 0x344   :  { %5944 = vsyncadd (%p5835_p8), [#allocation2 + $0x9], 4294967232  ;;  %p5836_p9 = scmp.gt.s32.totalorder %s7146_s1, 10 }
 0x346   :  { %5946 = dma.done.wait (%p5836_p9), [#allocation2 + $0xa], 64 }
 0x347   :  { %5948 = vsyncadd (%p5836_p9), [#allocation2 + $0xa], 4294967232  ;;  %p5837_p10 = scmp.gt.s32.totalorder %s7146_s1, 11 }
 0x349   :  { %5950 = dma.done.wait (%p5837_p10), [#allocation2 + $0xb], 64 }
 0x34a   :  { %5952 = vsyncadd (%p5837_p10), [#allocation2 + $0xb], 4294967232  ;;  %p5838_p11 = scmp.gt.s32.totalorder %s7146_s1, 12 }
 0x34c   :  { %5954 = dma.done.wait (%p5838_p11), [#allocation2 + $0xc], 64 }
 0x34d   :  { %5956 = vsyncadd (%p5838_p11), [#allocation2 + $0xc], 4294967232  ;;  %p5839_p12 = scmp.gt.s32.totalorder %s7146_s1, 13 }
 0x34f   :  { %5958 = dma.done.wait (%p5839_p12), [#allocation2 + $0xd], 64 }
 0x350   :  { %5960 = vsyncadd (%p5839_p12), [#allocation2 + $0xd], 4294967232  ;;  %p5840_p13 = scmp.gt.s32.totalorder %s7146_s1, 14 }
 0x352   :  { %5962 = dma.done.wait (%p5840_p13), [#allocation2 + $0xe], 64 }
 0x353   :  { %5964 = vsyncadd (%p5840_p13), [#allocation2 + $0xe], 4294967232  ;;  %p5841_p0 = scmp.gt.s32.totalorder %s7146_s1, 15 }
 0x355   :  { %5966 = dma.done.wait (%p5841_p0), [#allocation2 + $0xf], 64 }
 0x356   :  { %5968 = vsyncadd (%p5841_p0), [#allocation2 + $0xf], 4294967232  ;;  %p5842_p1 = scmp.gt.s32.totalorder %s7146_s1, 16 }
 0x358   :  { %5970 = dma.done.wait (%p5842_p1), [#allocation2], 64 }
 0x359   :  { %5972 = vsyncadd (%p5842_p1), [#allocation2], 4294967232  ;;  %p5843_p2 = scmp.gt.s32.totalorder %s7146_s1, 17 }
 0x35b   :  { %5974 = dma.done.wait (%p5843_p2), [#allocation2 + $0x1], 64 }
 0x35c   :  { %5976 = vsyncadd (%p5843_p2), [#allocation2 + $0x1], 4294967232  ;;  %p5844_p3 = scmp.gt.s32.totalorder %s7146_s1, 18 }
 0x35e   :  { %5978 = dma.done.wait (%p5844_p3), [#allocation2 + $0x2], 64 }
 0x35f   :  { %5980 = vsyncadd (%p5844_p3), [#allocation2 + $0x2], 4294967232  ;;  %p5845_p4 = scmp.gt.s32.totalorder %s7146_s1, 19 }
 0x361   :  { %5982 = dma.done.wait (%p5845_p4), [#allocation2 + $0x3], 64 }
 0x362   :  { %5984 = vsyncadd (%p5845_p4), [#allocation2 + $0x3], 4294967232  ;;  %p5846_p5 = scmp.gt.s32.totalorder %s7146_s1, 20 }
 0x364   :  { %5986 = dma.done.wait (%p5846_p5), [#allocation2 + $0x4], 64 }
 0x365   :  { %5988 = vsyncadd (%p5846_p5), [#allocation2 + $0x4], 4294967232  ;;  %p5847_p6 = scmp.gt.s32.totalorder %s7146_s1, 21 }
 0x367   :  { %5990 = dma.done.wait (%p5847_p6), [#allocation2 + $0x5], 64 }
 0x368   :  { %5992 = vsyncadd (%p5847_p6), [#allocation2 + $0x5], 4294967232  ;;  %p5848_p7 = scmp.gt.s32.totalorder %s7146_s1, 22 }
 0x36a   :  { %5994 = dma.done.wait (%p5848_p7), [#allocation2 + $0x6], 64 }
 0x36b   :  { %5996 = vsyncadd (%p5848_p7), [#allocation2 + $0x6], 4294967232  ;;  %p5849_p8 = scmp.gt.s32.totalorder %s7146_s1, 23 }
 0x36d   :  { %5998 = dma.done.wait (%p5849_p8), [#allocation2 + $0x7], 64 }
 0x36e   :  { %6000 = vsyncadd (%p5849_p8), [#allocation2 + $0x7], 4294967232  ;;  %p5850_p9 = scmp.gt.s32.totalorder %s7146_s1, 24 }
 0x370   :  { %6002 = dma.done.wait (%p5850_p9), [#allocation2 + $0x8], 64 }
 0x371   :  { %6004 = vsyncadd (%p5850_p9), [#allocation2 + $0x8], 4294967232  ;;  %p5851_p10 = scmp.gt.s32.totalorder %s7146_s1, 25 }
 0x373   :  { %6006 = dma.done.wait (%p5851_p10), [#allocation2 + $0x9], 64 }
 0x374   :  { %6008 = vsyncadd (%p5851_p10), [#allocation2 + $0x9], 4294967232  ;;  %p5852_p11 = scmp.gt.s32.totalorder %s7146_s1, 26 }
 0x376   :  { %6010 = dma.done.wait (%p5852_p11), [#allocation2 + $0xa], 64 }
 0x377   :  { %6012 = vsyncadd (%p5852_p11), [#allocation2 + $0xa], 4294967232  ;;  %p5853_p12 = scmp.gt.s32.totalorder %s7146_s1, 27 }
 0x379   :  { %6014 = dma.done.wait (%p5853_p12), [#allocation2 + $0xb], 64 }
 0x37a   :  { %6016 = vsyncadd (%p5853_p12), [#allocation2 + $0xb], 4294967232  ;;  %p5854_p13 = scmp.gt.s32.totalorder %s7146_s1, 28 }
 0x37c   :  { %6018 = dma.done.wait (%p5854_p13), [#allocation2 + $0xc], 64 }
 0x37d   :  { %6020 = vsyncadd (%p5854_p13), [#allocation2 + $0xc], 4294967232  ;;  %p5855_p0 = scmp.gt.s32.totalorder %s7146_s1, 29 }
 0x37f   :  { %6022 = dma.done.wait (%p5855_p0), [#allocation2 + $0xd], 64 }
 0x380   :  { %6024 = vsyncadd (%p5855_p0), [#allocation2 + $0xd], 4294967232  ;;  %p5856_p1 = scmp.gt.s32.totalorder %s7146_s1, 30 }
 0x382   :  { %6026 = dma.done.wait (%p5856_p1), [#allocation2 + $0xe], 64 }
 0x383   :  { %6028 = vsyncadd (%p5856_p1), [#allocation2 + $0xe], 4294967232  ;;  %p5857_p2 = scmp.gt.s32.totalorder %s7146_s1, 31 }
 0x385   :  { %6030 = dma.done.wait (%p5857_p2), [#allocation2 + $0xf], 64 }
 0x386   :  { %6032 = vsyncadd (%p5857_p2), [#allocation2 + $0xf], 4294967232  ;;  %p5858_p3 = scmp.gt.s32.totalorder %s7146_s1, 32 }
 0x388   :  { %6034 = dma.done.wait (%p5858_p3), [#allocation2], 64 }
 0x389   :  { %6036 = vsyncadd (%p5858_p3), [#allocation2], 4294967232  ;;  %p5859_p4 = scmp.gt.s32.totalorder %s7146_s1, 33 }
 0x38b   :  { %6038 = dma.done.wait (%p5859_p4), [#allocation2 + $0x1], 64 }
 0x38c   :  { %6040 = vsyncadd (%p5859_p4), [#allocation2 + $0x1], 4294967232  ;;  %p5860_p5 = scmp.gt.s32.totalorder %s7146_s1, 34 }
 0x38e   :  { %6042 = dma.done.wait (%p5860_p5), [#allocation2 + $0x2], 64 }
 0x38f   :  { %6044 = vsyncadd (%p5860_p5), [#allocation2 + $0x2], 4294967232  ;;  %p5861_p6 = scmp.gt.s32.totalorder %s7146_s1, 35 }
 0x391   :  { %6046 = dma.done.wait (%p5861_p6), [#allocation2 + $0x3], 64 }
 0x392   :  { %6048 = vsyncadd (%p5861_p6), [#allocation2 + $0x3], 4294967232  ;;  %p5862_p7 = scmp.gt.s32.totalorder %s7146_s1, 36 }
 0x394   :  { %6050 = dma.done.wait (%p5862_p7), [#allocation2 + $0x4], 64 }
 0x395   :  { %6052 = vsyncadd (%p5862_p7), [#allocation2 + $0x4], 4294967232  ;;  %p5863_p8 = scmp.gt.s32.totalorder %s7146_s1, 37 }
 0x397   :  { %6054 = dma.done.wait (%p5863_p8), [#allocation2 + $0x5], 64 }
 0x398   :  { %6056 = vsyncadd (%p5863_p8), [#allocation2 + $0x5], 4294967232  ;;  %p5864_p9 = scmp.gt.s32.totalorder %s7146_s1, 38 }
 0x39a   :  { %6058 = dma.done.wait (%p5864_p9), [#allocation2 + $0x6], 64 }
 0x39b   :  { %6060 = vsyncadd (%p5864_p9), [#allocation2 + $0x6], 4294967232  ;;  %p5865_p10 = scmp.gt.s32.totalorder %s7146_s1, 39 }
 0x39d   :  { %6062 = dma.done.wait (%p5865_p10), [#allocation2 + $0x7], 64 }
 0x39e   :  { %6064 = vsyncadd (%p5865_p10), [#allocation2 + $0x7], 4294967232  ;;  %p5866_p11 = scmp.gt.s32.totalorder %s7146_s1, 40 }
 0x3a0   :  { %6066 = dma.done.wait (%p5866_p11), [#allocation2 + $0x8], 64 }
 0x3a1   :  { %6068 = vsyncadd (%p5866_p11), [#allocation2 + $0x8], 4294967232  ;;  %p5867_p12 = scmp.gt.s32.totalorder %s7146_s1, 41 }
 0x3a3   :  { %6070 = dma.done.wait (%p5867_p12), [#allocation2 + $0x9], 64 }
 0x3a4   :  { %6072 = vsyncadd (%p5867_p12), [#allocation2 + $0x9], 4294967232  ;;  %p5868_p13 = scmp.gt.s32.totalorder %s7146_s1, 42 }
 0x3a6   :  { %6074 = dma.done.wait (%p5868_p13), [#allocation2 + $0xa], 64 }
 0x3a7   :  { %6076 = vsyncadd (%p5868_p13), [#allocation2 + $0xa], 4294967232  ;;  %p5869_p0 = scmp.gt.s32.totalorder %s7146_s1, 43 }
 0x3a9   :  { %6078 = dma.done.wait (%p5869_p0), [#allocation2 + $0xb], 64 }
 0x3aa   :  { %6080 = vsyncadd (%p5869_p0), [#allocation2 + $0xb], 4294967232  ;;  %p5870_p1 = scmp.gt.s32.totalorder %s7146_s1, 44 }
 0x3ac   :  { %6082 = dma.done.wait (%p5870_p1), [#allocation2 + $0xc], 64 }
 0x3ad   :  { %6084 = vsyncadd (%p5870_p1), [#allocation2 + $0xc], 4294967232  ;;  %p5871_p2 = scmp.gt.s32.totalorder %s7146_s1, 45 }
 0x3af   :  { %6086 = dma.done.wait (%p5871_p2), [#allocation2 + $0xd], 64 }
 0x3b0   :  { %6088 = vsyncadd (%p5871_p2), [#allocation2 + $0xd], 4294967232  ;;  %p5872_p3 = scmp.gt.s32.totalorder %s7146_s1, 46 }
 0x3b2   :  { %6090 = dma.done.wait (%p5872_p3), [#allocation2 + $0xe], 64 }
 0x3b3   :  { %6092 = vsyncadd (%p5872_p3), [#allocation2 + $0xe], 4294967232  ;;  %p5873_p4 = scmp.gt.s32.totalorder %s7146_s1, 47 }
 0x3b5   :  { %6094 = dma.done.wait (%p5873_p4), [#allocation2 + $0xf], 64 }
 0x3b6   :  { %6096 = vsyncadd (%p5873_p4), [#allocation2 + $0xf], 4294967232  ;;  %p5874_p5 = scmp.gt.s32.totalorder %s7146_s1, 48 }
 0x3b8   :  { %6098 = dma.done.wait (%p5874_p5), [#allocation2], 64 }
 0x3b9   :  { %6100 = vsyncadd (%p5874_p5), [#allocation2], 4294967232  ;;  %p5875_p6 = scmp.gt.s32.totalorder %s7146_s1, 49 }
 0x3bb   :  { %6102 = dma.done.wait (%p5875_p6), [#allocation2 + $0x1], 64 }
 0x3bc   :  { %6104 = vsyncadd (%p5875_p6), [#allocation2 + $0x1], 4294967232  ;;  %p5876_p7 = scmp.gt.s32.totalorder %s7146_s1, 50 }
 0x3be   :  { %6106 = dma.done.wait (%p5876_p7), [#allocation2 + $0x2], 64 }
 0x3bf   :  { %6108 = vsyncadd (%p5876_p7), [#allocation2 + $0x2], 4294967232  ;;  %p5877_p8 = scmp.gt.s32.totalorder %s7146_s1, 51 }
 0x3c1   :  { %6110 = dma.done.wait (%p5877_p8), [#allocation2 + $0x3], 64 }
 0x3c2   :  { %6112 = vsyncadd (%p5877_p8), [#allocation2 + $0x3], 4294967232  ;;  %p5878_p9 = scmp.gt.s32.totalorder %s7146_s1, 52 }
 0x3c4   :  { %6114 = dma.done.wait (%p5878_p9), [#allocation2 + $0x4], 64 }
 0x3c5   :  { %6116 = vsyncadd (%p5878_p9), [#allocation2 + $0x4], 4294967232  ;;  %p5879_p10 = scmp.gt.s32.totalorder %s7146_s1, 53 }
 0x3c7   :  { %6118 = dma.done.wait (%p5879_p10), [#allocation2 + $0x5], 64 }
 0x3c8   :  { %6120 = vsyncadd (%p5879_p10), [#allocation2 + $0x5], 4294967232  ;;  %p5880_p11 = scmp.gt.s32.totalorder %s7146_s1, 54 }
 0x3ca   :  { %6122 = dma.done.wait (%p5880_p11), [#allocation2 + $0x6], 64 }
 0x3cb   :  { %6124 = vsyncadd (%p5880_p11), [#allocation2 + $0x6], 4294967232  ;;  %p5881_p12 = scmp.gt.s32.totalorder %s7146_s1, 55 }
 0x3cd   :  { %6126 = dma.done.wait (%p5881_p12), [#allocation2 + $0x7], 64 }
 0x3ce   :  { %6128 = vsyncadd (%p5881_p12), [#allocation2 + $0x7], 4294967232  ;;  %p5882_p13 = scmp.gt.s32.totalorder %s7146_s1, 56 }
 0x3d0   :  { %6130 = dma.done.wait (%p5882_p13), [#allocation2 + $0x8], 64 }
 0x3d1   :  { %6132 = vsyncadd (%p5882_p13), [#allocation2 + $0x8], 4294967232  ;;  %p5883_p0 = scmp.gt.s32.totalorder %s7146_s1, 57 }
 0x3d3   :  { %6134 = dma.done.wait (%p5883_p0), [#allocation2 + $0x9], 64 }
 0x3d4   :  { %6136 = vsyncadd (%p5883_p0), [#allocation2 + $0x9], 4294967232  ;;  %p5884_p1 = scmp.gt.s32.totalorder %s7146_s1, 58 }
 0x3d6   :  { %6138 = dma.done.wait (%p5884_p1), [#allocation2 + $0xa], 64 }
 0x3d7   :  { %6140 = vsyncadd (%p5884_p1), [#allocation2 + $0xa], 4294967232  ;;  %p5885_p2 = scmp.gt.s32.totalorder %s7146_s1, 59 }
 0x3d9   :  { %6142 = dma.done.wait (%p5885_p2), [#allocation2 + $0xb], 64 }
 0x3da   :  { %6144 = vsyncadd (%p5885_p2), [#allocation2 + $0xb], 4294967232  ;;  %p5886_p3 = scmp.gt.s32.totalorder %s7146_s1, 60 }
 0x3dc   :  { %6146 = dma.done.wait (%p5886_p3), [#allocation2 + $0xc], 64 }
 0x3dd   :  { %6148 = vsyncadd (%p5886_p3), [#allocation2 + $0xc], 4294967232  ;;  %p5887_p4 = scmp.gt.s32.totalorder %s7146_s1, 61 }
 0x3df   :  { %6150 = dma.done.wait (%p5887_p4), [#allocation2 + $0xd], 64 }
 0x3e0   :  { %6152 = vsyncadd (%p5887_p4), [#allocation2 + $0xd], 4294967232  ;;  %p5888_p5 = scmp.gt.s32.totalorder %s7146_s1, 62 }
 0x3e2   :  { %6154 = dma.done.wait (%p5888_p5), [#allocation2 + $0xe], 64 }
 0x3e3   :  { %6156 = vsyncadd (%p5888_p5), [#allocation2 + $0xe], 4294967232  ;;  %p5889_p6 = scmp.gt.s32.totalorder %s7146_s1, 63 }
 0x3e5   :  { %6158 = dma.done.wait (%p5889_p6), [#allocation2 + $0xf], 64 }
 0x3e6   :  { %6160 = vsyncadd (%p5889_p6), [#allocation2 + $0xf], 4294967232 }
 0x3e7   :  { %4104 = vsyncmov [#allocation2] }
 0x3ea   :  { %s4105_s12 = vpop.sfrf %4104 }
 0x3eb   :  { %p5682_p7 = scmp.ne.s32.totalorder %s4105_s12, 0 }
 0x3ed   :  { %4109 = shalt.err (%p5682_p7)  }
 0x3ee   :  { %4111 = vsyncmov [#allocation2 + $0x1] }
 0x3f1   :  { %s4112_s22 = vpop.sfrf %4111 }
 0x3f2   :  { %p5683_p8 = scmp.ne.s32.totalorder %s4112_s22, 0 }
 0x3f4   :  { %4116 = shalt.err (%p5683_p8)  }
 0x3f5   :  { %4118 = vsyncmov [#allocation2 + $0x2] }
 0x3f8   :  { %s4119_s28 = vpop.sfrf %4118 }
 0x3f9   :  { %p5684_p9 = scmp.ne.s32.totalorder %s4119_s28, 0 }
 0x3fb   :  { %4123 = shalt.err (%p5684_p9)  }
 0x3fc   :  { %4125 = vsyncmov [#allocation2 + $0x3] }
 0x3ff   :  { %s4126_s17 = vpop.sfrf %4125 }
 0x400   :  { %p5685_p10 = scmp.ne.s32.totalorder %s4126_s17, 0 }
 0x402   :  { %4130 = shalt.err (%p5685_p10)  }
 0x403   :  { %4132 = vsyncmov [#allocation2 + $0x4] }
 0x406   :  { %s4133_s1 = vpop.sfrf %4132 }
 0x407   :  { %p5686_p11 = scmp.ne.s32.totalorder %s4133_s1, 0 }
 0x409   :  { %4137 = shalt.err (%p5686_p11)  }
 0x40a   :  { %4139 = vsyncmov [#allocation2 + $0x5] }
 0x40d   :  { %s4140_s25 = vpop.sfrf %4139 }
 0x40e   :  { %p5687_p12 = scmp.ne.s32.totalorder %s4140_s25, 0 }
 0x410   :  { %4144 = shalt.err (%p5687_p12)  }
 0x411   :  { %4146 = vsyncmov [#allocation2 + $0x6] }
 0x414   :  { %s4147_s16 = vpop.sfrf %4146 }
 0x415   :  { %p5688_p13 = scmp.ne.s32.totalorder %s4147_s16, 0 }
 0x417   :  { %4151 = shalt.err (%p5688_p13)  }
 0x418   :  { %4153 = vsyncmov [#allocation2 + $0x7] }
 0x41b   :  { %s4154_s5 = vpop.sfrf %4153 }
 0x41c   :  { %p5689_p0 = scmp.ne.s32.totalorder %s4154_s5, 0 }
 0x41e   :  { %4158 = shalt.err (%p5689_p0)  }
 0x41f   :  { %4160 = vsyncmov [#allocation2 + $0x8] }
 0x422   :  { %s4161_s11 = vpop.sfrf %4160 }
 0x423   :  { %p5690_p1 = scmp.ne.s32.totalorder %s4161_s11, 0 }
 0x425   :  { %4165 = shalt.err (%p5690_p1)  }
 0x426   :  { %4167 = vsyncmov [#allocation2 + $0x9] }
 0x429   :  { %s4168_s20 = vpop.sfrf %4167 }
 0x42a   :  { %p5691_p2 = scmp.ne.s32.totalorder %s4168_s20, 0 }
 0x42c   :  { %4172 = shalt.err (%p5691_p2)  }
 0x42d   :  { %4174 = vsyncmov [#allocation2 + $0xa] }
 0x430   :  { %s4175_s19 = vpop.sfrf %4174 }
 0x431   :  { %p5692_p3 = scmp.ne.s32.totalorder %s4175_s19, 0 }
 0x433   :  { %4179 = shalt.err (%p5692_p3)  }
 0x434   :  { %4181 = vsyncmov [#allocation2 + $0xb] }
 0x437   :  { %s4182_s13 = vpop.sfrf %4181 }
 0x438   :  { %p5693_p4 = scmp.ne.s32.totalorder %s4182_s13, 0 }
 0x43a   :  { %4186 = shalt.err (%p5693_p4)  }
 0x43b   :  { %4188 = vsyncmov [#allocation2 + $0xc] }
 0x43e   :  { %s4189_s29 = vpop.sfrf %4188 }
 0x43f   :  { %p5694_p5 = scmp.ne.s32.totalorder %s4189_s29, 0 }
 0x441   :  { %4193 = shalt.err (%p5694_p5)  }
 0x442   :  { %4195 = vsyncmov [#allocation2 + $0xd] }
 0x445   :  { %s4196_s6 = vpop.sfrf %4195 }
 0x446   :  { %p5695_p6 = scmp.ne.s32.totalorder %s4196_s6, 0 }
 0x448   :  { %4200 = shalt.err (%p5695_p6)  }
 0x449   :  { %4202 = vsyncmov [#allocation2 + $0xe] }
 0x44c   :  { %s4203_s23 = vpop.sfrf %4202 }
 0x44d   :  { %p5696_p7 = scmp.ne.s32.totalorder %s4203_s23, 0 }
 0x44f   :  { %4207 = shalt.err (%p5696_p7)  }
 0x450   :  { %4209 = vsyncmov [#allocation2 + $0xf] }
 0x453   :  { %s4210_s26 = vpop.sfrf %4209 }
 0x454   :  { %p5697_p8 = scmp.ne.s32.totalorder %s4210_s26, 0 }
 0x456   :  { %4214 = shalt.err (%p5697_p8)  }

</bundles_post_ra>
